<compile_context>
chip_gen: v7x
topology: tpu7x:2x2x1
jax: 0.10.0
libtpu: 0.0.40
codegen_flags: <defaults>
</compile_context>

<pallas_src>
import jax
import jax.numpy as jnp
from jax.experimental import pallas as pl
from jax.experimental.pallas import tpu as pltpu

BN_EPS = 1e-5


# ----------------------------------------------------------------------------
# Pallas kernel: y = relu( conv3x3( zero_pad( x + shift ) ) @ scale-folded W )
# plus per-sample channel sum / sum-of-squares of y (for the next BatchNorm).
# ----------------------------------------------------------------------------
def _bn_conv_relu_kernel(x_ref, shift_ref, w_ref, o_ref, sum_ref, ssq_ref,
                         xpad_ref, patches_ref):
    """
    x_ref      : (1, H, W, Cin)   f32   one batch sample
    shift_ref  : (1, Cin)         f32   BN shift / BN scale
    w_ref      : (9*Cin, Cout)    bf16  BN-scale-folded conv weights
    o_ref      : (1, H*W, Cout)   f32   activation (same layout as the acc)
    sum_ref    : (1, 1, Cout)     f32   per-sample channel sums of y
    ssq_ref    : (1, 1, Cout)     f32   per-sample channel sums of y*y
    xpad_ref   : (H+2, W+2, Cin)  f32   zero-halo scratch
    patches_ref: (H*W, 9*Cin)     f32   im2col scratch
    """
    H, W, Cin = x_ref.shape[1], x_ref.shape[2], x_ref.shape[3]
    HW = H * W

    # Zero only the 4 halo strips (interior is fully rewritten below).
    xpad_ref[0:1, :, :] = jnp.zeros((1, W + 2, Cin), jnp.float32)
    xpad_ref[H + 1:H + 2, :, :] = jnp.zeros((1, W + 2, Cin), jnp.float32)
    xpad_ref[:, 0:1, :] = jnp.zeros((H + 2, 1, Cin), jnp.float32)
    xpad_ref[:, W + 1:W + 2, :] = jnp.zeros((H + 2, 1, Cin), jnp.float32)

    # BN affine: per-channel scale is folded into w in the wrapper; only the
    # (rescaled) shift remains.  Zero padding is applied *after* the affine,
    # exactly matching nn.Sequential(BatchNorm2d, Conv2d(padding=1)).
    xpad_ref[1:H + 1, 1:W + 1, :] = x_ref[0] + shift_ref[0]

    # im2col: build (H*W, 9*Cin) once, then a single MXU matmul with K = 9*Cin.
    for t in range(9):
        ky, kx = divmod(t, 3)
        patches_ref[:, t * Cin:(t + 1) * Cin] = (
            xpad_ref[ky:ky + H, kx:kx + W, :].reshape(HW, Cin))

    acc = jnp.dot(patches_ref[...].astype(jnp.bfloat16), w_ref[...],
                  preferred_element_type=jnp.float32)
    y = jnp.maximum(acc, 0.0)

    o_ref[0] = y
    # Fused per-channel stats for the *next* BatchNorm (avoids an extra HBM
    # pass over the activation in the wrapper).
    sum_ref[0] = jnp.sum(y, axis=0, keepdims=True)
    ssq_ref[0] = jnp.sum(y * y, axis=0, keepdims=True)


def bn_conv_relu(x, mean, var, gamma, beta, w):
    """x: (N,H,W,Cin) f32; mean/var/gamma/beta: (Cin,); w: (9,Cin,Cout).

    Returns (y, chan_sum, chan_sumsq):
      y           (N, H*W, Cout) f32 = relu(conv3x3(batchnorm(x)))
      chan_sum    (N, 1, Cout)   f32 = per-sample sum of y over H*W
      chan_sumsq  (N, 1, Cout)   f32 = per-sample sum of y^2 over H*W
    """
    N, H, W, Cin = x.shape
    Cout = w.shape[-1]

    scale = gamma * jax.lax.rsqrt(var + BN_EPS)            # (Cin,)
    shift = beta - mean * scale                            # (Cin,)
    # Fold the BN scale into the weights (exact: pad(x + shift/scale)*scale
    # == pad(x*scale + shift) because the halo is zero either way).
    w_folded = (w * scale[None, :, None]).reshape(9 * Cin, Cout)
    w_folded = w_folded.astype(jnp.bfloat16)
    shift_adj = (shift / scale).reshape(1, Cin).astype(jnp.float32)

    return pl.pallas_call(
        _bn_conv_relu_kernel,
        out_shape=(
            jax.ShapeDtypeStruct((N, H * W, Cout), jnp.float32),
            jax.ShapeDtypeStruct((N, 1, Cout), jnp.float32),
            jax.ShapeDtypeStruct((N, 1, Cout), jnp.float32),
        ),
        grid=(N,),
        in_specs=[
            pl.BlockSpec((1, H, W, Cin), lambda n: (n, 0, 0, 0)),
            pl.BlockSpec((1, Cin), lambda n: (0, 0)),
            pl.BlockSpec((9 * Cin, Cout), lambda n: (0, 0)),
        ],
        out_specs=(
            pl.BlockSpec((1, H * W, Cout), lambda n: (n, 0, 0)),
            pl.BlockSpec((1, 1, Cout), lambda n: (n, 0, 0)),
            pl.BlockSpec((1, 1, Cout), lambda n: (n, 0, 0)),
        ),
        scratch_shapes=[
            pltpu.VMEM((H + 2, W + 2, Cin), jnp.float32),
            pltpu.VMEM((H * W, 9 * Cin), jnp.float32),
        ],
        compiler_params=pltpu.CompilerParams(
            dimension_semantics=("parallel",)),
    )(x, shift_adj, w_folded)


# ----------------------------------------------------------------------------
# ConvBlock forward (PyTorch semantics, NCHW in / NCHW out)
# ----------------------------------------------------------------------------
def conv_block_forward(x_nchw, params):
    x = jnp.transpose(x_nchw, (0, 2, 3, 1))               # NCHW -> NHWC
    N, H, W, _ = x.shape
    count = N * H * W

    # BatchNorm2d #1 batch statistics (training mode, biased variance) come
    # from the network input, so they are computed in plain JAX (tiny).
    mean1 = jnp.mean(x, axis=(0, 1, 2))
    var1 = jnp.mean(jnp.square(x - mean1), axis=(0, 1, 2))

    y1, s1, q1 = bn_conv_relu(x, mean1, var1,
                              params["gamma1"], params["beta1"], params["w1"])

    # BatchNorm2d #2 statistics from the fused per-sample sums.
    mean2 = jnp.sum(s1, axis=(0, 1)) / count
    var2 = jnp.sum(q1, axis=(0, 1)) / count - mean2 * mean2   # biased variance

    c1 = params["w1"].shape[-1]
    y2, _, _ = bn_conv_relu(y1.reshape(N, H, W, c1), mean2, var2,
                            params["gamma2"], params["beta2"], params["w2"])

    c2 = params["w2"].shape[-1]
    out = y2.reshape(N, H, W, c2)                          # free XLA reshape
    return jnp.transpose(out, (0, 3, 1, 2))                # NHWC -> NCHW


# ----------------------------------------------------------------------------
# Parameter init (deterministic, PyTorch-default BN affine) and f32 reference
# ----------------------------------------------------------------------------
def init_conv_block(key, in_depth, out_depth):
    k1, k2 = jax.random.split(key)
    return {
        "gamma1": jnp.ones((in_depth,), jnp.float32),
        "beta1": jnp.zeros((in_depth,), jnp.float32),
        "w1": 0.1 * jax.random.normal(k1, (9, in_depth, out_depth), jnp.float32),
        "gamma2": jnp.ones((out_depth,), jnp.float32),
        "beta2": jnp.zeros((out_depth,), jnp.float32),
        "w2": 0.1 * jax.random.normal(k2, (9, out_depth, out_depth), jnp.float32),
    }


def _reference_conv_block(x_nchw, params):
    """Pure-JAX f32 reference of the same forward (no Pallas, no bf16)."""
    x = jnp.transpose(x_nchw, (0, 2, 3, 1))

    def bn(v, gamma, beta):
        mean = jnp.mean(v, axis=(0, 1, 2))
        var = jnp.mean(jnp.square(v - mean), axis=(0, 1, 2))
        return (v - mean) * (gamma * jax.lax.rsqrt(var + BN_EPS)) + beta

    def conv3x3(v, w):
        n, h, ww, _ = v.shape
        vp = jnp.pad(v, ((0, 0), (1, 1), (1, 1), (0, 0)))
        out = jnp.zeros((n, h, ww, w.shape[-1]), jnp.float32)
        for t in range(9):
            ky, kx = divmod(t, 3)
            out = out + jnp.einsum("nhwc,cd->nhwd",
                                   vp[:, ky:ky + h, kx:kx + ww, :], w[t])
        return out

    y = jax.nn.relu(conv3x3(bn(x, params["gamma1"], params["beta1"]), params["w1"]))
    y = jax.nn.relu(conv3x3(bn(y, params["gamma2"], params["beta2"]), params["w2"]))
    return jnp.transpose(y, (0, 3, 1, 2))


if __name__ == "__main__":
    key = jax.random.PRNGKey(0)
    pkey, xkey = jax.random.split(key)

    N, H, W = 2, 16, 16
    in_depth, out_depth = 4, 8

    params = init_conv_block(pkey, in_depth, out_depth)
    x = jax.random.normal(xkey, (N, in_depth, H, W), jnp.float32)

    out = jax.jit(conv_block_forward)(x, params)
    out = jax.block_until_ready(out)
    assert out.shape == (N, out_depth, H, W), out.shape
    assert bool(jnp.all(jnp.isfinite(out)))

    # Loose sanity check against the pure-JAX f32 reference (the kernel matmul
    # runs in bf16 with f32 accumulation, so allow a few % of dynamic range).
    ref = _reference_conv_block(x, params)
    err = float(jnp.max(jnp.abs(out - ref)) / (jnp.max(jnp.abs(ref)) + 1e-6))
    assert err < 5e-2, err

    print("KERNEL_OK")
</pallas_src>

<mosaic_0001>
module attributes {stable_mosaic.version = 11 : i64} {
  func.func @_bn_conv_relu_kernel(%arg0: i32, %arg1: memref<1x16x16x4xf32, #tpu.memory_space<vmem>>, %arg2: memref<1x4xf32, #tpu.memory_space<vmem>>, %arg3: memref<36x8xbf16, #tpu.memory_space<vmem>>, %arg4: memref<1x256x8xf32, #tpu.memory_space<vmem>>, %arg5: memref<1x1x8xf32, #tpu.memory_space<vmem>>, %arg6: memref<1x1x8xf32, #tpu.memory_space<vmem>>, %arg7: memref<18x18x4xf32, #tpu.memory_space<vmem>>, %arg8: memref<256x36xf32, #tpu.memory_space<vmem>>) attributes {dimension_semantics = [#tpu.dimension_semantics<parallel>], iteration_bounds = array<i64: 2>, scalar_prefetch = 0 : i64, scratch_operands = 2 : i64, tpu.core_type = #tpu.core_type<tc>, window_params = [{transform_indices = @transform_0, window_bounds = array<i64: 1, 16, 16, 4>}, {pipeline_mode = #tpu.pipeline_mode<synchronous>, transform_indices = @transform_1, window_bounds = array<i64: 1, 4>}, {pipeline_mode = #tpu.pipeline_mode<synchronous>, transform_indices = @transform_2, window_bounds = array<i64: 36, 8>}, {transform_indices = @transform_3, window_bounds = array<i64: 1, 256, 8>}, {transform_indices = @transform_4, window_bounds = array<i64: 1, 1, 8>}, {transform_indices = @transform_5, window_bounds = array<i64: 1, 1, 8>}]} {
    %cst = arith.constant 0.000000e+00 : f32
    %0 = vector.broadcast %cst : f32 to vector<1x18x4xf32>
    %c0 = arith.constant 0 : index
    %c0_0 = arith.constant 0 : index
    %c0_1 = arith.constant 0 : index
    %1 = vector.load %arg7[%c0, %c0_0, %c0_1] : memref<18x18x4xf32, #tpu.memory_space<vmem>>, vector<1x18x4xf32>
    tpu.vector_store %arg7[%c0, %c0_0, %c0_1], %0 {strides = array<i32>} : memref<18x18x4xf32, #tpu.memory_space<vmem>>, vector<1x18x4xf32>,
    %cst_2 = arith.constant 0.000000e+00 : f32
    %2 = vector.broadcast %cst_2 : f32 to vector<1x18x4xf32>
    %c17 = arith.constant 17 : index
    %c0_3 = arith.constant 0 : index
    %c0_4 = arith.constant 0 : index
    %3 = vector.load %arg7[%c17, %c0_3, %c0_4] : memref<18x18x4xf32, #tpu.memory_space<vmem>>, vector<1x18x4xf32>
    tpu.vector_store %arg7[%c17, %c0_3, %c0_4], %2 {strides = array<i32>} : memref<18x18x4xf32, #tpu.memory_space<vmem>>, vector<1x18x4xf32>,
    %cst_5 = arith.constant 0.000000e+00 : f32
    %4 = vector.broadcast %cst_5 : f32 to vector<18x1x4xf32>
    %c0_6 = arith.constant 0 : index
    %c0_7 = arith.constant 0 : index
    %c0_8 = arith.constant 0 : index
    %5 = vector.load %arg7[%c0_6, %c0_7, %c0_8] : memref<18x18x4xf32, #tpu.memory_space<vmem>>, vector<18x1x4xf32>
    tpu.vector_store %arg7[%c0_6, %c0_7, %c0_8], %4 {strides = array<i32>} : memref<18x18x4xf32, #tpu.memory_space<vmem>>, vector<18x1x4xf32>,
    %cst_9 = arith.constant 0.000000e+00 : f32
    %6 = vector.broadcast %cst_9 : f32 to vector<18x1x4xf32>
    %c0_10 = arith.constant 0 : index
    %c17_11 = arith.constant 17 : index
    %c0_12 = arith.constant 0 : index
    %7 = vector.load %arg7[%c0_10, %c17_11, %c0_12] : memref<18x18x4xf32, #tpu.memory_space<vmem>>, vector<18x1x4xf32>
    tpu.vector_store %arg7[%c0_10, %c17_11, %c0_12], %6 {strides = array<i32>} : memref<18x18x4xf32, #tpu.memory_space<vmem>>, vector<18x1x4xf32>,
    %c0_13 = arith.constant 0 : index
    %c0_14 = arith.constant 0 : index
    %c0_15 = arith.constant 0 : index
    %c0_16 = arith.constant 0 : index
    %8 = vector.load %arg1[%c0_13, %c0_14, %c0_15, %c0_16] : memref<1x16x16x4xf32, #tpu.memory_space<vmem>>, vector<1x16x16x4xf32>
    %9 = vector.shape_cast %8 : vector<1x16x16x4xf32> to vector<16x16x4xf32>
    %c0_17 = arith.constant 0 : index
    %c0_18 = arith.constant 0 : index
    %10 = vector.load %arg2[%c0_17, %c0_18] : memref<1x4xf32, #tpu.memory_space<vmem>>, vector<1x4xf32>
    %11 = vector.shape_cast %10 : vector<1x4xf32> to vector<4xf32>
    %12 = vector.shape_cast %11 : vector<4xf32> to vector<1x1x4xf32>
    %13 = vector.broadcast %12 : vector<1x1x4xf32> to vector<16x16x4xf32>
    %14 = arith.addf %9, %13 : vector<16x16x4xf32>
    %c1 = arith.constant 1 : index
    %c1_19 = arith.constant 1 : index
    %c0_20 = arith.constant 0 : index
    %15 = vector.load %arg7[%c1, %c1_19, %c0_20] : memref<18x18x4xf32, #tpu.memory_space<vmem>>, vector<16x16x4xf32>
    tpu.vector_store %arg7[%c1, %c1_19, %c0_20], %14 {strides = array<i32>} : memref<18x18x4xf32, #tpu.memory_space<vmem>>, vector<16x16x4xf32>,
    %c0_21 = arith.constant 0 : index
    %c0_22 = arith.constant 0 : index
    %c0_23 = arith.constant 0 : index
    %16 = vector.load %arg7[%c0_21, %c0_22, %c0_23] : memref<18x18x4xf32, #tpu.memory_space<vmem>>, vector<16x16x4xf32>
    %17 = vector.shape_cast %16 : vector<16x16x4xf32> to vector<256x4xf32>
    %c0_24 = arith.constant 0 : index
    %c0_25 = arith.constant 0 : index
    %18 = vector.load %arg8[%c0_24, %c0_25] : memref<256x36xf32, #tpu.memory_space<vmem>>, vector<256x4xf32>
    tpu.vector_store %arg8[%c0_24, %c0_25], %17 {strides = array<i32>} : memref<256x36xf32, #tpu.memory_space<vmem>>, vector<256x4xf32>,
    %c0_26 = arith.constant 0 : index
    %c1_27 = arith.constant 1 : index
    %c0_28 = arith.constant 0 : index
    %19 = vector.load %arg7[%c0_26, %c1_27, %c0_28] : memref<18x18x4xf32, #tpu.memory_space<vmem>>, vector<16x16x4xf32>
    %20 = vector.shape_cast %19 : vector<16x16x4xf32> to vector<256x4xf32>
    %c0_29 = arith.constant 0 : index
    %c4 = arith.constant 4 : index
    %21 = vector.load %arg8[%c0_29, %c4] : memref<256x36xf32, #tpu.memory_space<vmem>>, vector<256x4xf32>
    tpu.vector_store %arg8[%c0_29, %c4], %20 {strides = array<i32>} : memref<256x36xf32, #tpu.memory_space<vmem>>, vector<256x4xf32>,
    %c0_30 = arith.constant 0 : index
    %c2 = arith.constant 2 : index
    %c0_31 = arith.constant 0 : index
    %22 = vector.load %arg7[%c0_30, %c2, %c0_31] : memref<18x18x4xf32, #tpu.memory_space<vmem>>, vector<16x16x4xf32>
    %23 = vector.shape_cast %22 : vector<16x16x4xf32> to vector<256x4xf32>
    %c0_32 = arith.constant 0 : index
    %c8 = arith.constant 8 : index
    %24 = vector.load %arg8[%c0_32, %c8] : memref<256x36xf32, #tpu.memory_space<vmem>>, vector<256x4xf32>
    tpu.vector_store %arg8[%c0_32, %c8], %23 {strides = array<i32>} : memref<256x36xf32, #tpu.memory_space<vmem>>, vector<256x4xf32>,
    %c1_33 = arith.constant 1 : index
    %c0_34 = arith.constant 0 : index
    %c0_35 = arith.constant 0 : index
    %25 = vector.load %arg7[%c1_33, %c0_34, %c0_35] : memref<18x18x4xf32, #tpu.memory_space<vmem>>, vector<16x16x4xf32>
    %26 = vector.shape_cast %25 : vector<16x16x4xf32> to vector<256x4xf32>
    %c0_36 = arith.constant 0 : index
    %c12 = arith.constant 12 : index
    %27 = vector.load %arg8[%c0_36, %c12] : memref<256x36xf32, #tpu.memory_space<vmem>>, vector<256x4xf32>
    tpu.vector_store %arg8[%c0_36, %c12], %26 {strides = array<i32>} : memref<256x36xf32, #tpu.memory_space<vmem>>, vector<256x4xf32>,
    %c1_37 = arith.constant 1 : index
    %c1_38 = arith.constant 1 : index
    %c0_39 = arith.constant 0 : index
    %28 = vector.load %arg7[%c1_37, %c1_38, %c0_39] : memref<18x18x4xf32, #tpu.memory_space<vmem>>, vector<16x16x4xf32>
    %29 = vector.shape_cast %28 : vector<16x16x4xf32> to vector<256x4xf32>
    %c0_40 = arith.constant 0 : index
    %c16 = arith.constant 16 : index
    %30 = vector.load %arg8[%c0_40, %c16] : memref<256x36xf32, #tpu.memory_space<vmem>>, vector<256x4xf32>
    tpu.vector_store %arg8[%c0_40, %c16], %29 {strides = array<i32>} : memref<256x36xf32, #tpu.memory_space<vmem>>, vector<256x4xf32>,
    %c1_41 = arith.constant 1 : index
    %c2_42 = arith.constant 2 : index
    %c0_43 = arith.constant 0 : index
    %31 = vector.load %arg7[%c1_41, %c2_42, %c0_43] : memref<18x18x4xf32, #tpu.memory_space<vmem>>, vector<16x16x4xf32>
    %32 = vector.shape_cast %31 : vector<16x16x4xf32> to vector<256x4xf32>
    %c0_44 = arith.constant 0 : index
    %c20 = arith.constant 20 : index
    %33 = vector.load %arg8[%c0_44, %c20] : memref<256x36xf32, #tpu.memory_space<vmem>>, vector<256x4xf32>
    tpu.vector_store %arg8[%c0_44, %c20], %32 {strides = array<i32>} : memref<256x36xf32, #tpu.memory_space<vmem>>, vector<256x4xf32>,
    %c2_45 = arith.constant 2 : index
    %c0_46 = arith.constant 0 : index
    %c0_47 = arith.constant 0 : index
    %34 = vector.load %arg7[%c2_45, %c0_46, %c0_47] : memref<18x18x4xf32, #tpu.memory_space<vmem>>, vector<16x16x4xf32>
    %35 = vector.shape_cast %34 : vector<16x16x4xf32> to vector<256x4xf32>
    %c0_48 = arith.constant 0 : index
    %c24 = arith.constant 24 : index
    %36 = vector.load %arg8[%c0_48, %c24] : memref<256x36xf32, #tpu.memory_space<vmem>>, vector<256x4xf32>
    tpu.vector_store %arg8[%c0_48, %c24], %35 {strides = array<i32>} : memref<256x36xf32, #tpu.memory_space<vmem>>, vector<256x4xf32>,
    %c2_49 = arith.constant 2 : index
    %c1_50 = arith.constant 1 : index
    %c0_51 = arith.constant 0 : index
    %37 = vector.load %arg7[%c2_49, %c1_50, %c0_51] : memref<18x18x4xf32, #tpu.memory_space<vmem>>, vector<16x16x4xf32>
    %38 = vector.shape_cast %37 : vector<16x16x4xf32> to vector<256x4xf32>
    %c0_52 = arith.constant 0 : index
    %c28 = arith.constant 28 : index
    %39 = vector.load %arg8[%c0_52, %c28] : memref<256x36xf32, #tpu.memory_space<vmem>>, vector<256x4xf32>
    tpu.vector_store %arg8[%c0_52, %c28], %38 {strides = array<i32>} : memref<256x36xf32, #tpu.memory_space<vmem>>, vector<256x4xf32>,
    %c2_53 = arith.constant 2 : index
    %c2_54 = arith.constant 2 : index
    %c0_55 = arith.constant 0 : index
    %40 = vector.load %arg7[%c2_53, %c2_54, %c0_55] : memref<18x18x4xf32, #tpu.memory_space<vmem>>, vector<16x16x4xf32>
    %41 = vector.shape_cast %40 : vector<16x16x4xf32> to vector<256x4xf32>
    %c0_56 = arith.constant 0 : index
    %c32 = arith.constant 32 : index
    %42 = vector.load %arg8[%c0_56, %c32] : memref<256x36xf32, #tpu.memory_space<vmem>>, vector<256x4xf32>
    tpu.vector_store %arg8[%c0_56, %c32], %41 {strides = array<i32>} : memref<256x36xf32, #tpu.memory_space<vmem>>, vector<256x4xf32>,
    %c0_57 = arith.constant 0 : index
    %c0_58 = arith.constant 0 : index
    %43 = vector.load %arg8[%c0_57, %c0_58] : memref<256x36xf32, #tpu.memory_space<vmem>>, vector<256x36xf32>
    %44 = arith.truncf %43 : vector<256x36xf32> to vector<256x36xbf16>
    %c0_59 = arith.constant 0 : index
    %c0_60 = arith.constant 0 : index
    %45 = vector.load %arg3[%c0_59, %c0_60] : memref<36x8xbf16, #tpu.memory_space<vmem>>, vector<36x8xbf16>
    %cst_61 = arith.constant dense<0.000000e+00> : vector<256x8xf32>
    %46 = tpu.matmul %44, %45, %cst_61 {dimension_numbers = #tpu.dot_dimension_numbers<[1], [0], [0], [1], [0, 0, 1, 1], [], []>} : vector<256x36xbf16>, vector<36x8xbf16>, vector<256x8xf32> -> vector<256x8xf32>
    %cst_62 = arith.constant 0.000000e+00 : f32
    %47 = vector.broadcast %cst_62 : f32 to vector<256x8xf32>
    %48 = arith.maximumf %46, %47 : vector<256x8xf32>
    %c0_63 = arith.constant 0 : index
    %c0_64 = arith.constant 0 : index
    %c0_65 = arith.constant 0 : index
    %49 = vector.load %arg4[%c0_63, %c0_64, %c0_65] : memref<1x256x8xf32, #tpu.memory_space<vmem>>, vector<1x256x8xf32>
    %50 = vector.shape_cast %49 : vector<1x256x8xf32> to vector<256x8xf32>
    %51 = vector.shape_cast %48 : vector<256x8xf32> to vector<1x256x8xf32>
    tpu.vector_store %arg4[%c0_63, %c0_64, %c0_65], %51 {strides = array<i32>} : memref<1x256x8xf32, #tpu.memory_space<vmem>>, vector<1x256x8xf32>,
    %cst_66 = arith.constant dense<0.000000e+00> : vector<8xf32>
    %52 = vector.multi_reduction <add>, %48, %cst_66 [0] : vector<256x8xf32> to vector<8xf32>
    %53 = vector.shape_cast %52 : vector<8xf32> to vector<1x8xf32>
    %c0_67 = arith.constant 0 : index
    %c0_68 = arith.constant 0 : index
    %c0_69 = arith.constant 0 : index
    %54 = vector.load %arg5[%c0_67, %c0_68, %c0_69] : memref<1x1x8xf32, #tpu.memory_space<vmem>>, vector<1x1x8xf32>
    %55 = vector.shape_cast %54 : vector<1x1x8xf32> to vector<1x8xf32>
    %56 = vector.shape_cast %53 : vector<1x8xf32> to vector<1x1x8xf32>
    tpu.vector_store %arg5[%c0_67, %c0_68, %c0_69], %56 {strides = array<i32>} : memref<1x1x8xf32, #tpu.memory_space<vmem>>, vector<1x1x8xf32>,
    %57 = arith.mulf %48, %48 : vector<256x8xf32>
    %cst_70 = arith.constant dense<0.000000e+00> : vector<8xf32>
    %58 = vector.multi_reduction <add>, %57, %cst_70 [0] : vector<256x8xf32> to vector<8xf32>
    %59 = vector.shape_cast %58 : vector<8xf32> to vector<1x8xf32>
    %c0_71 = arith.constant 0 : index
    %c0_72 = arith.constant 0 : index
    %c0_73 = arith.constant 0 : index
    %60 = vector.load %arg6[%c0_71, %c0_72, %c0_73] : memref<1x1x8xf32, #tpu.memory_space<vmem>>, vector<1x1x8xf32>
    %61 = vector.shape_cast %60 : vector<1x1x8xf32> to vector<1x8xf32>
    %62 = vector.shape_cast %59 : vector<1x8xf32> to vector<1x1x8xf32>
    tpu.vector_store %arg6[%c0_71, %c0_72, %c0_73], %62 {strides = array<i32>} : memref<1x1x8xf32, #tpu.memory_space<vmem>>, vector<1x1x8xf32>,
    return
  }
  func.func @transform_0(%arg0: i32) -> (i32, i32, i32, i32) {
    %c0_i32 = arith.constant 0 : i32
    %c0_i32_0 = arith.constant 0 : i32
    %c0_i32_1 = arith.constant 0 : i32
    %c0_i32_2 = arith.constant 0 : i32
    return %arg0, %c0_i32, %c0_i32_0, %c0_i32_1 : i32, i32, i32, i32
  }
  func.func @transform_1(%arg0: i32) -> (i32, i32) {
    %c0_i32 = arith.constant 0 : i32
    %c0_i32_0 = arith.constant 0 : i32
    %c0_i32_1 = arith.constant 0 : i32
    return %c0_i32, %c0_i32_0 : i32, i32
  }
  func.func @transform_2(%arg0: i32) -> (i32, i32) {
    %c0_i32 = arith.constant 0 : i32
    %c0_i32_0 = arith.constant 0 : i32
    %c0_i32_1 = arith.constant 0 : i32
    return %c0_i32, %c0_i32_0 : i32, i32
  }
  func.func @transform_3(%arg0: i32) -> (i32, i32, i32) {
    %c0_i32 = arith.constant 0 : i32
    %c0_i32_0 = arith.constant 0 : i32
    %c0_i32_1 = arith.constant 0 : i32
    return %arg0, %c0_i32, %c0_i32_0 : i32, i32, i32
  }
  func.func @transform_4(%arg0: i32) -> (i32, i32, i32) {
    %c0_i32 = arith.constant 0 : i32
    %c0_i32_0 = arith.constant 0 : i32
    %c0_i32_1 = arith.constant 0 : i32
    return %arg0, %c0_i32, %c0_i32_0 : i32, i32, i32
  }
  func.func @transform_5(%arg0: i32) -> (i32, i32, i32) {
    %c0_i32 = arith.constant 0 : i32
    %c0_i32_0 = arith.constant 0 : i32
    %c0_i32_1 = arith.constant 0 : i32
    return %arg0, %c0_i32, %c0_i32_0 : i32, i32, i32
  }
}

module attributes {stable_mosaic.version = 11 : i64} {
  func.func @_bn_conv_relu_kernel(%arg0: i32, %arg1: memref<1x16x16x8xf32, #tpu.memory_space<vmem>>, %arg2: memref<1x8xf32, #tpu.memory_space<vmem>>, %arg3: memref<72x8xbf16, #tpu.memory_space<vmem>>, %arg4: memref<1x256x8xf32, #tpu.memory_space<vmem>>, %arg5: memref<1x1x8xf32, #tpu.memory_space<vmem>>, %arg6: memref<1x1x8xf32, #tpu.memory_space<vmem>>, %arg7: memref<18x18x8xf32, #tpu.memory_space<vmem>>, %arg8: memref<256x72xf32, #tpu.memory_space<vmem>>) attributes {dimension_semantics = [#tpu.dimension_semantics<parallel>], iteration_bounds = array<i64: 2>, scalar_prefetch = 0 : i64, scratch_operands = 2 : i64, tpu.core_type = #tpu.core_type<tc>, window_params = [{transform_indices = @transform_0, window_bounds = array<i64: 1, 16, 16, 8>}, {pipeline_mode = #tpu.pipeline_mode<synchronous>, transform_indices = @transform_1, window_bounds = array<i64: 1, 8>}, {pipeline_mode = #tpu.pipeline_mode<synchronous>, transform_indices = @transform_2, window_bounds = array<i64: 72, 8>}, {transform_indices = @transform_3, window_bounds = array<i64: 1, 256, 8>}, {transform_indices = @transform_4, window_bounds = array<i64: 1, 1, 8>}, {transform_indices = @transform_5, window_bounds = array<i64: 1, 1, 8>}]} {
    %cst = arith.constant 0.000000e+00 : f32
    %0 = vector.broadcast %cst : f32 to vector<1x18x8xf32>
    %c0 = arith.constant 0 : index
    %c0_0 = arith.constant 0 : index
    %c0_1 = arith.constant 0 : index
    %1 = vector.load %arg7[%c0, %c0_0, %c0_1] : memref<18x18x8xf32, #tpu.memory_space<vmem>>, vector<1x18x8xf32>
    tpu.vector_store %arg7[%c0, %c0_0, %c0_1], %0 {strides = array<i32>} : memref<18x18x8xf32, #tpu.memory_space<vmem>>, vector<1x18x8xf32>,
    %cst_2 = arith.constant 0.000000e+00 : f32
    %2 = vector.broadcast %cst_2 : f32 to vector<1x18x8xf32>
    %c17 = arith.constant 17 : index
    %c0_3 = arith.constant 0 : index
    %c0_4 = arith.constant 0 : index
    %3 = vector.load %arg7[%c17, %c0_3, %c0_4] : memref<18x18x8xf32, #tpu.memory_space<vmem>>, vector<1x18x8xf32>
    tpu.vector_store %arg7[%c17, %c0_3, %c0_4], %2 {strides = array<i32>} : memref<18x18x8xf32, #tpu.memory_space<vmem>>, vector<1x18x8xf32>,
    %cst_5 = arith.constant 0.000000e+00 : f32
    %4 = vector.broadcast %cst_5 : f32 to vector<18x1x8xf32>
    %c0_6 = arith.constant 0 : index
    %c0_7 = arith.constant 0 : index
    %c0_8 = arith.constant 0 : index
    %5 = vector.load %arg7[%c0_6, %c0_7, %c0_8] : memref<18x18x8xf32, #tpu.memory_space<vmem>>, vector<18x1x8xf32>
    tpu.vector_store %arg7[%c0_6, %c0_7, %c0_8], %4 {strides = array<i32>} : memref<18x18x8xf32, #tpu.memory_space<vmem>>, vector<18x1x8xf32>,
    %cst_9 = arith.constant 0.000000e+00 : f32
    %6 = vector.broadcast %cst_9 : f32 to vector<18x1x8xf32>
    %c0_10 = arith.constant 0 : index
    %c17_11 = arith.constant 17 : index
    %c0_12 = arith.constant 0 : index
    %7 = vector.load %arg7[%c0_10, %c17_11, %c0_12] : memref<18x18x8xf32, #tpu.memory_space<vmem>>, vector<18x1x8xf32>
    tpu.vector_store %arg7[%c0_10, %c17_11, %c0_12], %6 {strides = array<i32>} : memref<18x18x8xf32, #tpu.memory_space<vmem>>, vector<18x1x8xf32>,
    %c0_13 = arith.constant 0 : index
    %c0_14 = arith.constant 0 : index
    %c0_15 = arith.constant 0 : index
    %c0_16 = arith.constant 0 : index
    %8 = vector.load %arg1[%c0_13, %c0_14, %c0_15, %c0_16] : memref<1x16x16x8xf32, #tpu.memory_space<vmem>>, vector<1x16x16x8xf32>
    %9 = vector.shape_cast %8 : vector<1x16x16x8xf32> to vector<16x16x8xf32>
    %c0_17 = arith.constant 0 : index
    %c0_18 = arith.constant 0 : index
    %10 = vector.load %arg2[%c0_17, %c0_18] : memref<1x8xf32, #tpu.memory_space<vmem>>, vector<1x8xf32>
    %11 = vector.shape_cast %10 : vector<1x8xf32> to vector<8xf32>
    %12 = vector.shape_cast %11 : vector<8xf32> to vector<1x1x8xf32>
    %13 = vector.broadcast %12 : vector<1x1x8xf32> to vector<16x16x8xf32>
    %14 = arith.addf %9, %13 : vector<16x16x8xf32>
    %c1 = arith.constant 1 : index
    %c1_19 = arith.constant 1 : index
    %c0_20 = arith.constant 0 : index
    %15 = vector.load %arg7[%c1, %c1_19, %c0_20] : memref<18x18x8xf32, #tpu.memory_space<vmem>>, vector<16x16x8xf32>
    tpu.vector_store %arg7[%c1, %c1_19, %c0_20], %14 {strides = array<i32>} : memref<18x18x8xf32, #tpu.memory_space<vmem>>, vector<16x16x8xf32>,
    %c0_21 = arith.constant 0 : index
    %c0_22 = arith.constant 0 : index
    %c0_23 = arith.constant 0 : index
    %16 = vector.load %arg7[%c0_21, %c0_22, %c0_23] : memref<18x18x8xf32, #tpu.memory_space<vmem>>, vector<16x16x8xf32>
    %17 = vector.shape_cast %16 : vector<16x16x8xf32> to vector<256x8xf32>
    %c0_24 = arith.constant 0 : index
    %c0_25 = arith.constant 0 : index
    %18 = vector.load %arg8[%c0_24, %c0_25] : memref<256x72xf32, #tpu.memory_space<vmem>>, vector<256x8xf32>
    tpu.vector_store %arg8[%c0_24, %c0_25], %17 {strides = array<i32>} : memref<256x72xf32, #tpu.memory_space<vmem>>, vector<256x8xf32>,
    %c0_26 = arith.constant 0 : index
    %c1_27 = arith.constant 1 : index
    %c0_28 = arith.constant 0 : index
    %19 = vector.load %arg7[%c0_26, %c1_27, %c0_28] : memref<18x18x8xf32, #tpu.memory_space<vmem>>, vector<16x16x8xf32>
    %20 = vector.shape_cast %19 : vector<16x16x8xf32> to vector<256x8xf32>
    %c0_29 = arith.constant 0 : index
    %c8 = arith.constant 8 : index
    %21 = vector.load %arg8[%c0_29, %c8] : memref<256x72xf32, #tpu.memory_space<vmem>>, vector<256x8xf32>
    tpu.vector_store %arg8[%c0_29, %c8], %20 {strides = array<i32>} : memref<256x72xf32, #tpu.memory_space<vmem>>, vector<256x8xf32>,
    %c0_30 = arith.constant 0 : index
    %c2 = arith.constant 2 : index
    %c0_31 = arith.constant 0 : index
    %22 = vector.load %arg7[%c0_30, %c2, %c0_31] : memref<18x18x8xf32, #tpu.memory_space<vmem>>, vector<16x16x8xf32>
    %23 = vector.shape_cast %22 : vector<16x16x8xf32> to vector<256x8xf32>
    %c0_32 = arith.constant 0 : index
    %c16 = arith.constant 16 : index
    %24 = vector.load %arg8[%c0_32, %c16] : memref<256x72xf32, #tpu.memory_space<vmem>>, vector<256x8xf32>
    tpu.vector_store %arg8[%c0_32, %c16], %23 {strides = array<i32>} : memref<256x72xf32, #tpu.memory_space<vmem>>, vector<256x8xf32>,
    %c1_33 = arith.constant 1 : index
    %c0_34 = arith.constant 0 : index
    %c0_35 = arith.constant 0 : index
    %25 = vector.load %arg7[%c1_33, %c0_34, %c0_35] : memref<18x18x8xf32, #tpu.memory_space<vmem>>, vector<16x16x8xf32>
    %26 = vector.shape_cast %25 : vector<16x16x8xf32> to vector<256x8xf32>
    %c0_36 = arith.constant 0 : index
    %c24 = arith.constant 24 : index
    %27 = vector.load %arg8[%c0_36, %c24] : memref<256x72xf32, #tpu.memory_space<vmem>>, vector<256x8xf32>
    tpu.vector_store %arg8[%c0_36, %c24], %26 {strides = array<i32>} : memref<256x72xf32, #tpu.memory_space<vmem>>, vector<256x8xf32>,
    %c1_37 = arith.constant 1 : index
    %c1_38 = arith.constant 1 : index
    %c0_39 = arith.constant 0 : index
    %28 = vector.load %arg7[%c1_37, %c1_38, %c0_39] : memref<18x18x8xf32, #tpu.memory_space<vmem>>, vector<16x16x8xf32>
    %29 = vector.shape_cast %28 : vector<16x16x8xf32> to vector<256x8xf32>
    %c0_40 = arith.constant 0 : index
    %c32 = arith.constant 32 : index
    %30 = vector.load %arg8[%c0_40, %c32] : memref<256x72xf32, #tpu.memory_space<vmem>>, vector<256x8xf32>
    tpu.vector_store %arg8[%c0_40, %c32], %29 {strides = array<i32>} : memref<256x72xf32, #tpu.memory_space<vmem>>, vector<256x8xf32>,
    %c1_41 = arith.constant 1 : index
    %c2_42 = arith.constant 2 : index
    %c0_43 = arith.constant 0 : index
    %31 = vector.load %arg7[%c1_41, %c2_42, %c0_43] : memref<18x18x8xf32, #tpu.memory_space<vmem>>, vector<16x16x8xf32>
    %32 = vector.shape_cast %31 : vector<16x16x8xf32> to vector<256x8xf32>
    %c0_44 = arith.constant 0 : index
    %c40 = arith.constant 40 : index
    %33 = vector.load %arg8[%c0_44, %c40] : memref<256x72xf32, #tpu.memory_space<vmem>>, vector<256x8xf32>
    tpu.vector_store %arg8[%c0_44, %c40], %32 {strides = array<i32>} : memref<256x72xf32, #tpu.memory_space<vmem>>, vector<256x8xf32>,
    %c2_45 = arith.constant 2 : index
    %c0_46 = arith.constant 0 : index
    %c0_47 = arith.constant 0 : index
    %34 = vector.load %arg7[%c2_45, %c0_46, %c0_47] : memref<18x18x8xf32, #tpu.memory_space<vmem>>, vector<16x16x8xf32>
    %35 = vector.shape_cast %34 : vector<16x16x8xf32> to vector<256x8xf32>
    %c0_48 = arith.constant 0 : index
    %c48 = arith.constant 48 : index
    %36 = vector.load %arg8[%c0_48, %c48] : memref<256x72xf32, #tpu.memory_space<vmem>>, vector<256x8xf32>
    tpu.vector_store %arg8[%c0_48, %c48], %35 {strides = array<i32>} : memref<256x72xf32, #tpu.memory_space<vmem>>, vector<256x8xf32>,
    %c2_49 = arith.constant 2 : index
    %c1_50 = arith.constant 1 : index
    %c0_51 = arith.constant 0 : index
    %37 = vector.load %arg7[%c2_49, %c1_50, %c0_51] : memref<18x18x8xf32, #tpu.memory_space<vmem>>, vector<16x16x8xf32>
    %38 = vector.shape_cast %37 : vector<16x16x8xf32> to vector<256x8xf32>
    %c0_52 = arith.constant 0 : index
    %c56 = arith.constant 56 : index
    %39 = vector.load %arg8[%c0_52, %c56] : memref<256x72xf32, #tpu.memory_space<vmem>>, vector<256x8xf32>
    tpu.vector_store %arg8[%c0_52, %c56], %38 {strides = array<i32>} : memref<256x72xf32, #tpu.memory_space<vmem>>, vector<256x8xf32>,
    %c2_53 = arith.constant 2 : index
    %c2_54 = arith.constant 2 : index
    %c0_55 = arith.constant 0 : index
    %40 = vector.load %arg7[%c2_53, %c2_54, %c0_55] : memref<18x18x8xf32, #tpu.memory_space<vmem>>, vector<16x16x8xf32>
    %41 = vector.shape_cast %40 : vector<16x16x8xf32> to vector<256x8xf32>
    %c0_56 = arith.constant 0 : index
    %c64 = arith.constant 64 : index
    %42 = vector.load %arg8[%c0_56, %c64] : memref<256x72xf32, #tpu.memory_space<vmem>>, vector<256x8xf32>
    tpu.vector_store %arg8[%c0_56, %c64], %41 {strides = array<i32>} : memref<256x72xf32, #tpu.memory_space<vmem>>, vector<256x8xf32>,
    %c0_57 = arith.constant 0 : index
    %c0_58 = arith.constant 0 : index
    %43 = vector.load %arg8[%c0_57, %c0_58] : memref<256x72xf32, #tpu.memory_space<vmem>>, vector<256x72xf32>
    %44 = arith.truncf %43 : vector<256x72xf32> to vector<256x72xbf16>
    %c0_59 = arith.constant 0 : index
    %c0_60 = arith.constant 0 : index
    %45 = vector.load %arg3[%c0_59, %c0_60] : memref<72x8xbf16, #tpu.memory_space<vmem>>, vector<72x8xbf16>
    %cst_61 = arith.constant dense<0.000000e+00> : vector<256x8xf32>
    %46 = tpu.matmul %44, %45, %cst_61 {dimension_numbers = #tpu.dot_dimension_numbers<[1], [0], [0], [1], [0, 0, 1, 1], [], []>} : vector<256x72xbf16>, vector<72x8xbf16>, vector<256x8xf32> -> vector<256x8xf32>
    %cst_62 = arith.constant 0.000000e+00 : f32
    %47 = vector.broadcast %cst_62 : f32 to vector<256x8xf32>
    %48 = arith.maximumf %46, %47 : vector<256x8xf32>
    %c0_63 = arith.constant 0 : index
    %c0_64 = arith.constant 0 : index
    %c0_65 = arith.constant 0 : index
    %49 = vector.load %arg4[%c0_63, %c0_64, %c0_65] : memref<1x256x8xf32, #tpu.memory_space<vmem>>, vector<1x256x8xf32>
    %50 = vector.shape_cast %49 : vector<1x256x8xf32> to vector<256x8xf32>
    %51 = vector.shape_cast %48 : vector<256x8xf32> to vector<1x256x8xf32>
    tpu.vector_store %arg4[%c0_63, %c0_64, %c0_65], %51 {strides = array<i32>} : memref<1x256x8xf32, #tpu.memory_space<vmem>>, vector<1x256x8xf32>,
    %cst_66 = arith.constant dense<0.000000e+00> : vector<8xf32>
    %52 = vector.multi_reduction <add>, %48, %cst_66 [0] : vector<256x8xf32> to vector<8xf32>
    %53 = vector.shape_cast %52 : vector<8xf32> to vector<1x8xf32>
    %c0_67 = arith.constant 0 : index
    %c0_68 = arith.constant 0 : index
    %c0_69 = arith.constant 0 : index
    %54 = vector.load %arg5[%c0_67, %c0_68, %c0_69] : memref<1x1x8xf32, #tpu.memory_space<vmem>>, vector<1x1x8xf32>
    %55 = vector.shape_cast %54 : vector<1x1x8xf32> to vector<1x8xf32>
    %56 = vector.shape_cast %53 : vector<1x8xf32> to vector<1x1x8xf32>
    tpu.vector_store %arg5[%c0_67, %c0_68, %c0_69], %56 {strides = array<i32>} : memref<1x1x8xf32, #tpu.memory_space<vmem>>, vector<1x1x8xf32>,
    %57 = arith.mulf %48, %48 : vector<256x8xf32>
    %cst_70 = arith.constant dense<0.000000e+00> : vector<8xf32>
    %58 = vector.multi_reduction <add>, %57, %cst_70 [0] : vector<256x8xf32> to vector<8xf32>
    %59 = vector.shape_cast %58 : vector<8xf32> to vector<1x8xf32>
    %c0_71 = arith.constant 0 : index
    %c0_72 = arith.constant 0 : index
    %c0_73 = arith.constant 0 : index
    %60 = vector.load %arg6[%c0_71, %c0_72, %c0_73] : memref<1x1x8xf32, #tpu.memory_space<vmem>>, vector<1x1x8xf32>
    %61 = vector.shape_cast %60 : vector<1x1x8xf32> to vector<1x8xf32>
    %62 = vector.shape_cast %59 : vector<1x8xf32> to vector<1x1x8xf32>
    tpu.vector_store %arg6[%c0_71, %c0_72, %c0_73], %62 {strides = array<i32>} : memref<1x1x8xf32, #tpu.memory_space<vmem>>, vector<1x1x8xf32>,
    return
  }
  func.func @transform_0(%arg0: i32) -> (i32, i32, i32, i32) {
    %c0_i32 = arith.constant 0 : i32
    %c0_i32_0 = arith.constant 0 : i32
    %c0_i32_1 = arith.constant 0 : i32
    %c0_i32_2 = arith.constant 0 : i32
    return %arg0, %c0_i32, %c0_i32_0, %c0_i32_1 : i32, i32, i32, i32
  }
  func.func @transform_1(%arg0: i32) -> (i32, i32) {
    %c0_i32 = arith.constant 0 : i32
    %c0_i32_0 = arith.constant 0 : i32
    %c0_i32_1 = arith.constant 0 : i32
    return %c0_i32, %c0_i32_0 : i32, i32
  }
  func.func @transform_2(%arg0: i32) -> (i32, i32) {
    %c0_i32 = arith.constant 0 : i32
    %c0_i32_0 = arith.constant 0 : i32
    %c0_i32_1 = arith.constant 0 : i32
    return %c0_i32, %c0_i32_0 : i32, i32
  }
  func.func @transform_3(%arg0: i32) -> (i32, i32, i32) {
    %c0_i32 = arith.constant 0 : i32
    %c0_i32_0 = arith.constant 0 : i32
    %c0_i32_1 = arith.constant 0 : i32
    return %arg0, %c0_i32, %c0_i32_0 : i32, i32, i32
  }
  func.func @transform_4(%arg0: i32) -> (i32, i32, i32) {
    %c0_i32 = arith.constant 0 : i32
    %c0_i32_0 = arith.constant 0 : i32
    %c0_i32_1 = arith.constant 0 : i32
    return %arg0, %c0_i32, %c0_i32_0 : i32, i32, i32
  }
  func.func @transform_5(%arg0: i32) -> (i32, i32, i32) {
    %c0_i32 = arith.constant 0 : i32
    %c0_i32_0 = arith.constant 0 : i32
    %c0_i32_1 = arith.constant 0 : i32
    return %arg0, %c0_i32, %c0_i32_0 : i32, i32, i32
  }
}

</mosaic_0001>

<bundles_post_ra>
// kernel: conv_block_forward.3
= control target key start
LH: loop header
LB: loop body
LE: loop exit
PB: predicated region body
PF: predicated region fallthrough
CT: control target
= control target key end

     0   :  { %11 = vsyncpa [#allocation5], 0  ;;  %s4258_s0 = inlined_call_operand.vmem [shape: f32[2,16,16,8], index: 0, kind: input, shape index: {}]   ;;  %s4259_s1 = inlined_call_operand.vmem [shape: f32[1,8], index: 1, kind: input, shape index: {}]   ;;  %s4260_s2 = inlined_call_operand.vmem [shape: bf16[72,8], index: 2, kind: input, shape index: {}]   ;;  %s4261_s3 = inlined_call_operand.vmem [shape: f32[2,256,8], index: 3, kind: output, shape index: {0}]   ;;  %s4262_s4 = inlined_call_operand.hbm [shape: f32[2,1,8], index: 4, kind: output, shape index: {1}]   ;;  %s4263_s5 = inlined_call_operand.hbm [shape: f32[2,1,8], index: 5, kind: output, shape index: {2}]  }
   0x1   :  { %13 = vsyncpa [#allocation5 + $0x1], 0 }
   0x2   :  { %14 = vsyncpa [#allocation7], 0 }
   0x3   :  { %16 = vsyncpa [#allocation7 + $0x1], 0  ;;  %s2991_s18 = smov 0   ;;  %s2993_s19 = smov 0  }
   0x4   :  { %s2995_s20 = smov 0   ;;  %s2997_s21 = smov 0  }
   0x5 LB: > { %s3012_s22 = sadd.s32 4294967295, %s2948_s21   ;;  %s2684_s23 = sadd.s32 4294967294, %s2948_s21   ;;  %s2948_s21 = sphi %s2997_s21, %s4269_s21   ;;  %s2944_s20 = sphi %s2995_s20, %s4268_s20   ;;  %s2940_s19 = sphi %s2993_s19, %s4267_s19   ;;  %s2936_s18 = sphi %s2991_s18, %s4266_s18  }
   0x6   : > { %s3016_s24 = sadd.s32 1, %s2948_s21   ;;  %s123_s25 = sadd.s32 1, %s2944_s20 }
   0x7   : > { %s120_s26 = ssub.s32 %s2948_s21, %s3016_s24  ;;  %p133_p0 = scmp.ne.s32.totalorder %s2944_s20, %s2940_s19 }
   0x8   : > { %p121_p1 = scmp.eq.s32.totalorder %s120_s26, 0  ;;  %p134_p2 = scmp.eq.s32.totalorder %s3012_s22, 1 }
   0x9   : > { %p139_p3 = scmp.ne.s32.totalorder %s2940_s19, %s2936_s18  ;;  %p140_p4 = scmp.eq.s32.totalorder %s2684_s23, 1 }
   0xa   : > { %s3027_s27 = scalar_select %p121_p1, %s2944_s20, %s123_s25  }
   0xb   : > { %p3029_p5 = por %p134_p2, %p133_p0  ;;  %p3033_p6 = por %p140_p4, %p139_p3 }
   0xc   : > { %p2687_p7 = scmp.ge.s32.totalorder %s2948_s21, 1  ;;  %p198_p8 = scmp.lt.s32.totalorder %s2948_s21, 3 }
   0xe   : > { %p199_p9 = pnand %p2687_p7, %p198_p8 }
   0xf   : > { %vm245_vm0 = vcmask (!%p199_p9), 64512   ;;  %vm254_vm1 = vcmask (!%p199_p9), 57344   ;;  %p234_p10 = scmp.lt.s32.totalorder (!%p199_p9), %s3012_s22, 1  ;;  %vm248_vm2 = vcmask (!%p199_p9), 58368   ;;  %v2950_v0 = vmov (!%p199_p9), 0.0   ;;  %s2951_s12 = smov (!%p199_p9), 8  }
  0x10   : > { %202 = sbr.rel (%p199_p9) target bundleno = 951 (0x3b7), region = 32  ;;  %246 = vst.msk [vmem:[#allocation2] sm:$0xff] (!%p199_p9), %vm245_vm0, %v2950_v0  ;;  %247 = vst.msk [vmem:[#allocation2 + $0x8] sm:$0xff] (!%p199_p9), %vm245_vm0, %v2950_v0  ;;  %v3087_v1 = vld [vmem:[%s4259_s1] ss:$0 sm:$0xff] (!%p199_p9)  ;;  %s2952_s13 = smov (!%p199_p9), 16  }
  0x11   : > { %251 = vst.msk [vmem:[#allocation2 + $0x198] sm:$0xff] (!%p199_p9), %vm245_vm0, %v2950_v0  ;;  %252 = vst.msk [vmem:[#allocation2 + $0x1a0] sm:$0xff] (!%p199_p9), %vm245_vm0, %v2950_v0  ;;  %vm619_vm3 = vcmask (!%p199_p9), 130112   ;;  %s2953_s14 = smov (!%p199_p9), 24   ;;  %s2954_s15 = smov (!%p199_p9), 32   ;;  %vm812_vm4 = vcmask (!%p199_p9), 195712  }
  0x12   : > { %256 = vst.msk [vmem:[#allocation2 + $0x18] sm:$0x1] (!%p199_p9), %vm254_vm1, %v2950_v0  ;;  %257 = vst.msk [vmem:[#allocation2 + $0x30] sm:$0x1] (!%p199_p9), %vm254_vm1, %v2950_v0  ;;  %s2955_s16 = smov (!%p199_p9), 40   ;;  %s2956_s17 = smov (!%p199_p9), 48  }
  0x13   : > { %258 = vst.msk [vmem:[#allocation2 + $0x48] sm:$0x1] (!%p199_p9), %vm254_vm1, %v2950_v0  ;;  %259 = vst.msk [vmem:[#allocation2 + $0x60] sm:$0x1] (!%p199_p9), %vm254_vm1, %v2950_v0  ;;  %s2957_s7 = smov (!%p199_p9), 56   ;;  %s2958_s23 = smov (!%p199_p9), 64  }
  0x14   : > { %260 = vst.msk [vmem:[#allocation2 + $0x78] sm:$0x1] (!%p199_p9), %vm254_vm1, %v2950_v0  ;;  %261 = vst.msk [vmem:[#allocation2 + $0x90] sm:$0x1] (!%p199_p9), %vm254_vm1, %v2950_v0  ;;  %vm2137_vm5 = vcmask (!%p199_p9), 1043456   ;;  %vm1005_vm6 = vcmask (!%p199_p9), 261312  }
  0x15   : > { %262 = vst.msk [vmem:[#allocation2 + $0xa8] sm:$0x1] (!%p199_p9), %vm254_vm1, %v2950_v0  ;;  %263 = vst.msk [vmem:[#allocation2 + $0xc0] sm:$0x1] (!%p199_p9), %vm254_vm1, %v2950_v0  ;;  %vm1198_vm7 = vcmask (!%p199_p9), 326912   ;;  %vm1391_vm8 = vcmask (!%p199_p9), 392512  }
  0x16   : > { %264 = vst.msk [vmem:[#allocation2 + $0xd8] sm:$0x1] (!%p199_p9), %vm254_vm1, %v2950_v0  ;;  %265 = vst.msk [vmem:[#allocation2 + $0xf0] sm:$0x1] (!%p199_p9), %vm254_vm1, %v2950_v0  ;;  %vm1585_vm9 = vcmask (!%p199_p9), 458112   ;;  %vm1778_vm10 = vcmask (!%p199_p9), 523712  }
  0x17   : > { %266 = vst.msk [vmem:[#allocation2 + $0x108] sm:$0x1] %vm254_vm1, %v2950_v0  ;;  %267 = vst.msk [vmem:[#allocation2 + $0x120] sm:$0x1] %vm254_vm1, %v2950_v0  ;;  %s3082_s30 = scalar_select %p234_p10, %s3012_s22, 1  ;;  %v459_v11 = vld [vmem:[#allocation2 + $0x1] sm:$0xff] }
  0x18   : > { %268 = vst.msk [vmem:[#allocation2 + $0x138] sm:$0x1] %vm254_vm1, %v2950_v0  ;;  %269 = vst.msk [vmem:[#allocation2 + $0x150] sm:$0x1] %vm254_vm1, %v2950_v0  ;;  %523 = vrot.lane.b32.xlu0 %v459_v11, %s2951_s12  ;;  %vm1971_vm11 = vcmask 589312   ;;  %vm2088_vm12 = vcmask 588800  }
  0x19   : > { %270 = vst.msk [vmem:[#allocation2 + $0x168] sm:$0x1] %vm254_vm1, %v2950_v0  ;;  %271 = vst.msk [vmem:[#allocation2 + $0x180] sm:$0x1] %vm254_vm1, %v2950_v0  ;;  %s2718_s8 = sshll.u32 %s3082_s30, 8  ;;  %s4172_s30 = sand.u32 1, %s2940_s19  }
  0x1a   : > { %274 = vst.msk [vmem:[#allocation2 + $0x29] sm:$0x1] %vm254_vm1, %v2950_v0  ;;  %275 = vst.msk [vmem:[#allocation2 + $0x41] sm:$0x1] %vm254_vm1, %v2950_v0  ;;  %s3098_s11 = scalar_lea.vmem %s4258_s0, %s2718_s8  ;;  %s2544_s6 = scalar_lea.sflag [#allocation5], %s4172_s30 }
  0x1b   : > { %276 = vst.msk [vmem:[#allocation2 + $0x59] sm:$0x1] %vm254_vm1, %v2950_v0  ;;  %277 = vst.msk [vmem:[#allocation2 + $0x71] sm:$0x1] %vm254_vm1, %v2950_v0  ;;  %v291_v2 = vld [vmem:[%s3098_s11] sm:$0xff]  ;;  %v292_v3 = vld [vmem:[%s3098_s11 + $0x8] sm:$0xff] }
  0x1c   : > { %278 = vst.msk [vmem:[#allocation2 + $0x89] sm:$0x1] %vm254_vm1, %v2950_v0  ;;  %279 = vst.msk [vmem:[#allocation2 + $0xa1] sm:$0x1] %vm254_vm1, %v2950_v0  ;;  %v293_v4 = vld [vmem:[%s3098_s11 + $0x10] sm:$0xff]  ;;  %v330_v5 = vadd.f32 %v3087_v1, %v291_v2  ;;  %v331_v6 = vadd.f32 %v3087_v1, %v292_v3  ;;  %v294_v8 = vld [vmem:[%s3098_s11 + $0x18] sm:$0xff] }
  0x1d   : > { %280 = vst.msk [vmem:[#allocation2 + $0xb9] sm:$0x1] %vm254_vm1, %v2950_v0  ;;  %281 = vst.msk [vmem:[#allocation2 + $0xd1] sm:$0x1] %vm254_vm1, %v2950_v0  ;;  %v332_v7 = vadd.f32 %v3087_v1, %v293_v4  ;;  %v295_v9 = vld [vmem:[%s3098_s11 + $0x20] sm:$0xff]  ;;  %v296_v10 = vld [vmem:[%s3098_s11 + $0x28] sm:$0xff]  ;;  %v333_v13 = vadd.f32 %v3087_v1, %v294_v8 }
  0x1e   : > { %282 = vst.msk [vmem:[#allocation2 + $0xe9] sm:$0x1] %vm254_vm1, %v2950_v0  ;;  %283 = vst.msk [vmem:[#allocation2 + $0x101] sm:$0x1] %vm254_vm1, %v2950_v0  ;;  %v334_v14 = vadd.f32 %v3087_v1, %v295_v9  ;;  %v335_v15 = vadd.f32 %v3087_v1, %v296_v10  ;;  %v297_v16 = vld [vmem:[%s3098_s11 + $0x30] sm:$0xff]  ;;  %v298_v18 = vld [vmem:[%s3098_s11 + $0x38] sm:$0xff] }
  0x1f   : > { %284 = vst.msk [vmem:[#allocation2 + $0x119] sm:$0x1] %vm254_vm1, %v2950_v0  ;;  %285 = vst.msk [vmem:[#allocation2 + $0x131] sm:$0x1] %vm254_vm1, %v2950_v0  ;;  %v336_v17 = vadd.f32 %v3087_v1, %v297_v16  ;;  %v299_v19 = vld [vmem:[%s3098_s11 + $0x40] sm:$0xff]  ;;  %v300_v20 = vld [vmem:[%s3098_s11 + $0x48] sm:$0xff]  ;;  %v337_v21 = vadd.f32 %v3087_v1, %v298_v18 }
  0x20   : > { %286 = vst.msk [vmem:[#allocation2 + $0x149] sm:$0x1] %vm254_vm1, %v2950_v0  ;;  %287 = vst.msk [vmem:[#allocation2 + $0x161] sm:$0x1] %vm254_vm1, %v2950_v0  ;;  %v338_v22 = vadd.f32 %v3087_v1, %v299_v19  ;;  %v339_v23 = vadd.f32 %v3087_v1, %v300_v20  ;;  %v301_v24 = vld [vmem:[%s3098_s11 + $0x50] sm:$0xff]  ;;  %v302_v25 = vld [vmem:[%s3098_s11 + $0x58] sm:$0xff] }
  0x21   : > { %288 = vst.msk [vmem:[#allocation2 + $0x179] sm:$0x1] %vm254_vm1, %v2950_v0  ;;  %289 = vst.msk [vmem:[#allocation2 + $0x191] sm:$0x1] %vm254_vm1, %v2950_v0  ;;  %v303_v26 = vld [vmem:[%s3098_s11 + $0x60] sm:$0xff]  ;;  %v340_v27 = vadd.f32 %v3087_v1, %v301_v24  ;;  %v341_v28 = vadd.f32 %v3087_v1, %v302_v25  ;;  %v304_v30 = vld [vmem:[%s3098_s11 + $0x68] sm:$0xff] }
  0x22   : > { %249 = vst.msk [vmem:[#allocation2 + $0x10] sm:$0x3] %vm248_vm2, %v2950_v0  ;;  %253 = vst.msk [vmem:[#allocation2 + $0x1a8] sm:$0x3] %vm248_vm2, %v2950_v0  ;;  %v342_v29 = vadd.f32 %v3087_v1, %v303_v26  ;;  %v305_v31 = vld [vmem:[%s3098_s11 + $0x70] sm:$0xff]  ;;  %v306_v32 = vld [vmem:[%s3098_s11 + $0x78] sm:$0xff]  ;;  %v343_v33 = vadd.f32 %v3087_v1, %v304_v30 }
  0x23   : > { %255 = vst.msk [vmem:[#allocation2] sm:$0x1] %vm254_vm1, %v2950_v0  ;;  %272 = vst.msk [vmem:[#allocation2 + $0x198] sm:$0x1] %vm254_vm1, %v2950_v0  ;;  %v344_v34 = vadd.f32 %v3087_v1, %v305_v31  ;;  %v345_v35 = vadd.f32 %v3087_v1, %v306_v32  ;;  %v307_v36 = vld [vmem:[%s3098_s11 + $0x80] sm:$0xff]  ;;  %v308_v37 = vld [vmem:[%s3098_s11 + $0x88] sm:$0xff] }
  0x24   : > { %273 = vst.msk [vmem:[#allocation2 + $0x11] sm:$0x1] %vm254_vm1, %v2950_v0  ;;  %290 = vst.msk [vmem:[#allocation2 + $0x1a9] sm:$0x1] %vm254_vm1, %v2950_v0  ;;  %v309_v38 = vld [vmem:[%s3098_s11 + $0x90] sm:$0xff]  ;;  %v346_v39 = vadd.f32 %v3087_v1, %v307_v36  ;;  %v347_v40 = vadd.f32 %v3087_v1, %v308_v37  ;;  %v310_v42 = vld [vmem:[%s3098_s11 + $0x98] sm:$0xff] }
  0x25   : > { %363 = vst.msk [vmem:[#allocation2 + $0x19] sm:$0xff] %vm245_vm0, %v330_v5  ;;  %364 = vst.msk [vmem:[#allocation2 + $0x21] sm:$0xff] %vm245_vm0, %v331_v6  ;;  %v348_v41 = vadd.f32 %v3087_v1, %v309_v38  ;;  %v311_v43 = vld [vmem:[%s3098_s11 + $0xa0] sm:$0xff]  ;;  %v312_v44 = vld [vmem:[%s3098_s11 + $0xa8] sm:$0xff]  ;;  %v349_v45 = vadd.f32 %v3087_v1, %v310_v42 }
  0x26   : > { %365 = vst.msk [vmem:[#allocation2 + $0x31] sm:$0xff] %vm245_vm0, %v332_v7  ;;  %366 = vst.msk [vmem:[#allocation2 + $0x39] sm:$0xff] %vm245_vm0, %v333_v13  ;;  %v350_v46 = vadd.f32 %v3087_v1, %v311_v43  ;;  %v351_v47 = vadd.f32 %v3087_v1, %v312_v44  ;;  %v313_v48 = vld [vmem:[%s3098_s11 + $0xb0] sm:$0xff]  ;;  %v314_v49 = vld [vmem:[%s3098_s11 + $0xb8] sm:$0xff] }
  0x27   : > { %367 = vst.msk [vmem:[#allocation2 + $0x49] sm:$0xff] %vm245_vm0, %v334_v14  ;;  %368 = vst.msk [vmem:[#allocation2 + $0x51] sm:$0xff] %vm245_vm0, %v335_v15  ;;  %v315_v50 = vld [vmem:[%s3098_s11 + $0xc0] sm:$0xff]  ;;  %v352_v51 = vadd.f32 %v3087_v1, %v313_v48  ;;  %v353_v52 = vadd.f32 %v3087_v1, %v314_v49  ;;  %v316_v54 = vld [vmem:[%s3098_s11 + $0xc8] sm:$0xff] }
  0x28   : > { %369 = vst.msk [vmem:[#allocation2 + $0x61] sm:$0xff] %vm245_vm0, %v336_v17  ;;  %370 = vst.msk [vmem:[#allocation2 + $0x69] sm:$0xff] %vm245_vm0, %v337_v21  ;;  %v354_v53 = vadd.f32 %v3087_v1, %v315_v50  ;;  %v317_v55 = vld [vmem:[%s3098_s11 + $0xd0] sm:$0xff]  ;;  %v318_v56 = vld [vmem:[%s3098_s11 + $0xd8] sm:$0xff]  ;;  %v355_v59 = vadd.f32 %v3087_v1, %v316_v54 }
  0x29   : > { %v460_v12 = vld [vmem:[#allocation2 + $0x9] sm:$0xff]  ;;  %371 = vst.msk [vmem:[#allocation2 + $0x79] sm:$0xff] %vm245_vm0, %v338_v22  ;;  %372 = vst.msk [vmem:[#allocation2 + $0x81] sm:$0xff] %vm245_vm0, %v339_v23  ;;  %v356_v60 = vadd.f32 %v3087_v1, %v317_v55  ;;  %v357_v61 = vadd.f32 %v3087_v1, %v318_v56  ;;  %v319_v0 = vld [vmem:[%s3098_s11 + $0xe0] sm:$0xff] }
  0x2a   : > { %525 = vrot.lane.b32.xlu0 %v460_v12, %s2951_s12  ;;  %373 = vst.msk [vmem:[#allocation2 + $0x91] sm:$0xff] %vm245_vm0, %v340_v27  ;;  %374 = vst.msk [vmem:[#allocation2 + $0x99] sm:$0xff] %vm245_vm0, %v341_v28  ;;  %v320_v2 = vld [vmem:[%s3098_s11 + $0xe8] sm:$0xff]  ;;  %v358_v3 = vadd.f32 %v3087_v1, %v319_v0  ;;  %v395_v12 = vld [vmem:[#allocation2] sm:$0xff] }
  0x2b   : > { %375 = vst.msk [vmem:[#allocation2 + $0xa9] sm:$0xff] %vm245_vm0, %v342_v29  ;;  %376 = vst.msk [vmem:[#allocation2 + $0xb1] sm:$0xff] %vm245_vm0, %v343_v33  ;;  %v359_v4 = vadd.f32 %v3087_v1, %v320_v2  ;;  %v396_v14 = vld [vmem:[#allocation2 + $0x8] sm:$0xff] }
  0x2c   : > { %377 = vst.msk [vmem:[#allocation2 + $0xc1] sm:$0xff] %vm245_vm0, %v344_v34  ;;  %378 = vst.msk [vmem:[#allocation2 + $0xc9] sm:$0xff] %vm245_vm0, %v345_v35  ;;  %v3174_v57 = vld [vmem:[#allocation2 + $0x19] sm:$0xff]  ;;  %v3186_v62 = vld [vmem:[#allocation2 + $0x21] sm:$0xff] }
  0x2d   : > { %379 = vst.msk [vmem:[#allocation2 + $0xd9] sm:$0xff] %vm245_vm0, %v346_v39  ;;  %380 = vst.msk [vmem:[#allocation2 + $0xe1] sm:$0xff] %vm245_vm0, %v347_v40  ;;  %v3176_v58 = vld [vmem:[#allocation2 + $0x31] sm:$0xff]  ;;  %527 = vrot.lane.b32.xlu1 %v3174_v57, %s2951_s12  ;;  %v3208_v5 = vld [vmem:[#allocation2 + $0x39] sm:$0xff] }
  0x2e   : > { %381 = vst.msk [vmem:[#allocation2 + $0xf1] sm:$0xff] %vm245_vm0, %v348_v41  ;;  %382 = vst.msk [vmem:[#allocation2 + $0xf9] sm:$0xff] %vm245_vm0, %v349_v45  ;;  %531 = vrot.lane.b32.xlu0 %v3176_v58, %s2951_s12  ;;  %v3193_v63 = vld [vmem:[#allocation2 + $0x49] sm:$0xff]  ;;  %v3216_v1 = vld [vmem:[#allocation2 + $0x51] sm:$0xff] }
  0x2f   : > { %383 = vst.msk [vmem:[#allocation2 + $0x109] sm:$0xff] %vm245_vm0, %v350_v46  ;;  %384 = vst.msk [vmem:[#allocation2 + $0x111] sm:$0xff] %vm245_vm0, %v351_v47  ;;  %v3210_v6 = vld [vmem:[#allocation2 + $0x61] sm:$0xff]  ;;  %v3224_v8 = vld [vmem:[#allocation2 + $0x69] sm:$0xff] }
  0x30   : > { %385 = vst.msk [vmem:[#allocation2 + $0x121] sm:$0xff] %vm245_vm0, %v352_v51  ;;  %386 = vst.msk [vmem:[#allocation2 + $0x129] sm:$0xff] %vm245_vm0, %v353_v52  ;;  %v3218_v7 = vld [vmem:[#allocation2 + $0x79] sm:$0xff]  ;;  %v3232_v10 = vld [vmem:[#allocation2 + $0x81] sm:$0xff] }
  0x31   : > { %387 = vst.msk [vmem:[#allocation2 + $0x139] sm:$0xff] %vm245_vm0, %v354_v53  ;;  %388 = vst.msk [vmem:[#allocation2 + $0x141] sm:$0xff] %vm245_vm0, %v355_v59  ;;  %529 = vrot.lane.b32.xlu1 %v3186_v62, %s2951_s12  ;;  %v3226_v9 = vld [vmem:[#allocation2 + $0x91] sm:$0xff]  ;;  %v3243_v15 = vld [vmem:[#allocation2 + $0x99] sm:$0xff] }
  0x32   : > { %389 = vst.msk [vmem:[#allocation2 + $0x151] sm:$0xff] %vm245_vm0, %v356_v60  ;;  %390 = vst.msk [vmem:[#allocation2 + $0x159] sm:$0xff] %vm245_vm0, %v357_v61  ;;  %535 = vrot.lane.b32.xlu0 %v3193_v63, %s2951_s12  ;;  %v3234_v11 = vld [vmem:[#allocation2 + $0xa9] sm:$0xff]  ;;  %v3236_v13 = vld [vmem:[#allocation2 + $0x18] sm:$0xff] }
  0x33   : > { %391 = vst.msk [vmem:[#allocation2 + $0x169] sm:$0xff] %vm245_vm0, %v358_v3  ;;  %392 = vst.msk [vmem:[#allocation2 + $0x171] sm:$0xff] %vm245_vm0, %v359_v4  ;;  %v3248_v16 = vld [vmem:[#allocation2 + $0x20] sm:$0xff]  ;;  %v3252_v18 = vld [vmem:[#allocation2 + $0x30] sm:$0xff] }
  0x34   : > { %427 = vst.msk [vmem:[#allocation3] sm:$0xff] %vm245_vm0, %v395_v12  ;;  %429 = vst.msk [vmem:[#allocation3 + $0x10] sm:$0xff] %vm245_vm0, %v3236_v13  ;;  %v475_v17 = vld [vmem:[#allocation2 + $0xc1] sm:$0xff]  ;;  %v3254_v19 = vld [vmem:[#allocation2 + $0x38] sm:$0xff] }
  0x35   : > { %533 = vrot.lane.b32.xlu1 %v3208_v5, %s2951_s12  ;;  %428 = vst.msk [vmem:[#allocation3 + $0x8] sm:$0xff] %vm245_vm0, %v396_v14  ;;  %430 = vst.msk [vmem:[#allocation3 + $0x18] sm:$0xff] %vm245_vm0, %v3248_v16  ;;  %v3260_v20 = vld [vmem:[#allocation2 + $0x48] sm:$0xff]  ;;  %v3262_v21 = vld [vmem:[#allocation2 + $0x50] sm:$0xff] }
  0x36   : > { %539 = vrot.lane.b32.xlu0 %v3210_v6, %s2951_s12  ;;  %431 = vst.msk [vmem:[#allocation3 + $0x20] sm:$0xff] %vm245_vm0, %v3252_v18  ;;  %432 = vst.msk [vmem:[#allocation3 + $0x28] sm:$0xff] %vm245_vm0, %v3254_v19  ;;  %v3264_v22 = vld [vmem:[#allocation2 + $0xb1] sm:$0xff]  ;;  %v477_v23 = vld [vmem:[#allocation2 + $0xd9] sm:$0xff] }
  0x37   : > { %433 = vst.msk [vmem:[#allocation3 + $0x30] sm:$0xff] %vm245_vm0, %v3260_v20  ;;  %434 = vst.msk [vmem:[#allocation3 + $0x38] sm:$0xff] %vm245_vm0, %v3262_v21  ;;  %v3270_v24 = vld [vmem:[#allocation2 + $0x60] sm:$0xff]  ;;  %v3272_v25 = vld [vmem:[#allocation2 + $0x68] sm:$0xff] }
  0x38   : > { %v3274_v26 = vld [vmem:[#allocation2 + $0x78] sm:$0xff]  ;;  %435 = vst.msk [vmem:[#allocation3 + $0x40] sm:$0xff] %vm245_vm0, %v3270_v24  ;;  %436 = vst.msk [vmem:[#allocation3 + $0x48] sm:$0xff] %vm245_vm0, %v3272_v25  ;;  %v3285_v27 = vld [vmem:[#allocation2 + $0x80] sm:$0xff] }
  0x39   : > { %537 = vrot.lane.b32.xlu1 %v3216_v1, %s2951_s12  ;;  %437 = vst.msk [vmem:[#allocation3 + $0x50] sm:$0xff] %vm245_vm0, %v3274_v26  ;;  %v3287_v28 = vld [vmem:[#allocation2 + $0x90] sm:$0xff]  ;;  %v3289_v29 = vld [vmem:[#allocation2 + $0x98] sm:$0xff]  ;;  %438 = vst.msk [vmem:[#allocation3 + $0x58] sm:$0xff] %vm245_vm0, %v3285_v27 }
  0x3a   : > { %543 = vrot.lane.b32.xlu0 %v3218_v7, %s2951_s12  ;;  %439 = vst.msk [vmem:[#allocation3 + $0x60] sm:$0xff] %vm245_vm0, %v3287_v28  ;;  %440 = vst.msk [vmem:[#allocation3 + $0x68] sm:$0xff] %vm245_vm0, %v3289_v29  ;;  %v3297_v30 = vld [vmem:[#allocation2 + $0xa8] sm:$0xff]  ;;  %v3299_v31 = vld [vmem:[#allocation2 + $0xb0] sm:$0xff] }
  0x3b   : > { %v3301_v32 = vld [vmem:[#allocation2 + $0xc0] sm:$0xff]  ;;  %441 = vst.msk [vmem:[#allocation3 + $0x70] sm:$0xff] %vm245_vm0, %v3297_v30  ;;  %442 = vst.msk [vmem:[#allocation3 + $0x78] sm:$0xff] %vm245_vm0, %v3299_v31  ;;  %v3309_v33 = vld [vmem:[#allocation2 + $0xc8] sm:$0xff] }
  0x3c   : > { %443 = vst.msk [vmem:[#allocation3 + $0x80] sm:$0xff] %vm245_vm0, %v3301_v32  ;;  %v3311_v34 = vld [vmem:[#allocation2 + $0xd8] sm:$0xff]  ;;  %v3313_v35 = vld [vmem:[#allocation2 + $0xe0] sm:$0xff]  ;;  %444 = vst.msk [vmem:[#allocation3 + $0x88] sm:$0xff] %vm245_vm0, %v3309_v33 }
  0x3d   : > { %541 = vrot.lane.b32.xlu1 %v3224_v8, %s2951_s12  ;;  %445 = vst.msk [vmem:[#allocation3 + $0x90] sm:$0xff] %vm245_vm0, %v3311_v34  ;;  %446 = vst.msk [vmem:[#allocation3 + $0x98] sm:$0xff] %vm245_vm0, %v3313_v35  ;;  %v3321_v36 = vld [vmem:[#allocation2 + $0xf0] sm:$0xff]  ;;  %v3323_v37 = vld [vmem:[#allocation2 + $0xf8] sm:$0xff] }
  0x3e   : > { %547 = vrot.lane.b32.xlu0 %v3226_v9, %s2951_s12  ;;  %447 = vst.msk [vmem:[#allocation3 + $0xa0] sm:$0xff] %vm245_vm0, %v3321_v36  ;;  %448 = vst.msk [vmem:[#allocation3 + $0xa8] sm:$0xff] %vm245_vm0, %v3323_v37  ;;  %v3332_v38 = vld [vmem:[#allocation2 + $0x108] sm:$0xff]  ;;  %v3334_v39 = vld [vmem:[#allocation2 + $0x110] sm:$0xff] }
  0x3f   : > { %v476_v40 = vld [vmem:[#allocation2 + $0xc9] sm:$0xff]  ;;  %v479_v41 = vld [vmem:[#allocation2 + $0xf1] sm:$0xff]  ;;  %449 = vst.msk [vmem:[#allocation3 + $0xb0] sm:$0xff] %vm245_vm0, %v3332_v38  ;;  %450 = vst.msk [vmem:[#allocation3 + $0xb8] sm:$0xff] %vm245_vm0, %v3334_v39 }
  0x40   : > { %v3342_v42 = vld [vmem:[#allocation2 + $0x120] sm:$0xff]  ;;  %v3344_v43 = vld [vmem:[#allocation2 + $0x128] sm:$0xff]  ;;  %v421_v46 = vld [vmem:[#allocation2 + $0x138] sm:$0xff] }
  0x41   : > { %545 = vrot.lane.b32.xlu1 %v3232_v10, %s2951_s12  ;;  %v478_v44 = vld [vmem:[#allocation2 + $0xe1] sm:$0xff]  ;;  %v481_v45 = vld [vmem:[#allocation2 + $0x109] sm:$0xff]  ;;  %451 = vst.msk [vmem:[#allocation3 + $0xc0] sm:$0xff] %vm245_vm0, %v3342_v42  ;;  %452 = vst.msk [vmem:[#allocation3 + $0xc8] sm:$0xff] %vm245_vm0, %v3344_v43 }
  0x42   : > { %551 = vrot.lane.b32.xlu0 %v3234_v11, %s2951_s12  ;;  %v422_v47 = vld [vmem:[#allocation2 + $0x140] sm:$0xff]  ;;  %453 = vst.msk [vmem:[#allocation3 + $0xd0] sm:$0xff] %vm245_vm0, %v421_v46  ;;  %v423_v50 = vld [vmem:[#allocation2 + $0x150] sm:$0xff]  ;;  %v424_v51 = vld [vmem:[#allocation2 + $0x158] sm:$0xff] }
  0x43   : > { %v480_v48 = vld [vmem:[#allocation2 + $0xf9] sm:$0xff]  ;;  %v483_v49 = vld [vmem:[#allocation2 + $0x121] sm:$0xff]  ;;  %454 = vst.msk [vmem:[#allocation3 + $0xd8] sm:$0xff] %vm245_vm0, %v422_v47  ;;  %v482_v52 = vld [vmem:[#allocation2 + $0x111] sm:$0xff] }
  0x44   : > { %v485_v53 = vld [vmem:[#allocation2 + $0x139] sm:$0xff]  ;;  %455 = vst.msk [vmem:[#allocation3 + $0xe0] sm:$0xff] %vm245_vm0, %v423_v50  ;;  %456 = vst.msk [vmem:[#allocation3 + $0xe8] sm:$0xff] %vm245_vm0, %v424_v51  ;;  %v425_v54 = vld [vmem:[#allocation2 + $0x168] sm:$0xff] }
  0x45   : > { %549 = vrot.lane.b32.xlu1 %v3243_v15, %s2951_s12  ;;  %v426_v55 = vld [vmem:[#allocation2 + $0x170] sm:$0xff]  ;;  %457 = vst.msk [vmem:[#allocation3 + $0xf0] sm:$0xff] %vm245_vm0, %v425_v54  ;;  %v486_v60 = vld [vmem:[#allocation2 + $0x141] sm:$0xff]  ;;  %v488_v0 = vld [vmem:[#allocation2 + $0x159] sm:$0xff] }
  0x46   : > { %555 = vrot.lane.b32.xlu0 %v475_v17, %s2951_s12  ;;  %v484_v56 = vld [vmem:[#allocation2 + $0x129] sm:$0xff]  ;;  %v487_v59 = vld [vmem:[#allocation2 + $0x151] sm:$0xff]  ;;  %458 = vst.msk [vmem:[#allocation3 + $0xf8] sm:$0xff] %vm245_vm0, %v426_v55  ;;  %v3368_v4 = vld [vmem:[#allocation2 + $0x1a] sm:$0xff] }
  0x47   : > { %v489_v61 = vld [vmem:[#allocation2 + $0x169] sm:$0xff]  ;;  %v490_v3 = vld [vmem:[#allocation2 + $0x171] sm:$0xff]  ;;  %v3418_v50 = vld [vmem:[#allocation2 + $0x9a] sm:$0xff] }
  0x48   : > { %v652_v2 = vld [vmem:[#allocation2 + $0x2] sm:$0xff]  ;;  %v653_v12 = vld [vmem:[#allocation2 + $0xa] sm:$0xff]  ;;  %v3373_v14 = vld [vmem:[#allocation2 + $0x32] sm:$0xff] }
  0x49   : > { %553 = vrot.lane.b32.xlu1 %v3264_v22, %s2951_s12  ;;  %v3378_v17 = vld [vmem:[#allocation2 + $0x22] sm:$0xff]  ;;  %v3402_v46 = vld [vmem:[#allocation2 + $0x6a] sm:$0xff]  ;;  %v3404_v47 = vld [vmem:[#allocation2 + $0x92] sm:$0xff] }
  0x4a   : > { %559 = vrot.lane.b32.xlu0 %v477_v23, %s2951_s12  ;;  %v3380_v23 = vld [vmem:[#allocation2 + $0x4a] sm:$0xff]  ;;  %v3420_v51 = vld [vmem:[#allocation2 + $0xc2] sm:$0xff]  ;;  %v672_v55 = vld [vmem:[#allocation2 + $0xf2] sm:$0xff] }
  0x4b   : > { %v3431_v54 = vld [vmem:[#allocation2 + $0xca] sm:$0xff] }
  0x4d   : > { %557 = vrot.lane.b32.xlu1 %v476_v40, %s2951_s12  ;;  %v3386_v40 = vld [vmem:[#allocation2 + $0x3a] sm:$0xff] }
  0x4e   : > { %563 = vrot.lane.b32.xlu0 %v479_v41, %s2951_s12  ;;  %v3388_v41 = vld [vmem:[#allocation2 + $0x62] sm:$0xff] }
  0x51   : > { %561 = vrot.lane.b32.xlu1 %v478_v44, %s2951_s12  ;;  %v3394_v44 = vld [vmem:[#allocation2 + $0x52] sm:$0xff] }
  0x52   : > { %567 = vrot.lane.b32.xlu0 %v481_v45, %s2951_s12  ;;  %v3396_v45 = vld [vmem:[#allocation2 + $0x7a] sm:$0xff] }
  0x55   : > { %565 = vrot.lane.b32.xlu1 %v480_v48, %s2951_s12  ;;  %v3410_v48 = vld [vmem:[#allocation2 + $0x82] sm:$0xff] }
  0x56   : > { %571 = vrot.lane.b32.xlu0 %v483_v49, %s2951_s12  ;;  %v3412_v49 = vld [vmem:[#allocation2 + $0xaa] sm:$0xff] }
  0x59   : > { %569 = vrot.lane.b32.xlu1 %v482_v52, %s2951_s12  ;;  %v3426_v52 = vld [vmem:[#allocation2 + $0xb2] sm:$0xff] }
  0x5a   : > { %575 = vrot.lane.b32.xlu0 %v485_v53, %s2951_s12  ;;  %v670_v53 = vld [vmem:[#allocation2 + $0xda] sm:$0xff] }
  0x5d   : > { %573 = vrot.lane.b32.xlu1 %v484_v56, %s2951_s12  ;;  %v671_v56 = vld [vmem:[#allocation2 + $0xe2] sm:$0xff] }
  0x5e   : > { %579 = vrot.lane.b32.xlu0 %v487_v59, %s2951_s12  ;;  %v674_v59 = vld [vmem:[#allocation2 + $0x10a] sm:$0xff] }
  0x61   : > { %577 = vrot.lane.b32.xlu1 %v486_v60, %s2951_s12  ;;  %v673_v60 = vld [vmem:[#allocation2 + $0xfa] sm:$0xff] }
  0x62   : > { %583 = vrot.lane.b32.xlu0 %v489_v61, %s2951_s12  ;;  %v676_v61 = vld [vmem:[#allocation2 + $0x122] sm:$0xff] }
  0x65   : > { %581 = vrot.lane.b32.xlu1 %v488_v0, %s2951_s12  ;;  %v675_v0 = vld [vmem:[#allocation2 + $0x112] sm:$0xff] }
  0x66   : > { %716 = vrot.lane.b32.xlu0 %v652_v2, %s2952_s13  ;;  %v678_v2 = vld [vmem:[#allocation2 + $0x13a] sm:$0xff] }
  0x69   : > { %585 = vrot.lane.b32.xlu1 %v490_v3, %s2951_s12 }
  0x6a   : > { %720 = vrot.lane.b32.xlu0 %v3368_v4, %s2952_s13 }
  0x6d   : > { %718 = vrot.lane.b32.xlu1 %v653_v12, %s2952_s13  ;;  %v677_v12 = vld [vmem:[#allocation2 + $0x12a] sm:$0xff] }
  0x6e   : > { %724 = vrot.lane.b32.xlu0 %v3373_v14, %s2952_s13 }
  0x71   : > { %722 = vrot.lane.b32.xlu1 %v3378_v17, %s2952_s13 }
  0x72   : > { %728 = vrot.lane.b32.xlu0 %v3380_v23, %s2952_s13 }
  0x75   : > { %726 = vrot.lane.b32.xlu1 %v3386_v40, %s2952_s13 }
  0x76   : > { %732 = vrot.lane.b32.xlu0 %v3388_v41, %s2952_s13 }
  0x79   : > { %730 = vrot.lane.b32.xlu1 %v3394_v44, %s2952_s13 }
  0x7a   : > { %736 = vrot.lane.b32.xlu0 %v3396_v45, %s2952_s13 }
  0x7d   : > { %734 = vrot.lane.b32.xlu1 %v3402_v46, %s2952_s13 }
  0x7e   : > { %740 = vrot.lane.b32.xlu0 %v3404_v47, %s2952_s13 }
  0x81   : > { %738 = vrot.lane.b32.xlu1 %v3410_v48, %s2952_s13 }
  0x82   : > { %744 = vrot.lane.b32.xlu0 %v3412_v49, %s2952_s13 }
  0x85   : > { %742 = vrot.lane.b32.xlu1 %v3418_v50, %s2952_s13 }
  0x86   : > { %748 = vrot.lane.b32.xlu0 %v3420_v51, %s2952_s13 }
  0x89   : > { %746 = vrot.lane.b32.xlu1 %v3426_v52, %s2952_s13 }
  0x8a   : > { %752 = vrot.lane.b32.xlu0 %v670_v53, %s2952_s13  ;;  %v524_v3 = vpop.permute.xlu0 %523  ;;  %v680_v53 = vld [vmem:[#allocation2 + $0x152] sm:$0xff] }
  0x8b   : > { %620 = vst.msk [vmem:[#allocation3] sm:$0xff] %vm619_vm3, %v524_v3 }
  0x8d   : > { %750 = vrot.lane.b32.xlu1 %v3431_v54, %s2952_s13 }
  0x8e   : > { %756 = vrot.lane.b32.xlu0 %v672_v55, %s2952_s13 }
  0x91   : > { %754 = vrot.lane.b32.xlu1 %v671_v56, %s2952_s13  ;;  %v679_v56 = vld [vmem:[#allocation2 + $0x142] sm:$0xff] }
  0x92   : > { %760 = vrot.lane.b32.xlu0 %v674_v59, %s2952_s13  ;;  %v682_v59 = vld [vmem:[#allocation2 + $0x16a] sm:$0xff] }
  0x95   : > { %758 = vrot.lane.b32.xlu1 %v673_v60, %s2952_s13 }
  0x96   : > { %764 = vrot.lane.b32.xlu0 %v676_v61, %s2952_s13 }
  0x99   : > { %762 = vrot.lane.b32.xlu1 %v675_v0, %s2952_s13  ;;  %v681_v0 = vld [vmem:[#allocation2 + $0x15a] sm:$0xff] }
  0x9a   : > { %768 = vrot.lane.b32.xlu0 %v678_v2, %s2952_s13 }
  0x9c   : > { %v526_v55 = vpop.permute.xlu0 %525 }
  0x9d   : > { %621 = vst.msk [vmem:[#allocation3 + $0x8] sm:$0xff] %vm619_vm3, %v526_v55  ;;  %766 = vrot.lane.b32.xlu1 %v677_v12, %s2952_s13  ;;  %v683_v12 = vld [vmem:[#allocation2 + $0x172] sm:$0xff] }
  0x9e   : > { %772 = vrot.lane.b32.xlu0 %v680_v53, %s2952_s13 }
  0x9f   : > { %v528_v60 = vpop.permute.xlu1 %527 }
  0xa0   : > { %v532_v61 = vpop.permute.xlu0 %531  ;;  %622 = vst.msk [vmem:[#allocation3 + $0x10] sm:$0xff] %vm619_vm3, %v528_v60 }
  0xa1   : > { %624 = vst.msk [vmem:[#allocation3 + $0x20] sm:$0xff] %vm619_vm3, %v532_v61  ;;  %770 = vrot.lane.b32.xlu1 %v679_v56, %s2952_s13 }
  0xa2   : > { %776 = vrot.lane.b32.xlu0 %v682_v59, %s2952_s13 }
  0xa3   : > { %v530_v2 = vpop.permute.xlu1 %529 }
  0xa4   : > { %v536_v3 = vpop.permute.xlu0 %535  ;;  %623 = vst.msk [vmem:[#allocation3 + $0x18] sm:$0xff] %vm619_vm3, %v530_v2 }
  0xa5   : > { %626 = vst.msk [vmem:[#allocation3 + $0x30] sm:$0xff] %vm619_vm3, %v536_v3  ;;  %774 = vrot.lane.b32.xlu1 %v681_v0, %s2952_s13 }
  0xa6   : > { %909 = vrot.lane.b32.xlu0 %v3236_v13, %s2953_s14 }
  0xa7   : > { %v534_v53 = vpop.permute.xlu1 %533 }
  0xa8   : > { %v540_v55 = vpop.permute.xlu0 %539  ;;  %625 = vst.msk [vmem:[#allocation3 + $0x28] sm:$0xff] %vm619_vm3, %v534_v53 }
  0xa9   : > { %628 = vst.msk [vmem:[#allocation3 + $0x40] sm:$0xff] %vm619_vm3, %v540_v55  ;;  %778 = vrot.lane.b32.xlu1 %v683_v12, %s2952_s13 }
  0xaa   : > { %913 = vrot.lane.b32.xlu0 %v3252_v18, %s2953_s14 }
  0xab   : > { %v538_v56 = vpop.permute.xlu1 %537 }
  0xac   : > { %v544_v59 = vpop.permute.xlu0 %543  ;;  %627 = vst.msk [vmem:[#allocation3 + $0x38] sm:$0xff] %vm619_vm3, %v538_v56 }
  0xad   : > { %630 = vst.msk [vmem:[#allocation3 + $0x50] sm:$0xff] %vm619_vm3, %v544_v59  ;;  %911 = vrot.lane.b32.xlu1 %v3248_v16, %s2953_s14  ;;  %v2848_v59 = vld [vmem:[%s4260_s2] sm:$0xff]  }
  0xae   : > { %917 = vrot.lane.b32.xlu0 %v3260_v20, %s2953_s14  ;;  %2741 = vmatprep.subr.bf16.mxu0 %v2848_v59 }
  0xaf   : > { %v542_v13 = vpop.permute.xlu1 %541  ;;  %2783 = vmatprep.subr.bf16.mxu1 %v2848_v59  ;;  %2742 = vmatpush3.bf16.msra.mxu0 %v2848_v59 }
  0xb0   : > { %v548_v60 = vpop.permute.xlu0 %547  ;;  %629 = vst.msk [vmem:[#allocation3 + $0x48] sm:$0xff] %vm619_vm3, %v542_v13  ;;  %2788 = vmatpush3.bf16.msra.mxu1 %v2848_v59  ;;  %v2849_v13 = vld [vmem:[%s4260_s2 + $0x8] sm:$0xff]  }
  0xb1   : > { %632 = vst.msk [vmem:[#allocation3 + $0x60] sm:$0xff] %vm619_vm3, %v548_v60  ;;  %915 = vrot.lane.b32.xlu1 %v3254_v19, %s2953_s14  ;;  %2743 = vmatprep.subr.bf16.mxu0 %v2849_v13 }
  0xb2   : > { %921 = vrot.lane.b32.xlu0 %v3270_v24, %s2953_s14  ;;  %2784 = vmatprep.subr.bf16.mxu1 %v2849_v13 }
  0xb3   : > { %v546_v61 = vpop.permute.xlu1 %545  ;;  %2744 = vmatpush3.bf16.msra.mxu0 %v2849_v13 }
  0xb4   : > { %v552_v0 = vpop.permute.xlu0 %551  ;;  %631 = vst.msk [vmem:[#allocation3 + $0x58] sm:$0xff] %vm619_vm3, %v546_v61  ;;  %2789 = vmatpush3.bf16.msra.mxu1 %v2849_v13  ;;  %v2850_v61 = vld [vmem:[%s4260_s2 + $0x10] sm:$0xff]  }
  0xb5   : > { %634 = vst.msk [vmem:[#allocation3 + $0x70] sm:$0xff] %vm619_vm3, %v552_v0  ;;  %919 = vrot.lane.b32.xlu1 %v3262_v21, %s2953_s14  ;;  %2745 = vmatprep.subr.bf16.mxu0 %v2850_v61  ;;  %v2851_v0 = vld [vmem:[%s4260_s2 + $0x18] sm:$0xff]  }
  0xb6   : > { %1102 = vrot.lane.b32.xlu0 %v3174_v57, %s2954_s15  ;;  %2785 = vmatprep.subr.bf16.mxu1 %v2850_v61 }
  0xb7   : > { %v550_v16 = vpop.permute.xlu1 %549  ;;  %2746 = vmatpush3.bf16.msra.mxu0 %v2850_v61 }
  0xb8   : > { %v556_v2 = vpop.permute.xlu0 %555  ;;  %633 = vst.msk [vmem:[#allocation3 + $0x68] sm:$0xff] %vm619_vm3, %v550_v16  ;;  %2790 = vmatpush3.bf16.msra.mxu1 %v2850_v61  ;;  %2747 = vmatprep.subr.bf16.mxu0 %v2851_v0 }
  0xb9   : > { %636 = vst.msk [vmem:[#allocation3 + $0x80] sm:$0xff] %vm619_vm3, %v556_v2  ;;  %923 = vrot.lane.b32.xlu1 %v3272_v25, %s2953_s14  ;;  %2786 = vmatprep.subr.bf16.mxu1 %v2851_v0  ;;  %v2852_v2 = vld [vmem:[%s4260_s2 + $0x20] ss:$0 sps:$4 sm:$0xff]  }
  0xba   : > { %1106 = vrot.lane.b32.xlu0 %v3176_v58, %s2954_s15 }
  0xbb   : > { %v554_v3 = vpop.permute.xlu1 %553  ;;  %2748 = vmatpush3.bf16.msra.mxu0 %v2851_v0 }
  0xbc   : > { %v560_v12 = vpop.permute.xlu0 %559  ;;  %635 = vst.msk [vmem:[#allocation3 + $0x78] sm:$0xff] %vm619_vm3, %v554_v3  ;;  %2791 = vmatpush3.bf16.msra.mxu1 %v2851_v0  ;;  %2793 = vmatprep.subr.msk.bf16.mxu0 %vm2137_vm5, %v2852_v2 }
  0xbd   : > { %638 = vst.msk [vmem:[#allocation3 + $0x90] sm:$0xff] %vm619_vm3, %v560_v12  ;;  %1104 = vrot.lane.b32.xlu1 %v3186_v62, %s2954_s15  ;;  %2794 = vmatprep.subr.msk.bf16.mxu1 %vm2137_vm5, %v2852_v2 }
  0xbe   : > { %1295 = vrot.lane.b32.xlu0 %v3368_v4, %s2955_s16 }
  0xbf   : > { %v558_v57 = vpop.permute.xlu1 %557 }
  0xc0   : > { %v564_v53 = vpop.permute.xlu0 %563  ;;  %637 = vst.msk [vmem:[#allocation3 + $0x88] sm:$0xff] %vm619_vm3, %v558_v57 }
  0xc1   : > { %640 = vst.msk [vmem:[#allocation3 + $0xa0] sm:$0xff] %vm619_vm3, %v564_v53  ;;  %1108 = vrot.lane.b32.xlu1 %v3208_v5, %s2954_s15 }
  0xc2   : > { %1299 = vrot.lane.b32.xlu0 %v3373_v14, %s2955_s16 }
  0xc3   : > { %v562_v55 = vpop.permute.xlu1 %561 }
  0xc4   : > { %v568_v56 = vpop.permute.xlu0 %567  ;;  %639 = vst.msk [vmem:[#allocation3 + $0x98] sm:$0xff] %vm619_vm3, %v562_v55 }
  0xc5   : > { %642 = vst.msk [vmem:[#allocation3 + $0xb0] sm:$0xff] %vm619_vm3, %v568_v56  ;;  %1297 = vrot.lane.b32.xlu1 %v3378_v17, %s2955_s16 }
  0xc6   : > { %1489 = vrot.lane.b32.xlu0 %v3252_v18, %s2956_s17 }
  0xc7   : > { %v566_v62 = vpop.permute.xlu1 %565 }
  0xc8   : > { %v572_v4 = vpop.permute.xlu0 %571  ;;  %641 = vst.msk [vmem:[#allocation3 + $0xa8] sm:$0xff] %vm619_vm3, %v566_v62 }
  0xc9   : > { %644 = vst.msk [vmem:[#allocation3 + $0xc0] sm:$0xff] %vm619_vm3, %v572_v4  ;;  %1301 = vrot.lane.b32.xlu1 %v3386_v40, %s2955_s16 }
  0xca   : > { %1493 = vrot.lane.b32.xlu0 %v3260_v20, %s2956_s17 }
  0xcb   : > { %v570_v17 = vpop.permute.xlu1 %569 }
  0xcc   : > { %v576_v18 = vpop.permute.xlu0 %575  ;;  %643 = vst.msk [vmem:[#allocation3 + $0xb8] sm:$0xff] %vm619_vm3, %v570_v17 }
  0xcd   : > { %646 = vst.msk [vmem:[#allocation3 + $0xd0] sm:$0xff] %vm619_vm3, %v576_v18  ;;  %1491 = vrot.lane.b32.xlu1 %v3254_v19, %s2956_s17 }
  0xce   : > { %1682 = vrot.lane.b32.xlu0 %v3176_v58, %s2957_s7 }
  0xcf   : > { %v574_v20 = vpop.permute.xlu1 %573 }
  0xd0   : > { %v580_v60 = vpop.permute.xlu0 %579  ;;  %645 = vst.msk [vmem:[#allocation3 + $0xc8] sm:$0xff] %vm619_vm3, %v574_v20 }
  0xd1   : > { %648 = vst.msk [vmem:[#allocation3 + $0xe0] sm:$0xff] %vm619_vm3, %v580_v60  ;;  %1495 = vrot.lane.b32.xlu1 %v3262_v21, %s2956_s17 }
  0xd2   : > { %1686 = vrot.lane.b32.xlu0 %v3193_v63, %s2957_s7 }
  0xd3   : > { %v578_v58 = vpop.permute.xlu1 %577 }
  0xd4   : > { %v584_v19 = vpop.permute.xlu0 %583  ;;  %647 = vst.msk [vmem:[#allocation3 + $0xd8] sm:$0xff] %vm619_vm3, %v578_v58 }
  0xd5   : > { %650 = vst.msk [vmem:[#allocation3 + $0xf0] sm:$0xff] %vm619_vm3, %v584_v19  ;;  %1684 = vrot.lane.b32.xlu1 %v3208_v5, %s2957_s7  ;;  %v2139_v5 = vsel %vm2137_vm5, %v2852_v2, 0 }
  0xd6   : > { %1875 = vrot.lane.b32.xlu0 %v3373_v14, %s2958_s23  ;;  %2750 = vmatpush3.bf16.msra.mxu0 %v2139_v5 }
  0xd7   : > { %v582_v21 = vpop.permute.xlu1 %581  ;;  %2792 = vmatpush3.bf16.msra.mxu1 %v2139_v5 }
  0xd8   : > { %v717_v16 = vpop.permute.xlu0 %716  ;;  %649 = vst.msk [vmem:[#allocation3 + $0xe8] sm:$0xff] %vm619_vm3, %v582_v21 }
  0xd9   : > { %813 = vst.msk [vmem:[#allocation3] sm:$0xff] %vm812_vm4, %v717_v16  ;;  %1688 = vrot.lane.b32.xlu1 %v3216_v1, %s2957_s7 }
  0xda   : > { %1879 = vrot.lane.b32.xlu0 %v3380_v23, %s2958_s23 }
  0xdb   : > { %v586_v14 = vpop.permute.xlu1 %585 }
  0xdc   : > { %v721_v3 = vpop.permute.xlu0 %720  ;;  %651 = vst.msk [vmem:[#allocation3 + $0xf8] sm:$0xff] %vm619_vm3, %v586_v14 }
  0xdd   : > { %815 = vst.msk [vmem:[#allocation3 + $0x10] sm:$0xff] %vm812_vm4, %v721_v3  ;;  %1877 = vrot.lane.b32.xlu1 %v3386_v40, %s2958_s23 }
  0xde   : > { %1110 = vrot.lane.b32.xlu0 %v3193_v63, %s2954_s15 }
  0xdf   : > { %v719_v12 = vpop.permute.xlu1 %718 }
  0xe0   : > { %v725_v57 = vpop.permute.xlu0 %724  ;;  %814 = vst.msk [vmem:[#allocation3 + $0x8] sm:$0xff] %vm812_vm4, %v719_v12 }
  0xe1   : > { %817 = vst.msk [vmem:[#allocation3 + $0x20] sm:$0xff] %vm812_vm4, %v725_v57  ;;  %1881 = vrot.lane.b32.xlu1 %v3394_v44, %s2958_s23 }
  0xe2   : > { %1114 = vrot.lane.b32.xlu0 %v3210_v6, %s2954_s15 }
  0xe3   : > { %v723_v53 = vpop.permute.xlu1 %722 }
  0xe4   : > { %v729_v55 = vpop.permute.xlu0 %728  ;;  %816 = vst.msk [vmem:[#allocation3 + $0x18] sm:$0xff] %vm812_vm4, %v723_v53 }
  0xe5   : > { %819 = vst.msk [vmem:[#allocation3 + $0x30] sm:$0xff] %vm812_vm4, %v729_v55  ;;  %1112 = vrot.lane.b32.xlu1 %v3216_v1, %s2954_s15  ;;  %v1051_v55 = vld [vmem:[#allocation2 + $0xb1] sm:$0xff] }
  0xe6   : > { %1303 = vrot.lane.b32.xlu0 %v3380_v23, %s2955_s16 }
  0xe7   : > { %v727_v63 = vpop.permute.xlu1 %726 }
  0xe8   : > { %v733_v40 = vpop.permute.xlu0 %732  ;;  %818 = vst.msk [vmem:[#allocation3 + $0x28] sm:$0xff] %vm812_vm4, %v727_v63 }
  0xe9   : > { %821 = vst.msk [vmem:[#allocation3 + $0x40] sm:$0xff] %vm812_vm4, %v733_v40  ;;  %1116 = vrot.lane.b32.xlu1 %v3224_v8, %s2954_s15 }
  0xea   : > { %1307 = vrot.lane.b32.xlu0 %v3388_v41, %s2955_s16 }
  0xeb   : > { %v731_v56 = vpop.permute.xlu1 %730 }
  0xec   : > { %v737_v62 = vpop.permute.xlu0 %736  ;;  %820 = vst.msk [vmem:[#allocation3 + $0x38] sm:$0xff] %vm812_vm4, %v731_v56 }
  0xed   : > { %823 = vst.msk [vmem:[#allocation3 + $0x50] sm:$0xff] %vm812_vm4, %v737_v62  ;;  %1305 = vrot.lane.b32.xlu1 %v3394_v44, %s2955_s16 }
  0xee   : > { %1497 = vrot.lane.b32.xlu0 %v3270_v24, %s2956_s17 }
  0xef   : > { %v735_v1 = vpop.permute.xlu1 %734 }
  0xf0   : > { %v741_v23 = vpop.permute.xlu0 %740  ;;  %822 = vst.msk [vmem:[#allocation3 + $0x48] sm:$0xff] %vm812_vm4, %v735_v1 }
  0xf1   : > { %825 = vst.msk [vmem:[#allocation3 + $0x60] sm:$0xff] %vm812_vm4, %v741_v23  ;;  %1309 = vrot.lane.b32.xlu1 %v3402_v46, %s2955_s16 }
  0xf2   : > { %1501 = vrot.lane.b32.xlu0 %v3274_v26, %s2956_s17 }
  0xf3   : > { %v739_v4 = vpop.permute.xlu1 %738 }
  0xf4   : > { %v745_v59 = vpop.permute.xlu0 %744  ;;  %824 = vst.msk [vmem:[#allocation3 + $0x58] sm:$0xff] %vm812_vm4, %v739_v4 }
  0xf5   : > { %827 = vst.msk [vmem:[#allocation3 + $0x70] sm:$0xff] %vm812_vm4, %v745_v59  ;;  %1499 = vrot.lane.b32.xlu1 %v3272_v25, %s2956_s17 }
  0xf6   : > { %1690 = vrot.lane.b32.xlu0 %v3210_v6, %s2957_s7 }
  0xf7   : > { %v743_v24 = vpop.permute.xlu1 %742 }
  0xf8   : > { %v749_v44 = vpop.permute.xlu0 %748  ;;  %826 = vst.msk [vmem:[#allocation3 + $0x68] sm:$0xff] %vm812_vm4, %v743_v24 }
  0xf9   : > { %829 = vst.msk [vmem:[#allocation3 + $0x80] sm:$0xff] %vm812_vm4, %v749_v44  ;;  %1503 = vrot.lane.b32.xlu1 %v3285_v27, %s2956_s17 }
  0xfa   : > { %1694 = vrot.lane.b32.xlu0 %v3218_v7, %s2957_s7 }
  0xfb   : > { %v747_v17 = vpop.permute.xlu1 %746 }
  0xfc   : > { %v753_v18 = vpop.permute.xlu0 %752  ;;  %828 = vst.msk [vmem:[#allocation3 + $0x78] sm:$0xff] %vm812_vm4, %v747_v17 }
  0xfd   : > { %831 = vst.msk [vmem:[#allocation3 + $0x90] sm:$0xff] %vm812_vm4, %v753_v18  ;;  %1692 = vrot.lane.b32.xlu1 %v3224_v8, %s2957_s7 }
  0xfe   : > { %1883 = vrot.lane.b32.xlu0 %v3388_v41, %s2958_s23 }
  0xff   : > { %v751_v6 = vpop.permute.xlu1 %750 }
 0x100   : > { %v757_v25 = vpop.permute.xlu0 %756  ;;  %830 = vst.msk [vmem:[#allocation3 + $0x88] sm:$0xff] %vm812_vm4, %v751_v6 }
 0x101   : > { %833 = vst.msk [vmem:[#allocation3 + $0xa0] sm:$0xff] %vm812_vm4, %v757_v25  ;;  %1696 = vrot.lane.b32.xlu1 %v3232_v10, %s2957_s7 }
 0x102   : > { %1887 = vrot.lane.b32.xlu0 %v3396_v45, %s2958_s23 }
 0x103   : > { %v755_v13 = vpop.permute.xlu1 %754 }
 0x104   : > { %v761_v20 = vpop.permute.xlu0 %760  ;;  %832 = vst.msk [vmem:[#allocation3 + $0x98] sm:$0xff] %vm812_vm4, %v755_v13 }
 0x105   : > { %835 = vst.msk [vmem:[#allocation3 + $0xb0] sm:$0xff] %vm812_vm4, %v761_v20  ;;  %1885 = vrot.lane.b32.xlu1 %v3402_v46, %s2958_s23 }
 0x106   : > { %925 = vrot.lane.b32.xlu0 %v3274_v26, %s2953_s14 }
 0x107   : > { %v759_v8 = vpop.permute.xlu1 %758 }
 0x108   : > { %v765_v41 = vpop.permute.xlu0 %764  ;;  %834 = vst.msk [vmem:[#allocation3 + $0xa8] sm:$0xff] %vm812_vm4, %v759_v8  ;;  %v1633_v8 = vld [vmem:[#allocation2 + $0xe1] sm:$0xff] }
 0x109   : > { %837 = vst.msk [vmem:[#allocation3 + $0xc0] sm:$0xff] %vm812_vm4, %v765_v41  ;;  %1889 = vrot.lane.b32.xlu1 %v3410_v48, %s2958_s23  ;;  %v1825_v41 = vld [vmem:[#allocation2 + $0xda] sm:$0xff] }
 0x10a   : > { %929 = vrot.lane.b32.xlu0 %v3287_v28, %s2953_s14 }
 0x10b   : > { %v763_v60 = vpop.permute.xlu1 %762 }
 0x10c   : > { %v769_v61 = vpop.permute.xlu0 %768  ;;  %836 = vst.msk [vmem:[#allocation3 + $0xb8] sm:$0xff] %vm812_vm4, %v763_v60 }
 0x10d   : > { %839 = vst.msk [vmem:[#allocation3 + $0xd0] sm:$0xff] %vm812_vm4, %v769_v61  ;;  %927 = vrot.lane.b32.xlu1 %v3285_v27, %s2953_s14 }
 0x10e   : > { %1118 = vrot.lane.b32.xlu0 %v3218_v7, %s2954_s15 }
 0x10f   : > { %v767_v26 = vpop.permute.xlu1 %766 }
 0x110   : > { %v773_v46 = vpop.permute.xlu0 %772  ;;  %838 = vst.msk [vmem:[#allocation3 + $0xc8] sm:$0xff] %vm812_vm4, %v767_v26  ;;  %v1824_v26 = vld [vmem:[#allocation2 + $0xca] sm:$0xff] }
 0x111   : > { %841 = vst.msk [vmem:[#allocation3 + $0xe0] sm:$0xff] %vm812_vm4, %v773_v46  ;;  %931 = vrot.lane.b32.xlu1 %v3289_v29, %s2953_s14 }
 0x112   : > { %1122 = vrot.lane.b32.xlu0 %v3226_v9, %s2954_s15 }
 0x113   : > { %v771_v58 = vpop.permute.xlu1 %770 }
 0x114   : > { %v777_v19 = vpop.permute.xlu0 %776  ;;  %840 = vst.msk [vmem:[#allocation3 + $0xd8] sm:$0xff] %vm812_vm4, %v771_v58 }
 0x115   : > { %843 = vst.msk [vmem:[#allocation3 + $0xf0] sm:$0xff] %vm812_vm4, %v777_v19  ;;  %1120 = vrot.lane.b32.xlu1 %v3232_v10, %s2954_s15  ;;  %v1826_v19 = vld [vmem:[#allocation2 + $0xe2] sm:$0xff] }
 0x116   : > { %1311 = vrot.lane.b32.xlu0 %v3396_v45, %s2955_s16 }
 0x117   : > { %v775_v7 = vpop.permute.xlu1 %774 }
 0x118   : > { %v910_v27 = vpop.permute.xlu0 %909  ;;  %842 = vst.msk [vmem:[#allocation3 + $0xe8] sm:$0xff] %vm812_vm4, %v775_v7 }
 0x119   : > { %1006 = vst.msk [vmem:[#allocation3] sm:$0xff] %vm1005_vm6, %v910_v27  ;;  %1124 = vrot.lane.b32.xlu1 %v3243_v15, %s2954_s15 }
 0x11a   : > { %1315 = vrot.lane.b32.xlu0 %v3404_v47, %s2955_s16 }
 0x11b   : > { %v779_v0 = vpop.permute.xlu1 %778 }
 0x11c   : > { %v914_v21 = vpop.permute.xlu0 %913  ;;  %844 = vst.msk [vmem:[#allocation3 + $0xf8] sm:$0xff] %vm812_vm4, %v779_v0 }
 0x11d   : > { %1008 = vst.msk [vmem:[#allocation3 + $0x10] sm:$0xff] %vm1005_vm6, %v914_v21  ;;  %1313 = vrot.lane.b32.xlu1 %v3410_v48, %s2955_s16 }
 0x11e   : > { %1505 = vrot.lane.b32.xlu0 %v3287_v28, %s2956_s17 }
 0x11f   : > { %v912_v10 = vpop.permute.xlu1 %911 }
 0x120   : > { %v918_v45 = vpop.permute.xlu0 %917  ;;  %1007 = vst.msk [vmem:[#allocation3 + $0x8] sm:$0xff] %vm1005_vm6, %v912_v10 }
 0x121   : > { %1010 = vst.msk [vmem:[#allocation3 + $0x20] sm:$0xff] %vm1005_vm6, %v918_v45  ;;  %1317 = vrot.lane.b32.xlu1 %v3418_v50, %s2955_s16 }
 0x122   : > { %1509 = vrot.lane.b32.xlu0 %v3297_v30, %s2956_s17 }
 0x123   : > { %v916_v16 = vpop.permute.xlu1 %915 }
 0x124   : > { %v922_v2 = vpop.permute.xlu0 %921  ;;  %1009 = vst.msk [vmem:[#allocation3 + $0x18] sm:$0xff] %vm1005_vm6, %v916_v16 }
 0x125   : > { %1012 = vst.msk [vmem:[#allocation3 + $0x30] sm:$0xff] %vm1005_vm6, %v922_v2  ;;  %1507 = vrot.lane.b32.xlu1 %v3289_v29, %s2956_s17 }
 0x126   : > { %1698 = vrot.lane.b32.xlu0 %v3226_v9, %s2957_s7 }
 0x127   : > { %v920_v28 = vpop.permute.xlu1 %919 }
 0x128   : > { %v1103_v48 = vpop.permute.xlu0 %1102  ;;  %1011 = vst.msk [vmem:[#allocation3 + $0x28] sm:$0xff] %vm1005_vm6, %v920_v28  ;;  %v1249_v28 = vld [vmem:[#allocation2 + $0xf2] sm:$0xff] }
 0x129   : > { %1199 = vst.msk [vmem:[#allocation3] sm:$0xff] %vm1198_vm7, %v1103_v48  ;;  %1511 = vrot.lane.b32.xlu1 %v3299_v31, %s2956_s17  ;;  %v321_v48 = vld [vmem:[%s3098_s11 + $0xf0] sm:$0xff] }
 0x12a   : > { %1702 = vrot.lane.b32.xlu0 %v3234_v11, %s2957_s7 }
 0x12b   : > { %v924_v5 = vpop.permute.xlu1 %923 }
 0x12c   : > { %v1107_v14 = vpop.permute.xlu0 %1106  ;;  %1013 = vst.msk [vmem:[#allocation3 + $0x38] sm:$0xff] %vm1005_vm6, %v924_v5  ;;  %v322_v5 = vld [vmem:[%s3098_s11 + $0xf8] sm:$0xff]  ;;  %s2959_s11 = smov [#allocation4]  }
 0x12d   : > { %1201 = vst.msk [vmem:[#allocation3 + $0x10] sm:$0xff] %vm1198_vm7, %v1107_v14  ;;  %1700 = vrot.lane.b32.xlu1 %v3243_v15, %s2957_s7 }
 0x12e   : > { %1891 = vrot.lane.b32.xlu0 %v3404_v47, %s2958_s23 }
 0x12f   : > { %v1105_v9 = vpop.permute.xlu1 %1104 }
 0x130   : > { %v1296_v29 = vpop.permute.xlu0 %1295  ;;  %1200 = vst.msk [vmem:[#allocation3 + $0x8] sm:$0xff] %vm1198_vm7, %v1105_v9 }
 0x131   : > { %1392 = vst.msk [vmem:[#allocation3] sm:$0xff] %vm1391_vm8, %v1296_v29  ;;  %1704 = vrot.lane.b32.xlu1 %v3264_v22, %s2957_s7  ;;  %v1050_v22 = vld [vmem:[#allocation2 + $0xa9] sm:$0xff]  ;;  %v2853_v29 = vld [vmem:[%s4259_s1] ss:$0 sm:$0xff] }
 0x132   : > { %1895 = vrot.lane.b32.xlu0 %v3412_v49, %s2958_s23 }
 0x133   : > { %v1109_v11 = vpop.permute.xlu1 %1108 }
 0x134   : > { %v1300_v3 = vpop.permute.xlu0 %1299  ;;  %1202 = vst.msk [vmem:[#allocation3 + $0x18] sm:$0xff] %vm1198_vm7, %v1109_v11  ;;  %v360_v11 = vadd.f32 %v2853_v29, %v321_v48 }
 0x135   : > { %1394 = vst.msk [vmem:[#allocation3 + $0x10] sm:$0xff] %vm1391_vm8, %v1300_v3  ;;  %1893 = vrot.lane.b32.xlu1 %v3418_v50, %s2958_s23  ;;  %v361_v3 = vadd.f32 %v2853_v29, %v322_v5  ;;  %v1833_v29 = vld [vmem:[#allocation2 + $0x13a] sm:$0xff] }
 0x136   : > { %933 = vrot.lane.b32.xlu0 %v3297_v30, %s2953_s14  ;;  %v1052_v30 = vld [vmem:[#allocation2 + $0xc1] sm:$0xff]  ;;  %393 = vst.msk [vmem:[#allocation2 + $0x181] sm:$0xff] %vm245_vm0, %v360_v11 }
 0x137   : > { %v1298_v15 = vpop.permute.xlu1 %1297  ;;  %394 = vst.msk [vmem:[#allocation2 + $0x189] sm:$0xff] %vm245_vm0, %v361_v3 }
 0x138   : > { %v1490_v47 = vpop.permute.xlu0 %1489  ;;  %1393 = vst.msk [vmem:[#allocation3 + $0x8] sm:$0xff] %vm1391_vm8, %v1298_v15 }
 0x139   : > { %1586 = vst.msk [vmem:[#allocation3] sm:$0xff] %vm1585_vm9, %v1490_v47  ;;  %1897 = vrot.lane.b32.xlu1 %v3426_v52, %s2958_s23 }
 0x13a   : > { %937 = vrot.lane.b32.xlu0 %v3301_v32, %s2953_s14 }
 0x13b   : > { %v1302_v12 = vpop.permute.xlu1 %1301 }
 0x13c   : > { %v1494_v57 = vpop.permute.xlu0 %1493  ;;  %1395 = vst.msk [vmem:[#allocation3 + $0x18] sm:$0xff] %vm1391_vm8, %v1302_v12  ;;  %v1250_v12 = vld [vmem:[#allocation2 + $0xfa] sm:$0xff] }
 0x13d   : > { %1588 = vst.msk [vmem:[#allocation3 + $0x10] sm:$0xff] %vm1585_vm9, %v1494_v57  ;;  %935 = vrot.lane.b32.xlu1 %v3299_v31, %s2953_s14  ;;  %v1053_v31 = vld [vmem:[#allocation2 + $0xc9] sm:$0xff] }
 0x13e   : > { %1126 = vrot.lane.b32.xlu0 %v1050_v22, %s2954_s15 }
 0x13f   : > { %v1492_v50 = vpop.permute.xlu1 %1491 }
 0x140   : > { %v1683_v53 = vpop.permute.xlu0 %1682  ;;  %1587 = vst.msk [vmem:[#allocation3 + $0x8] sm:$0xff] %vm1585_vm9, %v1492_v50 }
 0x141   : > { %1779 = vst.msk [vmem:[#allocation3] sm:$0xff] %vm1778_vm10, %v1683_v53  ;;  %939 = vrot.lane.b32.xlu1 %v3309_v33, %s2953_s14 }
 0x142   : > { %1130 = vrot.lane.b32.xlu0 %v1052_v30, %s2954_s15 }
 0x143   : > { %v1496_v63 = vpop.permute.xlu1 %1495 }
 0x144   : > { %v1687_v40 = vpop.permute.xlu0 %1686  ;;  %1589 = vst.msk [vmem:[#allocation3 + $0x18] sm:$0xff] %vm1585_vm9, %v1496_v63 }
 0x145   : > { %1781 = vst.msk [vmem:[#allocation3 + $0x10] sm:$0xff] %vm1778_vm10, %v1687_v40  ;;  %1128 = vrot.lane.b32.xlu1 %v1051_v55, %s2954_s15 }
 0x146   : > { %1319 = vrot.lane.b32.xlu0 %v3412_v49, %s2955_s16 }
 0x147   : > { %v1685_v56 = vpop.permute.xlu1 %1684 }
 0x148   : > { %v1876_v62 = vpop.permute.xlu0 %1875  ;;  %1780 = vst.msk [vmem:[#allocation3 + $0x8] sm:$0xff] %vm1778_vm10, %v1685_v56  ;;  %v1636_v56 = vld [vmem:[#allocation2 + $0x109] sm:$0xff] }
 0x149   : > { %1972 = vst.msk [vmem:[#allocation3] sm:$0xff] %vm1971_vm11, %v1876_v62  ;;  %1132 = vrot.lane.b32.xlu1 %v1053_v31, %s2954_s15 }
 0x14a   : > { %1323 = vrot.lane.b32.xlu0 %v3420_v51, %s2955_s16 }
 0x14b   : > { %v1689_v1 = vpop.permute.xlu1 %1688 }
 0x14c   : > { %v1880_v23 = vpop.permute.xlu0 %1879  ;;  %1782 = vst.msk [vmem:[#allocation3 + $0x18] sm:$0xff] %vm1778_vm10, %v1689_v1 }
 0x14d   : > { %1974 = vst.msk [vmem:[#allocation3 + $0x10] sm:$0xff] %vm1971_vm11, %v1880_v23  ;;  %1321 = vrot.lane.b32.xlu1 %v3426_v52, %s2955_s16  ;;  %v1632_v52 = vld [vmem:[#allocation2 + $0xd9] sm:$0xff] }
 0x14e   : > { %1513 = vrot.lane.b32.xlu0 %v3301_v32, %s2956_s17 }
 0x14f   : > { %v1878_v49 = vpop.permute.xlu1 %1877 }
 0x150   : > { %v1111_v4 = vpop.permute.xlu0 %1110  ;;  %1973 = vst.msk [vmem:[#allocation3 + $0x8] sm:$0xff] %vm1971_vm11, %v1878_v49  ;;  %v2004_v32 = vld [vmem:[#allocation3] sm:$0xff] }
 0x151   : > { %1203 = vst.msk [vmem:[#allocation3 + $0x20] sm:$0xff] %vm1198_vm7, %v1111_v4  ;;  %1325 = vrot.lane.b32.xlu1 %v3431_v54, %s2955_s16  ;;  %v1829_v4 = vld [vmem:[#allocation2 + $0x10a] sm:$0xff] }
 0x152   : > { %1517 = vrot.lane.b32.xlu0 %v3311_v34, %s2956_s17 }
 0x153   : > { %v1882_v51 = vpop.permute.xlu1 %1881 }
 0x154   : > { %v1115_v59 = vpop.permute.xlu0 %1114  ;;  %1975 = vst.msk [vmem:[#allocation3 + $0x18] sm:$0xff] %vm1971_vm11, %v1882_v51  ;;  %v2006_v18 = vld [vmem:[#allocation3 + $0x10] sm:$0xff] }
 0x155   : > { %1205 = vst.msk [vmem:[#allocation3 + $0x30] sm:$0xff] %vm1198_vm7, %v1115_v59  ;;  %1515 = vrot.lane.b32.xlu1 %v3309_v33, %s2956_s17  ;;  %v1823_v33 = vld [vmem:[#allocation2 + $0xc2] sm:$0xff] }
 0x156   : > { %1706 = vrot.lane.b32.xlu0 %v1052_v30, %s2957_s7 }
 0x157   : > { %v1113_v24 = vpop.permute.xlu1 %1112  ;;  %v2005_v44 = vld [vmem:[#allocation3 + $0x8] sm:$0xff] }
 0x158   : > { %v1304_v54 = vpop.permute.xlu0 %1303  ;;  %1204 = vst.msk [vmem:[#allocation3 + $0x28] sm:$0xff] %vm1198_vm7, %v1113_v24  ;;  %v2036_v17 = vpack.c.bf16 %v2005_v44, %v2004_v32  ;;  %v1830_v24 = vld [vmem:[#allocation2 + $0x112] sm:$0xff] }
 0x159   : > { %1396 = vst.msk [vmem:[#allocation3 + $0x20] sm:$0xff] %vm1391_vm8, %v1304_v54  ;;  %1519 = vrot.lane.b32.xlu1 %v3313_v35, %s2956_s17 }
 0x15a   : > { %1710 = vrot.lane.b32.xlu0 %v1632_v52, %s2957_s7  ;;  %2751 = vmatprep.mubr.msk.bf16.mxu0 %vm2088_vm12, %v2036_v17 }
 0x15b   : > { %v1117_v6 = vpop.permute.xlu1 %1116  ;;  %v2007_v25 = vld [vmem:[#allocation3 + $0x18] sm:$0xff] }
 0x15c   : > { %v1308_v13 = vpop.permute.xlu0 %1307  ;;  %1206 = vst.msk [vmem:[#allocation3 + $0x38] sm:$0xff] %vm1198_vm7, %v1117_v6  ;;  %v2037_v20 = vpack.c.bf16 %v2007_v25, %v2006_v18 }
 0x15d   : > { %1398 = vst.msk [vmem:[#allocation3 + $0x30] sm:$0xff] %vm1391_vm8, %v1308_v13  ;;  %1708 = vrot.lane.b32.xlu1 %v1053_v31, %s2957_s7  ;;  %v1253_v13 = vld [vmem:[#allocation2 + $0x122] sm:$0xff] }
 0x15e   : > { %1899 = vrot.lane.b32.xlu0 %v1823_v33, %s2958_s23  ;;  %2752 = vmatmul.mubr.msk.bf16.vlgmr.msra.gmra.mrb[0].mxu0 %vm2088_vm12, %v2037_v20 }
 0x15f   : > { %v1306_v60 = vpop.permute.xlu1 %1305 }
 0x160   : > { %v1498_v61 = vpop.permute.xlu0 %1497  ;;  %1397 = vst.msk [vmem:[#allocation3 + $0x28] sm:$0xff] %vm1391_vm8, %v1306_v60 }
 0x161   : > { %1590 = vst.msk [vmem:[#allocation3 + $0x20] sm:$0xff] %vm1585_vm9, %v1498_v61  ;;  %1712 = vrot.lane.b32.xlu1 %v1633_v8, %s2957_s7 }
 0x162   : > { %1903 = vrot.lane.b32.xlu0 %v1825_v41, %s2958_s23 }
 0x163   : > { %v1310_v46 = vpop.permute.xlu1 %1309 }
 0x164   : > { %v1502_v58 = vpop.permute.xlu0 %1501  ;;  %1399 = vst.msk [vmem:[#allocation3 + $0x38] sm:$0xff] %vm1391_vm8, %v1310_v46  ;;  %v1447_v46 = vld [vmem:[#allocation2 + $0x138] sm:$0xff] }
 0x165   : > { %1592 = vst.msk [vmem:[#allocation3 + $0x30] sm:$0xff] %vm1585_vm9, %v1502_v58  ;;  %1901 = vrot.lane.b32.xlu1 %v1824_v26, %s2958_s23  ;;  %v1254_v26 = vld [vmem:[#allocation2 + $0x12a] sm:$0xff] }
 0x166   : > { %941 = vrot.lane.b32.xlu0 %v3311_v34, %s2953_s14  ;;  %v1056_v34 = vld [vmem:[#allocation2 + $0xf1] sm:$0xff] }
 0x167   : > { %v1500_v7 = vpop.permute.xlu1 %1499 }
 0x168   : > { %v1691_v27 = vpop.permute.xlu0 %1690  ;;  %1591 = vst.msk [vmem:[#allocation3 + $0x28] sm:$0xff] %vm1585_vm9, %v1500_v7 }
 0x169   : > { %1783 = vst.msk [vmem:[#allocation3 + $0x20] sm:$0xff] %vm1778_vm10, %v1691_v27  ;;  %1905 = vrot.lane.b32.xlu1 %v1826_v19, %s2958_s23 }
 0x16a   : > { %945 = vrot.lane.b32.xlu0 %v3321_v36, %s2953_s14 }
 0x16b   : > { %v1504_v0 = vpop.permute.xlu1 %1503 }
 0x16c   : > { %v1695_v21 = vpop.permute.xlu0 %1694  ;;  %1593 = vst.msk [vmem:[#allocation3 + $0x38] sm:$0xff] %vm1585_vm9, %v1504_v0 }
 0x16d   : > { %1785 = vst.msk [vmem:[#allocation3 + $0x30] sm:$0xff] %vm1778_vm10, %v1695_v21  ;;  %943 = vrot.lane.b32.xlu1 %v3313_v35, %s2953_s14  ;;  %v1057_v35 = vld [vmem:[#allocation2 + $0xf9] sm:$0xff]  ;;  %v1446_v21 = vld [vmem:[#allocation2 + $0x128] sm:$0xff] }
 0x16e   : > { %1134 = vrot.lane.b32.xlu0 %v1632_v52, %s2954_s15 }
 0x16f   : > { %v1693_v10 = vpop.permute.xlu1 %1692 }
 0x170   : > { %v1884_v45 = vpop.permute.xlu0 %1883  ;;  %1784 = vst.msk [vmem:[#allocation3 + $0x28] sm:$0xff] %vm1778_vm10, %v1693_v10 }
 0x171   : > { %1976 = vst.msk [vmem:[#allocation3 + $0x20] sm:$0xff] %vm1971_vm11, %v1884_v45  ;;  %947 = vrot.lane.b32.xlu1 %v3323_v37, %s2953_s14 }
 0x172   : > { %1138 = vrot.lane.b32.xlu0 %v1056_v34, %s2954_s15 }
 0x173   : > { %v1697_v16 = vpop.permute.xlu1 %1696 }
 0x174   : > { %v1888_v2 = vpop.permute.xlu0 %1887  ;;  %1786 = vst.msk [vmem:[#allocation3 + $0x38] sm:$0xff] %vm1778_vm10, %v1697_v16 }
 0x175   : > { %1978 = vst.msk [vmem:[#allocation3 + $0x30] sm:$0xff] %vm1971_vm11, %v1888_v2  ;;  %1136 = vrot.lane.b32.xlu1 %v1633_v8, %s2954_s15  ;;  %v1448_v2 = vld [vmem:[#allocation2 + $0x140] sm:$0xff] }
 0x176   : > { %1327 = vrot.lane.b32.xlu0 %v1825_v41, %s2955_s16 }
 0x177   : > { %v1886_v14 = vpop.permute.xlu1 %1885 }
 0x178   : > { %v926_v9 = vpop.permute.xlu0 %925  ;;  %1977 = vst.msk [vmem:[#allocation3 + $0x28] sm:$0xff] %vm1971_vm11, %v1886_v14  ;;  %v2008_v22 = vld [vmem:[#allocation3 + $0x20] sm:$0xff] }
 0x179   : > { %1014 = vst.msk [vmem:[#allocation3 + $0x40] sm:$0xff] %vm1005_vm6, %v926_v9  ;;  %1140 = vrot.lane.b32.xlu1 %v1057_v35, %s2954_s15  ;;  %v1641_v9 = vld [vmem:[#allocation2 + $0x141] sm:$0xff] }
 0x17a   : > { %1331 = vrot.lane.b32.xlu0 %v1249_v28, %s2955_s16 }
 0x17b   : > { %v1890_v15 = vpop.permute.xlu1 %1889 }
 0x17c   : > { %v930_v47 = vpop.permute.xlu0 %929  ;;  %1979 = vst.msk [vmem:[#allocation3 + $0x38] sm:$0xff] %vm1971_vm11, %v1890_v15  ;;  %v2010_v55 = vld [vmem:[#allocation3 + $0x30] sm:$0xff] }
 0x17d   : > { %1016 = vst.msk [vmem:[#allocation3 + $0x50] sm:$0xff] %vm1005_vm6, %v930_v47  ;;  %1329 = vrot.lane.b32.xlu1 %v1826_v19, %s2955_s16 }
 0x17e   : > { %1521 = vrot.lane.b32.xlu0 %v3321_v36, %s2956_s17 }
 0x17f   : > { %v928_v57 = vpop.permute.xlu1 %927  ;;  %v2009_v30 = vld [vmem:[#allocation3 + $0x28] sm:$0xff] }
 0x180   : > { %v1119_v50 = vpop.permute.xlu0 %1118  ;;  %1015 = vst.msk [vmem:[#allocation3 + $0x48] sm:$0xff] %vm1005_vm6, %v928_v57  ;;  %v2038_v53 = vpack.c.bf16 %v2009_v30, %v2008_v22  ;;  %v1834_v22 = vld [vmem:[#allocation2 + $0x142] sm:$0xff] }
 0x181   : > { %1207 = vst.msk [vmem:[#allocation3 + $0x40] sm:$0xff] %vm1198_vm7, %v1119_v50  ;;  %1333 = vrot.lane.b32.xlu1 %v1250_v12, %s2955_s16 }
 0x182   : > { %1525 = vrot.lane.b32.xlu0 %v3332_v38, %s2956_s17  ;;  %2755 = vmatprep.mubr.msk.bf16.mxu0 %vm2088_vm12, %v2038_v53 }
 0x183   : > { %v932_v63 = vpop.permute.xlu1 %931  ;;  %v2011_v40 = vld [vmem:[#allocation3 + $0x38] sm:$0xff] }
 0x184   : > { %v1123_v36 = vpop.permute.xlu0 %1122  ;;  %1017 = vst.msk [vmem:[#allocation3 + $0x58] sm:$0xff] %vm1005_vm6, %v932_v63  ;;  %v2039_v31 = vpack.c.bf16 %v2011_v40, %v2010_v55  ;;  %v872_v55 = vld [vmem:[#allocation2 + $0x158] sm:$0xff] }
 0x185   : > { %1209 = vst.msk [vmem:[#allocation3 + $0x50] sm:$0xff] %vm1198_vm7, %v1123_v36  ;;  %1523 = vrot.lane.b32.xlu1 %v3323_v37, %s2956_s17  ;;  %v1637_v37 = vld [vmem:[#allocation2 + $0x111] sm:$0xff] }
 0x186   : > { %1714 = vrot.lane.b32.xlu0 %v1056_v34, %s2957_s7  ;;  %2756 = vmatmul.mubr.msk.bf16.gmra.mrb[4].mxu0 %vm2088_vm12, %v2039_v31  ;;  %v1064_v63 = vld [vmem:[#allocation2 + $0x151] sm:$0xff] }
 0x187   : > { %v1121_v62 = vpop.permute.xlu1 %1120 }
 0x188   : > { %v1312_v1 = vpop.permute.xlu0 %1311  ;;  %1208 = vst.msk [vmem:[#allocation3 + $0x48] sm:$0xff] %vm1198_vm7, %v1121_v62  ;;  %v1065_v62 = vld [vmem:[#allocation2 + $0x159] sm:$0xff] }
 0x189   : > { %1400 = vst.msk [vmem:[#allocation3 + $0x40] sm:$0xff] %vm1391_vm8, %v1312_v1  ;;  %1527 = vrot.lane.b32.xlu1 %v3334_v39, %s2956_s17  ;;  %v1257_v1 = vld [vmem:[#allocation2 + $0x152] sm:$0xff] }
 0x18a   : > { %1718 = vrot.lane.b32.xlu0 %v1636_v56, %s2957_s7 }
 0x18b   : > { %v1125_v23 = vpop.permute.xlu1 %1124 }
 0x18c   : > { %v1316_v49 = vpop.permute.xlu0 %1315  ;;  %1210 = vst.msk [vmem:[#allocation3 + $0x58] sm:$0xff] %vm1198_vm7, %v1125_v23 }
 0x18d   : > { %1402 = vst.msk [vmem:[#allocation3 + $0x50] sm:$0xff] %vm1391_vm8, %v1316_v49  ;;  %1716 = vrot.lane.b32.xlu1 %v1057_v35, %s2957_s7  ;;  %v1640_v35 = vld [vmem:[#allocation2 + $0x139] sm:$0xff] }
 0x18e   : > { %1907 = vrot.lane.b32.xlu0 %v1249_v28, %s2958_s23 }
 0x18f   : > { %v1314_v51 = vpop.permute.xlu1 %1313 }
 0x190   : > { %v1506_v59 = vpop.permute.xlu0 %1505  ;;  %1401 = vst.msk [vmem:[#allocation3 + $0x48] sm:$0xff] %vm1391_vm8, %v1314_v51 }
 0x191   : > { %1594 = vst.msk [vmem:[#allocation3 + $0x40] sm:$0xff] %vm1585_vm9, %v1506_v59  ;;  %1720 = vrot.lane.b32.xlu1 %v1637_v37, %s2957_s7  ;;  %v1258_v59 = vld [vmem:[#allocation2 + $0x15a] sm:$0xff] }
 0x192   : > { %1911 = vrot.lane.b32.xlu0 %v1829_v4, %s2958_s23 }
 0x193   : > { %v1318_v32 = vpop.permute.xlu1 %1317 }
 0x194   : > { %v1510_v52 = vpop.permute.xlu0 %1509  ;;  %1403 = vst.msk [vmem:[#allocation3 + $0x58] sm:$0xff] %vm1391_vm8, %v1318_v32  ;;  %v1451_v32 = vld [vmem:[#allocation2 + $0x168] sm:$0xff] }
 0x195   : > { %1596 = vst.msk [vmem:[#allocation3 + $0x50] sm:$0xff] %vm1585_vm9, %v1510_v52  ;;  %1909 = vrot.lane.b32.xlu1 %v1250_v12, %s2958_s23  ;;  %v871_v12 = vld [vmem:[#allocation2 + $0x150] sm:$0xff] }
 0x196   : > { %949 = vrot.lane.b32.xlu0 %v3332_v38, %s2953_s14  ;;  %v1060_v38 = vld [vmem:[#allocation2 + $0x121] sm:$0xff] }
 0x197   : > { %v1508_v44 = vpop.permute.xlu1 %1507 }
 0x198   : > { %v1699_v54 = vpop.permute.xlu0 %1698  ;;  %1595 = vst.msk [vmem:[#allocation3 + $0x48] sm:$0xff] %vm1585_vm9, %v1508_v44 }
 0x199   : > { %1787 = vst.msk [vmem:[#allocation3 + $0x40] sm:$0xff] %vm1778_vm10, %v1699_v54  ;;  %1913 = vrot.lane.b32.xlu1 %v1830_v24, %s2958_s23 }
 0x19a   : > { %953 = vrot.lane.b32.xlu0 %v3342_v42, %s2953_s14 }
 0x19b   : > { %v1512_v17 = vpop.permute.xlu1 %1511 }
 0x19c   : > { %v1703_v18 = vpop.permute.xlu0 %1702  ;;  %1597 = vst.msk [vmem:[#allocation3 + $0x58] sm:$0xff] %vm1585_vm9, %v1512_v17 }
 0x19d   : > { %1789 = vst.msk [vmem:[#allocation3 + $0x50] sm:$0xff] %vm1778_vm10, %v1703_v18  ;;  %951 = vrot.lane.b32.xlu1 %v3334_v39, %s2953_s14  ;;  %v1061_v39 = vld [vmem:[#allocation2 + $0x129] sm:$0xff] }
 0x19e   : > { %1142 = vrot.lane.b32.xlu0 %v1636_v56, %s2954_s15 }
 0x19f   : > { %v1701_v33 = vpop.permute.xlu1 %1700 }
 0x1a0   : > { %v1892_v6 = vpop.permute.xlu0 %1891  ;;  %1788 = vst.msk [vmem:[#allocation3 + $0x48] sm:$0xff] %vm1778_vm10, %v1701_v33 }
 0x1a1   : > { %1980 = vst.msk [vmem:[#allocation3 + $0x40] sm:$0xff] %vm1971_vm11, %v1892_v6  ;;  %955 = vrot.lane.b32.xlu1 %v3344_v43, %s2953_s14  ;;  %v1445_v43 = vld [vmem:[#allocation2 + $0x120] sm:$0xff] }
 0x1a2   : > { %1146 = vrot.lane.b32.xlu0 %v1060_v38, %s2954_s15 }
 0x1a3   : > { %v1705_v42 = vpop.permute.xlu1 %1704 }
 0x1a4   : > { %v1896_v25 = vpop.permute.xlu0 %1895  ;;  %1790 = vst.msk [vmem:[#allocation3 + $0x58] sm:$0xff] %vm1778_vm10, %v1705_v42  ;;  %v1452_v42 = vld [vmem:[#allocation2 + $0x170] sm:$0xff] }
 0x1a5   : > { %1982 = vst.msk [vmem:[#allocation3 + $0x50] sm:$0xff] %vm1971_vm11, %v1896_v25  ;;  %1144 = vrot.lane.b32.xlu1 %v1637_v37, %s2954_s15  ;;  %v1644_v25 = vld [vmem:[#allocation2 + $0x169] sm:$0xff] }
 0x1a6   : > { %1335 = vrot.lane.b32.xlu0 %v1829_v4, %s2955_s16 }
 0x1a7   : > { %v1894_v20 = vpop.permute.xlu1 %1893 }
 0x1a8   : > { %v934_v8 = vpop.permute.xlu0 %933  ;;  %1981 = vst.msk [vmem:[#allocation3 + $0x48] sm:$0xff] %vm1971_vm11, %v1894_v20  ;;  %v2012_v61 = vld [vmem:[#allocation3 + $0x40] sm:$0xff] }
 0x1a9   : > { %1018 = vst.msk [vmem:[#allocation3 + $0x60] sm:$0xff] %vm1005_vm6, %v934_v8  ;;  %1148 = vrot.lane.b32.xlu1 %v1061_v39, %s2954_s15 }
 0x1aa   : > { %1339 = vrot.lane.b32.xlu0 %v1253_v13, %s2955_s16 }
 0x1ab   : > { %v1898_v41 = vpop.permute.xlu1 %1897 }
 0x1ac   : > { %v938_v60 = vpop.permute.xlu0 %937  ;;  %1983 = vst.msk [vmem:[#allocation3 + $0x58] sm:$0xff] %vm1971_vm11, %v1898_v41  ;;  %v2014_v0 = vld [vmem:[#allocation3 + $0x50] sm:$0xff]  ;;  %v1837_v41 = vld [vmem:[#allocation2 + $0x16a] sm:$0xff] }
 0x1ad   : > { %1020 = vst.msk [vmem:[#allocation3 + $0x70] sm:$0xff] %vm1005_vm6, %v938_v60  ;;  %1337 = vrot.lane.b32.xlu1 %v1830_v24, %s2955_s16 }
 0x1ae   : > { %1529 = vrot.lane.b32.xlu0 %v1445_v43, %s2956_s17  ;;  %v1645_v43 = vld [vmem:[#allocation2 + $0x171] sm:$0xff] }
 0x1af   : > { %v936_v58 = vpop.permute.xlu1 %935  ;;  %v2013_v19 = vld [vmem:[#allocation3 + $0x48] sm:$0xff] }
 0x1b0   : > { %v1127_v7 = vpop.permute.xlu0 %1126  ;;  %1019 = vst.msk [vmem:[#allocation3 + $0x68] sm:$0xff] %vm1005_vm6, %v936_v58  ;;  %v2040_v27 = vpack.c.bf16 %v2013_v19, %v2012_v61  ;;  %v1838_v58 = vld [vmem:[#allocation2 + $0x172] sm:$0xff]  ;;  %v875_v19 = vld [vmem:[#allocation2 + $0x180] sm:$0xff] }
 0x1b1   : > { %1211 = vst.msk [vmem:[#allocation3 + $0x60] sm:$0xff] %vm1198_vm7, %v1127_v7  ;;  %1341 = vrot.lane.b32.xlu1 %v1254_v26, %s2955_s16 }
 0x1b2   : > { %1533 = vrot.lane.b32.xlu0 %v1447_v46, %s2956_s17  ;;  %2759 = vmatprep.mubr.msk.bf16.mxu0 %vm2088_vm12, %v2040_v27 }
 0x1b3   : > { %v940_v34 = vpop.permute.xlu1 %939  ;;  %v2015_v10 = vld [vmem:[#allocation3 + $0x58] sm:$0xff] }
 0x1b4   : > { %v1131_v45 = vpop.permute.xlu0 %1130  ;;  %1021 = vst.msk [vmem:[#allocation3 + $0x78] sm:$0xff] %vm1005_vm6, %v940_v34  ;;  %v2041_v16 = vpack.c.bf16 %v2015_v10, %v2014_v0  ;;  %v876_v34 = vld [vmem:[#allocation2 + $0x188] sm:$0xff] }
 0x1b5   : > { %1213 = vst.msk [vmem:[#allocation3 + $0x70] sm:$0xff] %vm1198_vm7, %v1131_v45  ;;  %1531 = vrot.lane.b32.xlu1 %v1446_v21, %s2956_s17  ;;  %v1068_v10 = vld [vmem:[#allocation2 + $0x181] sm:$0xff] }
 0x1b6   : > { %1722 = vrot.lane.b32.xlu0 %v1060_v38, %s2957_s7  ;;  %2760 = vmatmul.mubr.msk.bf16.gmra.mrb[8].mxu0 %vm2088_vm12, %v2041_v16 }
 0x1b7   : > { %v1129_v28 = vpop.permute.xlu1 %1128 }
 0x1b8   : > { %v1320_v48 = vpop.permute.xlu0 %1319  ;;  %1212 = vst.msk [vmem:[#allocation3 + $0x68] sm:$0xff] %vm1198_vm7, %v1129_v28  ;;  %v1069_v28 = vld [vmem:[#allocation2 + $0x189] sm:$0xff] }
 0x1b9   : > { %1404 = vst.msk [vmem:[#allocation3 + $0x60] sm:$0xff] %vm1391_vm8, %v1320_v48  ;;  %1535 = vrot.lane.b32.xlu1 %v1448_v2, %s2956_s17  ;;  %v1261_v48 = vld [vmem:[#allocation2 + $0x182] sm:$0xff] }
 0x1ba   : > { %1726 = vrot.lane.b32.xlu0 %v1640_v35, %s2957_s7 }
 0x1bb   : > { %v1133_v5 = vpop.permute.xlu1 %1132 }
 0x1bc   : > { %v1324_v14 = vpop.permute.xlu0 %1323  ;;  %1214 = vst.msk [vmem:[#allocation3 + $0x78] sm:$0xff] %vm1198_vm7, %v1133_v5 }
 0x1bd   : > { %1406 = vst.msk [vmem:[#allocation3 + $0x70] sm:$0xff] %vm1391_vm8, %v1324_v14  ;;  %1724 = vrot.lane.b32.xlu1 %v1061_v39, %s2957_s7 }
 0x1be   : > { %1915 = vrot.lane.b32.xlu0 %v1253_v13, %s2958_s23 }
 0x1bf   : > { %v1322_v11 = vpop.permute.xlu1 %1321 }
 0x1c0   : > { %v1514_v3 = vpop.permute.xlu0 %1513  ;;  %1405 = vst.msk [vmem:[#allocation3 + $0x68] sm:$0xff] %vm1391_vm8, %v1322_v11 }
 0x1c1   : > { %1598 = vst.msk [vmem:[#allocation3 + $0x60] sm:$0xff] %vm1585_vm9, %v1514_v3  ;;  %1728 = vrot.lane.b32.xlu1 %v1641_v9, %s2957_s7  ;;  %v1262_v3 = vld [vmem:[#allocation2 + $0x18a] sm:$0xff] }
 0x1c2   : > { %1919 = vrot.lane.b32.xlu0 %v1833_v29, %s2958_s23 }
 0x1c3   : > { %v1326_v15 = vpop.permute.xlu1 %1325 }
 0x1c4   : > { %v1518_v47 = vpop.permute.xlu0 %1517  ;;  %1407 = vst.msk [vmem:[#allocation3 + $0x78] sm:$0xff] %vm1391_vm8, %v1326_v15  ;;  %v1455_v15 = vld [vmem:[#allocation2 + $0x198] sm:$0xff] }
 0x1c5   : > { %1600 = vst.msk [vmem:[#allocation3 + $0x70] sm:$0xff] %vm1585_vm9, %v1518_v47  ;;  %1917 = vrot.lane.b32.xlu1 %v1254_v26, %s2958_s23 }
 0x1c6   : > { %957 = vrot.lane.b32.xlu0 %v1447_v46, %s2953_s14 }
 0x1c7   : > { %v1516_v57 = vpop.permute.xlu1 %1515 }
 0x1c8   : > { %v1707_v30 = vpop.permute.xlu0 %1706  ;;  %1599 = vst.msk [vmem:[#allocation3 + $0x68] sm:$0xff] %vm1585_vm9, %v1516_v57 }
 0x1c9   : > { %1791 = vst.msk [vmem:[#allocation3 + $0x60] sm:$0xff] %vm1778_vm10, %v1707_v30  ;;  %1921 = vrot.lane.b32.xlu1 %v1834_v22, %s2958_s23 }
 0x1ca   : > { %961 = vrot.lane.b32.xlu0 %v871_v12, %s2953_s14 }
 0x1cb   : > { %v1520_v50 = vpop.permute.xlu1 %1519 }
 0x1cc   : > { %v1711_v53 = vpop.permute.xlu0 %1710  ;;  %1601 = vst.msk [vmem:[#allocation3 + $0x78] sm:$0xff] %vm1585_vm9, %v1520_v50 }
 0x1cd   : > { %1793 = vst.msk [vmem:[#allocation3 + $0x70] sm:$0xff] %vm1778_vm10, %v1711_v53  ;;  %959 = vrot.lane.b32.xlu1 %v1448_v2, %s2953_s14 }
 0x1ce   : > { %1150 = vrot.lane.b32.xlu0 %v1640_v35, %s2954_s15 }
 0x1cf   : > { %v1709_v40 = vpop.permute.xlu1 %1708 }
 0x1d0   : > { %v1900_v36 = vpop.permute.xlu0 %1899  ;;  %1792 = vst.msk [vmem:[#allocation3 + $0x68] sm:$0xff] %vm1778_vm10, %v1709_v40  ;;  %v1456_v40 = vld [vmem:[#allocation2 + $0x1a0] sm:$0xff] }
 0x1d1   : > { %1984 = vst.msk [vmem:[#allocation3 + $0x60] sm:$0xff] %vm1971_vm11, %v1900_v36  ;;  %963 = vrot.lane.b32.xlu1 %v872_v55, %s2953_s14  ;;  %v1648_v36 = vld [vmem:[#allocation2 + $0x199] sm:$0xff] }
 0x1d2   : > { %1154 = vrot.lane.b32.xlu0 %v1064_v63, %s2954_s15 }
 0x1d3   : > { %v1713_v31 = vpop.permute.xlu1 %1712 }
 0x1d4   : > { %v1904_v56 = vpop.permute.xlu0 %1903  ;;  %1794 = vst.msk [vmem:[#allocation3 + $0x78] sm:$0xff] %vm1778_vm10, %v1713_v31 }
 0x1d5   : > { %1986 = vst.msk [vmem:[#allocation3 + $0x70] sm:$0xff] %vm1971_vm11, %v1904_v56  ;;  %1152 = vrot.lane.b32.xlu1 %v1641_v9, %s2954_s15 }
 0x1d6   : > { %1343 = vrot.lane.b32.xlu0 %v1833_v29, %s2955_s16 }
 0x1d7   : > { %v1902_v23 = vpop.permute.xlu1 %1901 }
 0x1d8   : > { %v942_v49 = vpop.permute.xlu0 %941  ;;  %1985 = vst.msk [vmem:[#allocation3 + $0x68] sm:$0xff] %vm1971_vm11, %v1902_v23  ;;  %v2016_v51 = vld [vmem:[#allocation3 + $0x60] sm:$0xff]  ;;  %v1649_v23 = vld [vmem:[#allocation2 + $0x1a1] sm:$0xff] }
 0x1d9   : > { %1022 = vst.msk [vmem:[#allocation3 + $0x80] sm:$0xff] %vm1005_vm6, %v942_v49  ;;  %1156 = vrot.lane.b32.xlu1 %v1065_v62, %s2954_s15  ;;  %v1841_v49 = vld [vmem:[#allocation2 + $0x19a] sm:$0xff] }
 0x1da   : > { %1347 = vrot.lane.b32.xlu0 %v1257_v1, %s2955_s16 }
 0x1db   : > { %v1906_v37 = vpop.permute.xlu1 %1905 }
 0x1dc   : > { %v946_v4 = vpop.permute.xlu0 %945  ;;  %1987 = vst.msk [vmem:[#allocation3 + $0x78] sm:$0xff] %vm1971_vm11, %v1906_v37  ;;  %v2018_v17 = vld [vmem:[#allocation3 + $0x70] sm:$0xff] }
 0x1dd   : > { %1024 = vst.msk [vmem:[#allocation3 + $0x90] sm:$0xff] %vm1005_vm6, %v946_v4  ;;  %1345 = vrot.lane.b32.xlu1 %v1834_v22, %s2955_s16 }
 0x1de   : > { %1537 = vrot.lane.b32.xlu0 %v871_v12, %s2956_s17 }
 0x1df   : > { %v944_v52 = vpop.permute.xlu1 %943  ;;  %v2017_v24 = vld [vmem:[#allocation3 + $0x68] sm:$0xff] }
 0x1e0   : > { %v1135_v44 = vpop.permute.xlu0 %1134  ;;  %1023 = vst.msk [vmem:[#allocation3 + $0x88] sm:$0xff] %vm1005_vm6, %v944_v52  ;;  %v2042_v54 = vpack.c.bf16 %v2017_v24, %v2016_v51 }
 0x1e1   : > { %1215 = vst.msk [vmem:[#allocation3 + $0x80] sm:$0xff] %vm1198_vm7, %v1135_v44  ;;  %1349 = vrot.lane.b32.xlu1 %v1258_v59, %s2955_s16 }
 0x1e2   : > { %1541 = vrot.lane.b32.xlu0 %v1451_v32, %s2956_s17  ;;  %2763 = vmatprep.mubr.msk.bf16.mxu0 %vm2088_vm12, %v2042_v54 }
 0x1e3   : > { %v948_v18 = vpop.permute.xlu1 %947  ;;  %v2019_v38 = vld [vmem:[#allocation3 + $0x78] sm:$0xff] }
 0x1e4   : > { %v1139_v33 = vpop.permute.xlu0 %1138  ;;  %1025 = vst.msk [vmem:[#allocation3 + $0x98] sm:$0xff] %vm1005_vm6, %v948_v18  ;;  %v2043_v6 = vpack.c.bf16 %v2019_v38, %v2018_v17 }
 0x1e5   : > { %1217 = vst.msk [vmem:[#allocation3 + $0x90] sm:$0xff] %vm1198_vm7, %v1139_v33  ;;  %1539 = vrot.lane.b32.xlu1 %v872_v55, %s2956_s17 }
 0x1e6   : > { %1730 = vrot.lane.b32.xlu0 %v1064_v63, %s2957_s7  ;;  %2764 = vmatmul.mubr.msk.bf16.gmra.mrb[12].mxu0 %vm2088_vm12, %v2043_v6 }
 0x1e7   : > { %v1137_v39 = vpop.permute.xlu1 %1136 }
 0x1e8   : > { %v1328_v13 = vpop.permute.xlu0 %1327  ;;  %1216 = vst.msk [vmem:[#allocation3 + $0x88] sm:$0xff] %vm1198_vm7, %v1137_v39 }
 0x1e9   : > { %1408 = vst.msk [vmem:[#allocation3 + $0x80] sm:$0xff] %vm1391_vm8, %v1328_v13  ;;  %1543 = vrot.lane.b32.xlu1 %v1452_v42, %s2956_s17 }
 0x1ea   : > { %1734 = vrot.lane.b32.xlu0 %v1644_v25, %s2957_s7 }
 0x1eb   : > { %v1141_v20 = vpop.permute.xlu1 %1140 }
 0x1ec   : > { %v1332_v8 = vpop.permute.xlu0 %1331  ;;  %1218 = vst.msk [vmem:[#allocation3 + $0x98] sm:$0xff] %vm1198_vm7, %v1141_v20 }
 0x1ed   : > { %1410 = vst.msk [vmem:[#allocation3 + $0x90] sm:$0xff] %vm1391_vm8, %v1332_v8  ;;  %1732 = vrot.lane.b32.xlu1 %v1065_v62, %s2957_s7 }
 0x1ee   : > { %1923 = vrot.lane.b32.xlu0 %v1257_v1, %s2958_s23 }
 0x1ef   : > { %v1330_v60 = vpop.permute.xlu1 %1329 }
 0x1f0   : > { %v1522_v61 = vpop.permute.xlu0 %1521  ;;  %1409 = vst.msk [vmem:[#allocation3 + $0x88] sm:$0xff] %vm1391_vm8, %v1330_v60 }
 0x1f1   : > { %1602 = vst.msk [vmem:[#allocation3 + $0x80] sm:$0xff] %vm1585_vm9, %v1522_v61  ;;  %1736 = vrot.lane.b32.xlu1 %v1645_v43, %s2957_s7 }
 0x1f2   : > { %1927 = vrot.lane.b32.xlu0 %v1837_v41, %s2958_s23 }
 0x1f3   : > { %v1334_v26 = vpop.permute.xlu1 %1333 }
 0x1f4   : > { %v1526_v46 = vpop.permute.xlu0 %1525  ;;  %1411 = vst.msk [vmem:[#allocation3 + $0x98] sm:$0xff] %vm1391_vm8, %v1334_v26 }
 0x1f5   : > { %1604 = vst.msk [vmem:[#allocation3 + $0x90] sm:$0xff] %vm1585_vm9, %v1526_v46  ;;  %1925 = vrot.lane.b32.xlu1 %v1258_v59, %s2958_s23 }
 0x1f6   : > { %965 = vrot.lane.b32.xlu0 %v1451_v32, %s2953_s14  ;;  %v1842_v32 = vld [vmem:[#allocation2 + $0x1a2] sm:$0xff] }
 0x1f7   : > { %v1524_v7 = vpop.permute.xlu1 %1523 }
 0x1f8   : > { %v1715_v27 = vpop.permute.xlu0 %1714  ;;  %1603 = vst.msk [vmem:[#allocation3 + $0x88] sm:$0xff] %vm1585_vm9, %v1524_v7 }
 0x1f9   : > { %1795 = vst.msk [vmem:[#allocation3 + $0x80] sm:$0xff] %vm1778_vm10, %v1715_v27  ;;  %1929 = vrot.lane.b32.xlu1 %v1838_v58, %s2958_s23 }
 0x1fa   : > { %969 = vrot.lane.b32.xlu0 %v875_v19, %s2953_s14 }
 0x1fb   : > { %v1528_v0 = vpop.permute.xlu1 %1527 }
 0x1fc   : > { %v1719_v21 = vpop.permute.xlu0 %1718  ;;  %1605 = vst.msk [vmem:[#allocation3 + $0x98] sm:$0xff] %vm1585_vm9, %v1528_v0 }
 0x1fd   : > { %1797 = vst.msk [vmem:[#allocation3 + $0x90] sm:$0xff] %vm1778_vm10, %v1719_v21  ;;  %967 = vrot.lane.b32.xlu1 %v1452_v42, %s2953_s14 }
 0x1fe   : > { %1158 = vrot.lane.b32.xlu0 %v1644_v25, %s2954_s15 }
 0x1ff   : > { %v1717_v45 = vpop.permute.xlu1 %1716 }
 0x200   : > { %v1908_v16 = vpop.permute.xlu0 %1907  ;;  %1796 = vst.msk [vmem:[#allocation3 + $0x88] sm:$0xff] %vm1778_vm10, %v1717_v45 }
 0x201   : > { %1988 = vst.msk [vmem:[#allocation3 + $0x80] sm:$0xff] %vm1971_vm11, %v1908_v16  ;;  %971 = vrot.lane.b32.xlu1 %v876_v34, %s2953_s14  ;;  %s2858_s14 = sshll.u32 %s2959_s11, 4  ;;  %s2859_s14 = int_to_ptr.vmem [resolvable:$false] %s2858_s14 }
 0x202   : > { %1162 = vrot.lane.b32.xlu0 %v1068_v10, %s2954_s15 }
 0x203   : > { %v1721_v2 = vpop.permute.xlu1 %1720 }
 0x204   : > { %v1912_v35 = vpop.permute.xlu0 %1911  ;;  %1798 = vst.msk [vmem:[#allocation3 + $0x98] sm:$0xff] %vm1778_vm10, %v1721_v2 }
 0x205   : > { %1990 = vst.msk [vmem:[#allocation3 + $0x90] sm:$0xff] %vm1971_vm11, %v1912_v35  ;;  %1160 = vrot.lane.b32.xlu1 %v1645_v43, %s2954_s15 }
 0x206   : > { %1351 = vrot.lane.b32.xlu0 %v1837_v41, %s2955_s16 }
 0x207   : > { %v1910_v5 = vpop.permute.xlu1 %1909 }
 0x208   : > { %v950_v14 = vpop.permute.xlu0 %949  ;;  %1989 = vst.msk [vmem:[#allocation3 + $0x88] sm:$0xff] %vm1971_vm11, %v1910_v5  ;;  %v2020_v11 = vld [vmem:[#allocation3 + $0x80] sm:$0xff] }
 0x209   : > { %1026 = vst.msk [vmem:[#allocation3 + $0xa0] sm:$0xff] %vm1005_vm6, %v950_v14  ;;  %1164 = vrot.lane.b32.xlu1 %v1069_v28, %s2954_s15  ;;  %s3977_s15 = scalar_lea.vmem %s4261_s3, %s2718_s8  ;;  %s2714_s8 = sshll.u32 %s3012_s22, 4 }
 0x20a   : > { %1355 = vrot.lane.b32.xlu0 %v1261_v48, %s2955_s16  ;;  %s4190_s26 = scalar_lea.hbm %s4263_s5, %s2714_s8 }
 0x20b   : > { %v1914_v9 = vpop.permute.xlu1 %1913 }
 0x20c   : > { %v954_v29 = vpop.permute.xlu0 %953  ;;  %1991 = vst.msk [vmem:[#allocation3 + $0x98] sm:$0xff] %vm1971_vm11, %v1914_v9  ;;  %v2022_v30 = vld [vmem:[#allocation3 + $0x90] sm:$0xff] }
 0x20d   : > { %1028 = vst.msk [vmem:[#allocation3 + $0xb0] sm:$0xff] %vm1005_vm6, %v954_v29  ;;  %1353 = vrot.lane.b32.xlu1 %v1838_v58, %s2955_s16 }
 0x20e   : > { %1545 = vrot.lane.b32.xlu0 %v875_v19, %s2956_s17 }
 0x20f   : > { %v952_v47 = vpop.permute.xlu1 %951  ;;  %v2021_v22 = vld [vmem:[#allocation3 + $0x88] sm:$0xff] }
 0x210   : > { %v1143_v12 = vpop.permute.xlu0 %1142  ;;  %1027 = vst.msk [vmem:[#allocation3 + $0xa8] sm:$0xff] %vm1005_vm6, %v952_v47  ;;  %v2044_v57 = vpack.c.bf16 %v2021_v22, %v2020_v11 }
 0x211   : > { %1219 = vst.msk [vmem:[#allocation3 + $0xa0] sm:$0xff] %vm1198_vm7, %v1143_v12  ;;  %1357 = vrot.lane.b32.xlu1 %v1262_v3, %s2955_s16  ;;  %s227_s16 = scalar_lea.vmem [#allocation4], %s4172_s30 }
 0x212   : > { %1549 = vrot.lane.b32.xlu0 %v1455_v15, %s2956_s17  ;;  %2767 = vmatprep.mubr.msk.bf16.mxu1 %vm2088_vm12, %v2044_v57 }
 0x213   : > { %v956_v50 = vpop.permute.xlu1 %955  ;;  %v2023_v53 = vld [vmem:[#allocation3 + $0x98] sm:$0xff] }
 0x214   : > { %v1147_v55 = vpop.permute.xlu0 %1146  ;;  %1029 = vst.msk [vmem:[#allocation3 + $0xb8] sm:$0xff] %vm1005_vm6, %v956_v50  ;;  %v2045_v63 = vpack.c.bf16 %v2023_v53, %v2022_v30 }
 0x215   : > { %1221 = vst.msk [vmem:[#allocation3 + $0xb0] sm:$0xff] %vm1198_vm7, %v1147_v55  ;;  %1547 = vrot.lane.b32.xlu1 %v876_v34, %s2956_s17 }
 0x216   : > { %1738 = vrot.lane.b32.xlu0 %v1068_v10, %s2957_s7  ;;  %2768 = vmatmul.mubr.msk.bf16.vlgmr.msra.gmra.mrb[0].mxu1 %vm2088_vm12, %v2045_v63 }
 0x217   : > { %v1145_v31 = vpop.permute.xlu1 %1144 }
 0x218   : > { %v1336_v56 = vpop.permute.xlu0 %1335  ;;  %1220 = vst.msk [vmem:[#allocation3 + $0xa8] sm:$0xff] %vm1198_vm7, %v1145_v31 }
 0x219   : > { %1412 = vst.msk [vmem:[#allocation3 + $0xa0] sm:$0xff] %vm1391_vm8, %v1336_v56  ;;  %1551 = vrot.lane.b32.xlu1 %v1456_v40, %s2956_s17  ;;  %s2563_s17 = sshll.u32 %s227_s16, 4  ;;  %s4184_s17 = int_to_ptr.vmem [resolvable:$true] %s2563_s17 }
 0x21a   : > { %1742 = vrot.lane.b32.xlu0 %v1648_v36, %s2957_s7  ;;  %s2854_s9 = scalar_lea.vmem %s4184_s17, 16  ;;  %p2861_p0 = scmp.lt.s32.totalorder %s4184_s17, %s2859_s14 }
 0x21b   : > { %v1149_v62 = vpop.permute.xlu1 %1148  ;;  %p2855_p11 = scmp.ne.s32.totalorder %s4184_s17, %s2854_s9 }
 0x21c   : > { %v1340_v1 = vpop.permute.xlu0 %1339  ;;  %1222 = vst.msk [vmem:[#allocation3 + $0xb8] sm:$0xff] %vm1198_vm7, %v1149_v62 }
 0x21d   : > { %1414 = vst.msk [vmem:[#allocation3 + $0xb0] sm:$0xff] %vm1391_vm8, %v1340_v1  ;;  %1740 = vrot.lane.b32.xlu1 %v1069_v28, %s2957_s7  ;;  %p2856_p12 = pnand %p2855_p11, %p3029_p5 }
 0x21e   : > { %1931 = vrot.lane.b32.xlu0 %v1261_v48, %s2958_s23 }
 0x21f   : > { %v1338_v37 = vpop.permute.xlu1 %1337  ;;  %p2857_p13 = pneg %p2856_p12 }
 0x220   : > { %v1530_v4 = vpop.permute.xlu0 %1529  ;;  %1413 = vst.msk [vmem:[#allocation3 + $0xa8] sm:$0xff] %vm1391_vm8, %v1338_v37 }
 0x221   : > { %1606 = vst.msk [vmem:[#allocation3 + $0xa0] sm:$0xff] %vm1585_vm9, %v1530_v4  ;;  %1744 = vrot.lane.b32.xlu1 %v1649_v23, %s2957_s7  ;;  %s233_s7 = scalar_lea.vmem [#allocation6], %s4172_s30 }
 0x222   : > { %1935 = vrot.lane.b32.xlu0 %v1841_v49, %s2958_s23  ;;  %s2576_s10 = sshll.u32 %s233_s7, 4  ;;  %s4192_s10 = int_to_ptr.vmem [resolvable:$true] %s2576_s10 }
 0x223   : > { %v1342_v51 = vpop.permute.xlu1 %1341 }
 0x224   : > { %v1534_v59 = vpop.permute.xlu0 %1533  ;;  %1415 = vst.msk [vmem:[#allocation3 + $0xb8] sm:$0xff] %vm1391_vm8, %v1342_v51 }
 0x225   : > { %1608 = vst.msk [vmem:[#allocation3 + $0xb0] sm:$0xff] %vm1585_vm9, %v1534_v59  ;;  %1933 = vrot.lane.b32.xlu1 %v1262_v3, %s2958_s23 }
 0x227   : > { %v1532_v52 = vpop.permute.xlu1 %1531 }
 0x228   : > { %v1723_v24 = vpop.permute.xlu0 %1722  ;;  %1607 = vst.msk [vmem:[#allocation3 + $0xa8] sm:$0xff] %vm1585_vm9, %v1532_v52 }
 0x229   : > { %1799 = vst.msk [vmem:[#allocation3 + $0xa0] sm:$0xff] %vm1778_vm10, %v1723_v24  ;;  %1937 = vrot.lane.b32.xlu1 %v1842_v32, %s2958_s23  ;;  %s4182_s23 = scalar_lea.hbm %s4262_s4, %s2714_s8 }
 0x22b   : > { %v1536_v44 = vpop.permute.xlu1 %1535 }
 0x22c   : > { %v1727_v54 = vpop.permute.xlu0 %1726  ;;  %1609 = vst.msk [vmem:[#allocation3 + $0xb8] sm:$0xff] %vm1585_vm9, %v1536_v44 }
 0x22d   : > { %1801 = vst.msk [vmem:[#allocation3 + $0xb0] sm:$0xff] %vm1778_vm10, %v1727_v54 }
 0x22f   : > { %v1725_v17 = vpop.permute.xlu1 %1724 }
 0x230   : > { %v1916_v18 = vpop.permute.xlu0 %1915  ;;  %1800 = vst.msk [vmem:[#allocation3 + $0xa8] sm:$0xff] %vm1778_vm10, %v1725_v17 }
 0x231   : > { %1992 = vst.msk [vmem:[#allocation3 + $0xa0] sm:$0xff] %vm1971_vm11, %v1916_v18  ;;  %v2753_v38 = vpop.f32.mrb[0].mxu0 }
 0x232   : > { %v2304_v33 = vmax.f32 %v2753_v38, 0.0  ;;  %v2175_v6 = vpop.f32.mrb[1].mxu0 }
 0x233   : > { %v2302_v42 = vmax.f32 %v2175_v6, 0.0  ;;  %v1729_v25 = vpop.permute.xlu1 %1728  ;;  %v2754_v39 = vpop.f32.mrb[2].mxu0 }
 0x234   : > { %2336 = vst.msk [vmem:[%s3977_s15 + $0x10] sm:$0xff] %vm245_vm0, %v2304_v33  ;;  %v2305_v13 = vmax.f32 %v2754_v39, 0.0  ;;  %v2178_v20 = vpop.f32.mrb[3].mxu0  ;;  %v1920_v8 = vpop.permute.xlu0 %1919  ;;  %v2438_v60 = vmul.f32 %v2304_v33, %v2304_v33  ;;  %v2369_v27 = vsel %vm245_vm0, %v2304_v33, 0.0 }
 0x235   : > { %1802 = vst.msk [vmem:[#allocation3 + $0xb8] sm:$0xff] %vm1778_vm10, %v1729_v25  ;;  %v2436_v43 = vmul.f32 %v2302_v42, %v2302_v42  ;;  %v2303_v41 = vmax.f32 %v2178_v20, 0.0  ;;  %v2366_v61 = vsel %vm245_vm0, %v2302_v42, 0.0 }
 0x236   : > { %2334 = vst.msk [vmem:[%s3977_s15] sm:$0xff] %vm245_vm0, %v2302_v42  ;;  %2337 = vst.msk [vmem:[%s3977_s15 + $0x18] sm:$0xff] %vm245_vm0, %v2305_v13  ;;  %v2439_v21 = vmul.f32 %v2305_v13, %v2305_v13  ;;  %v2471_v16 = vsel %vm245_vm0, %v2438_v60, 0.0  ;;  %v2371_v2 = vsel %vm245_vm0, %v2305_v13, 0.0 }
 0x237   : > { %1994 = vst.msk [vmem:[#allocation3 + $0xb0] sm:$0xff] %vm1971_vm11, %v1920_v8  ;;  %v2367_v26 = vsel %vm245_vm0, %v2303_v41, 0.0  ;;  %v2437_v46 = vmul.f32 %v2303_v41, %v2303_v41  ;;  %v1918_v58 = vpop.permute.xlu1 %1917  ;;  %v2468_v0 = vsel %vm245_vm0, %v2436_v43, 0.0 }
 0x238   : > { %2335 = vst.msk [vmem:[%s3977_s15 + $0x8] sm:$0xff] %vm245_vm0, %v2303_v41  ;;  %v2368_v19 = vadd.f32 %v2367_v26, %v2366_v61  ;;  %v958_v7 = vpop.permute.xlu0 %957  ;;  %v2473_v14 = vsel %vm245_vm0, %v2439_v21, 0.0  ;;  %v2024_v9 = vld [vmem:[#allocation3 + $0xa0] sm:$0xff] }
 0x239   : > { %1993 = vst.msk [vmem:[#allocation3 + $0xa8] sm:$0xff] %vm1971_vm11, %v1918_v58  ;;  %v2469_v34 = vsel %vm245_vm0, %v2437_v46, 0.0 }
 0x23a   : > { %1030 = vst.msk [vmem:[#allocation3 + $0xc0] sm:$0xff] %vm1005_vm6, %v958_v7  ;;  %v2370_v10 = vadd.f32 %v2369_v27, %v2368_v19  ;;  %v2470_v45 = vadd.f32 %v2469_v34, %v2468_v0 }
 0x23b   : > { %v1922_v35 = vpop.permute.xlu1 %1921 }
 0x23c   : > { %v2472_v28 = vadd.f32 %v2471_v16, %v2470_v45  ;;  %1995 = vst.msk [vmem:[#allocation3 + $0xb8] sm:$0xff] %vm1971_vm11, %v1922_v35  ;;  %v962_v48 = vpop.permute.xlu0 %961  ;;  %v2372_v5 = vadd.f32 %v2371_v2, %v2370_v10 }
 0x23d   : > { %1032 = vst.msk [vmem:[#allocation3 + $0xd0] sm:$0xff] %vm1005_vm6, %v962_v48 }
 0x23e   : > { %v2474_v29 = vadd.f32 %v2473_v14, %v2472_v28  ;;  %v2026_v22 = vld [vmem:[#allocation3 + $0xb0] sm:$0xff] }
 0x23f   : > { %v960_v11 = vpop.permute.xlu1 %959 }
 0x240   : > { %v2025_v3 = vld [vmem:[#allocation3 + $0xa8] sm:$0xff]  ;;  %1031 = vst.msk [vmem:[#allocation3 + $0xc8] sm:$0xff] %vm1005_vm6, %v960_v11  ;;  %v1151_v47 = vpop.permute.xlu0 %1150 }
 0x241   : > { %v2046_v15 = vpack.c.bf16 %v2025_v3, %v2024_v9  ;;  %1223 = vst.msk [vmem:[#allocation3 + $0xc0] sm:$0xff] %vm1198_vm7, %v1151_v47 }
 0x243   : > { %2771 = vmatprep.mubr.msk.bf16.mxu1 %vm2088_vm12, %v2046_v15  ;;  %v964_v12 = vpop.permute.xlu1 %963  ;;  %v2027_v57 = vld [vmem:[#allocation3 + $0xb8] sm:$0xff] }
 0x244   : > { %1033 = vst.msk [vmem:[#allocation3 + $0xd8] sm:$0xff] %vm1005_vm6, %v964_v12  ;;  %v2047_v30 = vpack.c.bf16 %v2027_v57, %v2026_v22  ;;  %v1155_v50 = vpop.permute.xlu0 %1154 }
 0x245   : > { %1225 = vst.msk [vmem:[#allocation3 + $0xd0] sm:$0xff] %vm1198_vm7, %v1155_v50 }
 0x246   : > { %2772 = vmatmul.mubr.msk.bf16.gmra.mrb[4].mxu1 %vm2088_vm12, %v2047_v30 }
 0x247   : > { %v1153_v53 = vpop.permute.xlu1 %1152 }
 0x248   : > { %1224 = vst.msk [vmem:[#allocation3 + $0xc8] sm:$0xff] %vm1198_vm7, %v1153_v53  ;;  %v1344_v55 = vpop.permute.xlu0 %1343 }
 0x249   : > { %1416 = vst.msk [vmem:[#allocation3 + $0xc0] sm:$0xff] %vm1391_vm8, %v1344_v55 }
 0x24b   : > { %v1157_v63 = vpop.permute.xlu1 %1156 }
 0x24c   : > { %1226 = vst.msk [vmem:[#allocation3 + $0xd8] sm:$0xff] %vm1198_vm7, %v1157_v63  ;;  %v1348_v40 = vpop.permute.xlu0 %1347 }
 0x24d   : > { %1418 = vst.msk [vmem:[#allocation3 + $0xd0] sm:$0xff] %vm1391_vm8, %v1348_v40 }
 0x24f   : > { %v1346_v36 = vpop.permute.xlu1 %1345 }
 0x250   : > { %1417 = vst.msk [vmem:[#allocation3 + $0xc8] sm:$0xff] %vm1391_vm8, %v1346_v36  ;;  %v1538_v31 = vpop.permute.xlu0 %1537 }
 0x251   : > { %1610 = vst.msk [vmem:[#allocation3 + $0xc0] sm:$0xff] %vm1585_vm9, %v1538_v31 }
 0x253   : > { %v1350_v56 = vpop.permute.xlu1 %1349 }
 0x254   : > { %1419 = vst.msk [vmem:[#allocation3 + $0xd8] sm:$0xff] %vm1391_vm8, %v1350_v56  ;;  %v1542_v62 = vpop.permute.xlu0 %1541 }
 0x255   : > { %1612 = vst.msk [vmem:[#allocation3 + $0xd0] sm:$0xff] %vm1585_vm9, %v1542_v62 }
 0x257   : > { %v1540_v1 = vpop.permute.xlu1 %1539 }
 0x258   : > { %1611 = vst.msk [vmem:[#allocation3 + $0xc8] sm:$0xff] %vm1585_vm9, %v1540_v1  ;;  %v1731_v23 = vpop.permute.xlu0 %1730 }
 0x259   : > { %v2757_v49 = vpop.f32.mrb[4].mxu0  ;;  %1803 = vst.msk [vmem:[#allocation3 + $0xc0] sm:$0xff] %vm1778_vm10, %v1731_v23 }
 0x25a   : > { %v2308_v37 = vmax.f32 %v2757_v49, 0.0  ;;  %v2191_v4 = vpop.f32.mrb[5].mxu0 }
 0x25b   : > { %v2306_v51 = vmax.f32 %v2191_v4, 0.0  ;;  %v1544_v59 = vpop.permute.xlu1 %1543  ;;  %v2758_v32 = vpop.f32.mrb[6].mxu0 }
 0x25c   : > { %2340 = vst.msk [vmem:[%s3977_s15 + $0x30] sm:$0xff] %vm245_vm0, %v2308_v37  ;;  %v2309_v52 = vmax.f32 %v2758_v32, 0.0  ;;  %v2194_v24 = vpop.f32.mrb[7].mxu0  ;;  %v1735_v44 = vpop.permute.xlu0 %1734  ;;  %v2442_v33 = vmul.f32 %v2308_v37, %v2308_v37  ;;  %v2377_v43 = vsel %vm245_vm0, %v2308_v37, 0.0 }
 0x25d   : > { %1613 = vst.msk [vmem:[#allocation3 + $0xd8] sm:$0xff] %vm1585_vm9, %v1544_v59  ;;  %v2373_v54 = vsel %vm245_vm0, %v2306_v51, 0.0  ;;  %v2440_v17 = vmul.f32 %v2306_v51, %v2306_v51  ;;  %v2307_v18 = vmax.f32 %v2194_v24, 0.0 }
 0x25e   : > { %2338 = vst.msk [vmem:[%s3977_s15 + $0x20] sm:$0xff] %vm245_vm0, %v2306_v51  ;;  %v2374_v38 = vadd.f32 %v2373_v54, %v2372_v5  ;;  %2341 = vst.msk [vmem:[%s3977_s15 + $0x38] sm:$0xff] %vm245_vm0, %v2309_v52  ;;  %v2443_v41 = vmul.f32 %v2309_v52, %v2309_v52  ;;  %v2479_v46 = vsel %vm245_vm0, %v2442_v33, 0.0  ;;  %v2379_v58 = vsel %vm245_vm0, %v2309_v52, 0.0 }
 0x25f   : > { %1805 = vst.msk [vmem:[#allocation3 + $0xd0] sm:$0xff] %vm1778_vm10, %v1735_v44  ;;  %v2475_v6 = vsel %vm245_vm0, %v2440_v17, 0.0  ;;  %v2375_v42 = vsel %vm245_vm0, %v2307_v18, 0.0  ;;  %v2441_v25 = vmul.f32 %v2307_v18, %v2307_v18  ;;  %v1733_v39 = vpop.permute.xlu1 %1732 }
 0x260   : > { %2339 = vst.msk [vmem:[%s3977_s15 + $0x28] sm:$0xff] %vm245_vm0, %v2307_v18  ;;  %v2476_v13 = vadd.f32 %v2475_v6, %v2474_v29  ;;  %v2376_v20 = vadd.f32 %v2375_v42, %v2374_v38  ;;  %v1924_v8 = vpop.permute.xlu0 %1923  ;;  %v2481_v21 = vsel %vm245_vm0, %v2443_v41, 0.0 }
 0x261   : > { %1804 = vst.msk [vmem:[#allocation3 + $0xc8] sm:$0xff] %vm1778_vm10, %v1733_v39  ;;  %v2477_v60 = vsel %vm245_vm0, %v2441_v25, 0.0 }
 0x262   : > { %1996 = vst.msk [vmem:[#allocation3 + $0xc0] sm:$0xff] %vm1971_vm11, %v1924_v8  ;;  %v2378_v61 = vadd.f32 %v2377_v43, %v2376_v20  ;;  %v2478_v26 = vadd.f32 %v2477_v60, %v2476_v13 }
 0x263   : > { %v1737_v19 = vpop.permute.xlu1 %1736 }
 0x264   : > { %v2480_v7 = vadd.f32 %v2479_v46, %v2478_v26  ;;  %1806 = vst.msk [vmem:[#allocation3 + $0xd8] sm:$0xff] %vm1778_vm10, %v1737_v19  ;;  %v1928_v27 = vpop.permute.xlu0 %1927  ;;  %v4037_v0 = vadd.f32 %v2379_v58, %v2378_v61 }
 0x265   : > { %1998 = vst.msk [vmem:[#allocation3 + $0xd0] sm:$0xff] %vm1971_vm11, %v1928_v27 }
 0x266   : > { %v4041_v34 = vadd.f32 %v2481_v21, %v2480_v7 }
 0x267   : > { %v1926_v10 = vpop.permute.xlu1 %1925 }
 0x268   : > { %1997 = vst.msk [vmem:[#allocation3 + $0xc8] sm:$0xff] %vm1971_vm11, %v1926_v10  ;;  %v966_v45 = vpop.permute.xlu0 %965 }
 0x269   : > { %1034 = vst.msk [vmem:[#allocation3 + $0xe0] sm:$0xff] %vm1005_vm6, %v966_v45  ;;  %v2028_v35 = vld [vmem:[#allocation3 + $0xc0] sm:$0xff] }
 0x26b   : > { %v1930_v16 = vpop.permute.xlu1 %1929 }
 0x26c   : > { %1999 = vst.msk [vmem:[#allocation3 + $0xd8] sm:$0xff] %vm1971_vm11, %v1930_v16  ;;  %v970_v2 = vpop.permute.xlu0 %969  ;;  %v2030_v9 = vld [vmem:[#allocation3 + $0xd0] sm:$0xff] }
 0x26d   : > { %1036 = vst.msk [vmem:[#allocation3 + $0xf0] sm:$0xff] %vm1005_vm6, %v970_v2 }
 0x26f   : > { %v968_v28 = vpop.permute.xlu1 %967  ;;  %v2029_v48 = vld [vmem:[#allocation3 + $0xc8] sm:$0xff] }
 0x270   : > { %1035 = vst.msk [vmem:[#allocation3 + $0xe8] sm:$0xff] %vm1005_vm6, %v968_v28  ;;  %v2048_v5 = vpack.c.bf16 %v2029_v48, %v2028_v35  ;;  %v1159_v14 = vpop.permute.xlu0 %1158 }
 0x271   : > { %1227 = vst.msk [vmem:[#allocation3 + $0xe0] sm:$0xff] %vm1198_vm7, %v1159_v14 }
 0x272   : > { %2775 = vmatprep.mubr.msk.bf16.mxu1 %vm2088_vm12, %v2048_v5 }
 0x273   : > { %v972_v29 = vpop.permute.xlu1 %971  ;;  %v2031_v11 = vld [vmem:[#allocation3 + $0xd8] sm:$0xff] }
 0x274   : > { %1037 = vst.msk [vmem:[#allocation3 + $0xf8] sm:$0xff] %vm1005_vm6, %v972_v29  ;;  %v2049_v3 = vpack.c.bf16 %v2031_v11, %v2030_v9  ;;  %v1163_v15 = vpop.permute.xlu0 %1162 }
 0x275   : > { %1229 = vst.msk [vmem:[#allocation3 + $0xf0] sm:$0xff] %vm1198_vm7, %v1163_v15 }
 0x276   : > { %2776 = vmatmul.mubr.msk.bf16.gmra.mrb[8].mxu1 %vm2088_vm12, %v2049_v3 }
 0x277   : > { %v1161_v47 = vpop.permute.xlu1 %1160 }
 0x278   : > { %1228 = vst.msk [vmem:[#allocation3 + $0xe8] sm:$0xff] %vm1198_vm7, %v1161_v47  ;;  %v1352_v22 = vpop.permute.xlu0 %1351 }
 0x279   : > { %1420 = vst.msk [vmem:[#allocation3 + $0xe0] sm:$0xff] %vm1391_vm8, %v1352_v22 }
 0x27b   : > { %v1165_v12 = vpop.permute.xlu1 %1164 }
 0x27c   : > { %1230 = vst.msk [vmem:[#allocation3 + $0xf8] sm:$0xff] %vm1198_vm7, %v1165_v12  ;;  %v1356_v57 = vpop.permute.xlu0 %1355 }
 0x27d   : > { %1422 = vst.msk [vmem:[#allocation3 + $0xf0] sm:$0xff] %vm1391_vm8, %v1356_v57 }
 0x27f   : > { %v1354_v30 = vpop.permute.xlu1 %1353 }
 0x280   : > { %1421 = vst.msk [vmem:[#allocation3 + $0xe8] sm:$0xff] %vm1391_vm8, %v1354_v30  ;;  %v1546_v50 = vpop.permute.xlu0 %1545 }
 0x281   : > { %1614 = vst.msk [vmem:[#allocation3 + $0xe0] sm:$0xff] %vm1585_vm9, %v1546_v50 }
 0x283   : > { %v1358_v53 = vpop.permute.xlu1 %1357 }
 0x284   : > { %1423 = vst.msk [vmem:[#allocation3 + $0xf8] sm:$0xff] %vm1391_vm8, %v1358_v53  ;;  %v1550_v55 = vpop.permute.xlu0 %1549 }
 0x285   : > { %1616 = vst.msk [vmem:[#allocation3 + $0xf0] sm:$0xff] %vm1585_vm9, %v1550_v55 }
 0x287   : > { %v1548_v63 = vpop.permute.xlu1 %1547 }
 0x288   : > { %1615 = vst.msk [vmem:[#allocation3 + $0xe8] sm:$0xff] %vm1585_vm9, %v1548_v63  ;;  %v1739_v40 = vpop.permute.xlu0 %1738 }
 0x289   : > { %v2761_v36 = vpop.f32.mrb[8].mxu0  ;;  %1807 = vst.msk [vmem:[#allocation3 + $0xe0] sm:$0xff] %vm1778_vm10, %v1739_v40 }
 0x28a   : > { %v2312_v31 = vmax.f32 %v2761_v36, 0.0  ;;  %v2207_v56 = vpop.f32.mrb[9].mxu0 }
 0x28b   : > { %v2310_v62 = vmax.f32 %v2207_v56, 0.0  ;;  %v1552_v1 = vpop.permute.xlu1 %1551  ;;  %v2762_v23 = vpop.f32.mrb[10].mxu0 }
 0x28c   : > { %2344 = vst.msk [vmem:[%s3977_s15 + $0x50] sm:$0xff] %vm245_vm0, %v2312_v31  ;;  %v2313_v49 = vmax.f32 %v2762_v23, 0.0  ;;  %v2210_v37 = vpop.f32.mrb[11].mxu0  ;;  %v1743_v4 = vpop.permute.xlu0 %1742  ;;  %v2446_v24 = vmul.f32 %v2312_v31, %v2312_v31  ;;  %v2385_v42 = vsel %vm245_vm0, %v2312_v31, 0.0 }
 0x28d   : > { %1617 = vst.msk [vmem:[#allocation3 + $0xf8] sm:$0xff] %vm1585_vm9, %v1552_v1  ;;  %v2381_v51 = vsel %vm245_vm0, %v2310_v62, 0.0  ;;  %v2444_v59 = vmul.f32 %v2310_v62, %v2310_v62  ;;  %v2311_v32 = vmax.f32 %v2210_v37, 0.0 }
 0x28e   : > { %2342 = vst.msk [vmem:[%s3977_s15 + $0x40] sm:$0xff] %vm245_vm0, %v2310_v62  ;;  %v2382_v52 = vadd.f32 %v2381_v51, %v4037_v0  ;;  %2345 = vst.msk [vmem:[%s3977_s15 + $0x58] sm:$0xff] %vm245_vm0, %v2313_v49  ;;  %v2447_v25 = vmul.f32 %v2313_v49, %v2313_v49  ;;  %v2487_v8 = vsel %vm245_vm0, %v2446_v24, 0.0  ;;  %v2387_v43 = vsel %vm245_vm0, %v2313_v49, 0.0 }
 0x28f   : > { %1809 = vst.msk [vmem:[#allocation3 + $0xf0] sm:$0xff] %vm1778_vm10, %v1743_v4  ;;  %v2483_v44 = vsel %vm245_vm0, %v2444_v59, 0.0  ;;  %v2383_v54 = vsel %vm245_vm0, %v2311_v32, 0.0  ;;  %v2445_v17 = vmul.f32 %v2311_v32, %v2311_v32  ;;  %v1741_v18 = vpop.permute.xlu1 %1740 }
 0x290   : > { %2343 = vst.msk [vmem:[%s3977_s15 + $0x48] sm:$0xff] %vm245_vm0, %v2311_v32  ;;  %v2484_v38 = vadd.f32 %v2483_v44, %v4041_v34  ;;  %v2384_v33 = vadd.f32 %v2383_v54, %v2382_v52  ;;  %v1932_v6 = vpop.permute.xlu0 %1931  ;;  %v2489_v46 = vsel %vm245_vm0, %v2447_v25, 0.0 }
 0x291   : > { %1808 = vst.msk [vmem:[#allocation3 + $0xe8] sm:$0xff] %vm1778_vm10, %v1741_v18  ;;  %v2485_v39 = vsel %vm245_vm0, %v2445_v17, 0.0 }
 0x292   : > { %2000 = vst.msk [vmem:[#allocation3 + $0xe0] sm:$0xff] %vm1971_vm11, %v1932_v6  ;;  %v2386_v13 = vadd.f32 %v2385_v42, %v2384_v33  ;;  %v2486_v20 = vadd.f32 %v2485_v39, %v2484_v38 }
 0x293   : > { %v1745_v41 = vpop.permute.xlu1 %1744 }
 0x294   : > { %v2488_v60 = vadd.f32 %v2487_v8, %v2486_v20  ;;  %1810 = vst.msk [vmem:[#allocation3 + $0xf8] sm:$0xff] %vm1778_vm10, %v1745_v41  ;;  %v1936_v61 = vpop.permute.xlu0 %1935  ;;  %v2388_v26 = vadd.f32 %v2387_v43, %v2386_v13 }
 0x295   : > { %2002 = vst.msk [vmem:[#allocation3 + $0xf0] sm:$0xff] %vm1971_vm11, %v1936_v61 }
 0x296   : > { %v2490_v58 = vadd.f32 %v2489_v46, %v2488_v60 }
 0x297   : > { %v1934_v19 = vpop.permute.xlu1 %1933 }
 0x298   : > { %2001 = vst.msk [vmem:[#allocation3 + $0xe8] sm:$0xff] %vm1971_vm11, %v1934_v19 }
 0x299   : > { %v2032_v27 = vld [vmem:[#allocation3 + $0xe0] sm:$0xff] }
 0x29b   : > { %v1938_v7 = vpop.permute.xlu1 %1937 }
 0x29c   : > { %2003 = vst.msk [vmem:[#allocation3 + $0xf8] sm:$0xff] %vm1971_vm11, %v1938_v7  ;;  %v2034_v34 = vld [vmem:[#allocation3 + $0xf0] sm:$0xff] }
 0x29f   : > { %v2033_v0 = vld [vmem:[#allocation3 + $0xe8] sm:$0xff] }
 0x2a0   : > { %v2050_v21 = vpack.c.bf16 %v2033_v0, %v2032_v27 }
 0x2a2   : > { %2779 = vmatprep.mubr.msk.bf16.mxu1 %vm2088_vm12, %v2050_v21 }
 0x2a3   : > { %v2035_v10 = vld [vmem:[#allocation3 + $0xf8] sm:$0xff] }
 0x2a4   : > { %v2051_v45 = vpack.c.bf16 %v2035_v10, %v2034_v34 }
 0x2a6   : > { %2780 = vmatmul.mubr.msk.bf16.gmra.mrb[12].mxu1 %vm2088_vm12, %v2051_v45 }
 0x2b9   : > { %v2765_v16 = vpop.f32.mrb[12].mxu0 }
 0x2ba   : > { %v2316_v2 = vmax.f32 %v2765_v16, 0.0  ;;  %v2223_v35 = vpop.f32.mrb[13].mxu0 }
 0x2bb   : > { %v2314_v28 = vmax.f32 %v2223_v35, 0.0  ;;  %v2766_v48 = vpop.f32.mrb[14].mxu0 }
 0x2bc   : > { %2348 = vst.msk [vmem:[%s3977_s15 + $0x70] sm:$0xff] %vm245_vm0, %v2316_v2  ;;  %v2317_v5 = vmax.f32 %v2766_v48, 0.0  ;;  %v2226_v14 = vpop.f32.mrb[15].mxu0  ;;  %v2450_v15 = vmul.f32 %v2316_v2, %v2316_v2  ;;  %v2393_v50 = vsel %vm245_vm0, %v2316_v2, 0.0 }
 0x2bd   : > { %2346 = vst.msk [vmem:[%s3977_s15 + $0x60] sm:$0xff] %vm245_vm0, %v2314_v28  ;;  %v2389_v9 = vsel %vm245_vm0, %v2314_v28, 0.0  ;;  %v2448_v29 = vmul.f32 %v2314_v28, %v2314_v28  ;;  %v2315_v11 = vmax.f32 %v2226_v14, 0.0 }
 0x2be   : > { %v2390_v3 = vadd.f32 %v2389_v9, %v2388_v26  ;;  %2349 = vst.msk [vmem:[%s3977_s15 + $0x78] sm:$0xff] %vm245_vm0, %v2317_v5  ;;  %v2451_v53 = vmul.f32 %v2317_v5, %v2317_v5  ;;  %v2495_v36 = vsel %vm245_vm0, %v2450_v15, 0.0  ;;  %v2395_v31 = vsel %vm245_vm0, %v2317_v5, 0.0 }
 0x2bf   : > { %v2491_v47 = vsel %vm245_vm0, %v2448_v29, 0.0  ;;  %2347 = vst.msk [vmem:[%s3977_s15 + $0x68] sm:$0xff] %vm245_vm0, %v2315_v11  ;;  %v2391_v22 = vsel %vm245_vm0, %v2315_v11, 0.0  ;;  %v2449_v12 = vmul.f32 %v2315_v11, %v2315_v11 }
 0x2c0   : > { %v2492_v57 = vadd.f32 %v2491_v47, %v2490_v58  ;;  %v2392_v30 = vadd.f32 %v2391_v22, %v2390_v3  ;;  %v2497_v1 = vsel %vm245_vm0, %v2451_v53, 0.0 }
 0x2c1   : > { %v2493_v55 = vsel %vm245_vm0, %v2449_v12, 0.0 }
 0x2c2   : > { %v2394_v63 = vadd.f32 %v2393_v50, %v2392_v30  ;;  %v2494_v40 = vadd.f32 %v2493_v55, %v2492_v57 }
 0x2c4   : > { %v2496_v56 = vadd.f32 %v2495_v36, %v2494_v40  ;;  %v2396_v62 = vadd.f32 %v2395_v31, %v2394_v63 }
 0x2c6   : > { %v2498_v23 = vadd.f32 %v2497_v1, %v2496_v56 }
 0x2e9   : > { %v2769_v49 = vpop.f32.mrb[0].mxu1 }
 0x2ea   : > { %v2320_v37 = vmax.f32 %v2769_v49, 0.0  ;;  %v2239_v4 = vpop.f32.mrb[1].mxu1 }
 0x2eb   : > { %v2318_v51 = vmax.f32 %v2239_v4, 0.0  ;;  %v2770_v59 = vpop.f32.mrb[2].mxu1 }
 0x2ec   : > { %2352 = vst.msk [vmem:[%s3977_s15 + $0x90] sm:$0xff] %vm245_vm0, %v2320_v37  ;;  %v2321_v32 = vmax.f32 %v2770_v59, 0.0  ;;  %v2242_v52 = vpop.f32.mrb[3].mxu1  ;;  %v2454_v18 = vmul.f32 %v2320_v37, %v2320_v37  ;;  %v2401_v39 = vsel %vm245_vm0, %v2320_v37, 0.0 }
 0x2ed   : > { %2350 = vst.msk [vmem:[%s3977_s15 + $0x80] sm:$0xff] %vm245_vm0, %v2318_v51  ;;  %v2397_v24 = vsel %vm245_vm0, %v2318_v51, 0.0  ;;  %v2452_v44 = vmul.f32 %v2318_v51, %v2318_v51  ;;  %v2319_v54 = vmax.f32 %v2242_v52, 0.0 }
 0x2ee   : > { %v2398_v17 = vadd.f32 %v2397_v24, %v2396_v62  ;;  %2353 = vst.msk [vmem:[%s3977_s15 + $0x98] sm:$0xff] %vm245_vm0, %v2321_v32  ;;  %v2455_v13 = vmul.f32 %v2321_v32, %v2321_v32  ;;  %v2503_v41 = vsel %vm245_vm0, %v2454_v18, 0.0  ;;  %v2403_v60 = vsel %vm245_vm0, %v2321_v32, 0.0 }
 0x2ef   : > { %v2499_v38 = vsel %vm245_vm0, %v2452_v44, 0.0  ;;  %2351 = vst.msk [vmem:[%s3977_s15 + $0x88] sm:$0xff] %vm245_vm0, %v2319_v54  ;;  %v2399_v33 = vsel %vm245_vm0, %v2319_v54, 0.0  ;;  %v2453_v6 = vmul.f32 %v2319_v54, %v2319_v54 }
 0x2f0   : > { %v2500_v42 = vadd.f32 %v2499_v38, %v2498_v23  ;;  %v2400_v25 = vadd.f32 %v2399_v33, %v2398_v17  ;;  %v2505_v46 = vsel %vm245_vm0, %v2455_v13, 0.0 }
 0x2f1   : > { %v2501_v20 = vsel %vm245_vm0, %v2453_v6, 0.0 }
 0x2f2   : > { %v2402_v8 = vadd.f32 %v2401_v39, %v2400_v25  ;;  %v2502_v43 = vadd.f32 %v2501_v20, %v2500_v42 }
 0x2f4   : > { %v2504_v61 = vadd.f32 %v2503_v41, %v2502_v43  ;;  %v2404_v26 = vadd.f32 %v2403_v60, %v2402_v8 }
 0x2f6   : > { %v2506_v58 = vadd.f32 %v2505_v46, %v2504_v61 }
 0x319   : > { %v2773_v19 = vpop.f32.mrb[4].mxu1 }
 0x31a   : > { %v2324_v7 = vmax.f32 %v2773_v19, 0.0  ;;  %v2255_v27 = vpop.f32.mrb[5].mxu1 }
 0x31b   : > { %v2322_v0 = vmax.f32 %v2255_v27, 0.0  ;;  %v2774_v21 = vpop.f32.mrb[6].mxu1 }
 0x31c   : > { %2356 = vst.msk [vmem:[%s3977_s15 + $0xb0] sm:$0xff] %vm245_vm0, %v2324_v7  ;;  %v2325_v34 = vmax.f32 %v2774_v21, 0.0  ;;  %v2258_v10 = vpop.f32.mrb[7].mxu1  ;;  %v2458_v28 = vmul.f32 %v2324_v7, %v2324_v7  ;;  %v2409_v11 = vsel %vm245_vm0, %v2324_v7, 0.0 }
 0x31d   : > { %2354 = vst.msk [vmem:[%s3977_s15 + $0xa0] sm:$0xff] %vm245_vm0, %v2322_v0  ;;  %v2405_v45 = vsel %vm245_vm0, %v2322_v0, 0.0  ;;  %v2456_v16 = vmul.f32 %v2322_v0, %v2322_v0  ;;  %v2323_v2 = vmax.f32 %v2258_v10, 0.0 }
 0x31e   : > { %v2406_v35 = vadd.f32 %v2405_v45, %v2404_v26  ;;  %2357 = vst.msk [vmem:[%s3977_s15 + $0xb8] sm:$0xff] %vm245_vm0, %v2325_v34  ;;  %v2459_v3 = vmul.f32 %v2325_v34, %v2325_v34  ;;  %v2511_v12 = vsel %vm245_vm0, %v2458_v28, 0.0  ;;  %v2411_v57 = vsel %vm245_vm0, %v2325_v34, 0.0 }
 0x31f   : > { %v2507_v48 = vsel %vm245_vm0, %v2456_v16, 0.0  ;;  %2355 = vst.msk [vmem:[%s3977_s15 + $0xa8] sm:$0xff] %vm245_vm0, %v2323_v2  ;;  %v2407_v5 = vsel %vm245_vm0, %v2323_v2, 0.0  ;;  %v2457_v14 = vmul.f32 %v2323_v2, %v2323_v2 }
 0x320   : > { %v2508_v9 = vadd.f32 %v2507_v48, %v2506_v58  ;;  %v2408_v29 = vadd.f32 %v2407_v5, %v2406_v35  ;;  %v2513_v53 = vsel %vm245_vm0, %v2459_v3, 0.0 }
 0x321   : > { %v2509_v15 = vsel %vm245_vm0, %v2457_v14, 0.0 }
 0x322   : > { %v2410_v47 = vadd.f32 %v2409_v11, %v2408_v29  ;;  %v2510_v22 = vadd.f32 %v2509_v15, %v2508_v9 }
 0x324   : > { %v2512_v30 = vadd.f32 %v2511_v12, %v2510_v22  ;;  %v2412_v50 = vadd.f32 %v2411_v57, %v2410_v47 }
 0x326   : > { %v2514_v55 = vadd.f32 %v2513_v53, %v2512_v30 }
 0x349   : > { %v2777_v63 = vpop.f32.mrb[8].mxu1 }
 0x34a   : > { %v2328_v40 = vmax.f32 %v2777_v63, 0.0  ;;  %v2271_v36 = vpop.f32.mrb[9].mxu1 }
 0x34b   : > { %v2326_v31 = vmax.f32 %v2271_v36, 0.0  ;;  %v2778_v56 = vpop.f32.mrb[10].mxu1 }
 0x34c   : > { %2360 = vst.msk [vmem:[%s3977_s15 + $0xd0] sm:$0xff] %vm245_vm0, %v2328_v40  ;;  %v2329_v62 = vmax.f32 %v2778_v56, 0.0  ;;  %v2274_v1 = vpop.f32.mrb[11].mxu1  ;;  %v2462_v51 = vmul.f32 %v2328_v40, %v2328_v40  ;;  %v2417_v54 = vsel %vm245_vm0, %v2328_v40, 0.0 }
 0x34d   : > { %2358 = vst.msk [vmem:[%s3977_s15 + $0xc0] sm:$0xff] %vm245_vm0, %v2326_v31  ;;  %v2413_v23 = vsel %vm245_vm0, %v2326_v31, 0.0  ;;  %v2460_v49 = vmul.f32 %v2326_v31, %v2326_v31  ;;  %v2327_v37 = vmax.f32 %v2274_v1, 0.0 }
 0x34e   : > { %v2414_v4 = vadd.f32 %v2413_v23, %v2412_v50  ;;  %2361 = vst.msk [vmem:[%s3977_s15 + $0xd8] sm:$0xff] %vm245_vm0, %v2329_v62  ;;  %v2463_v17 = vmul.f32 %v2329_v62, %v2329_v62  ;;  %v2519_v6 = vsel %vm245_vm0, %v2462_v51, 0.0  ;;  %v2419_v42 = vsel %vm245_vm0, %v2329_v62, 0.0 }
 0x34f   : > { %v2515_v59 = vsel %vm245_vm0, %v2460_v49, 0.0  ;;  %2359 = vst.msk [vmem:[%s3977_s15 + $0xc8] sm:$0xff] %vm245_vm0, %v2327_v37  ;;  %v2415_v32 = vsel %vm245_vm0, %v2327_v37, 0.0  ;;  %v2461_v52 = vmul.f32 %v2327_v37, %v2327_v37 }
 0x350   : > { %v2516_v24 = vadd.f32 %v2515_v59, %v2514_v55  ;;  %v2416_v44 = vadd.f32 %v2415_v32, %v2414_v4  ;;  %v2521_v13 = vsel %vm245_vm0, %v2463_v17, 0.0 }
 0x351   : > { %v2517_v18 = vsel %vm245_vm0, %v2461_v52, 0.0 }
 0x352   : > { %v2418_v38 = vadd.f32 %v2417_v54, %v2416_v44  ;;  %v2518_v33 = vadd.f32 %v2517_v18, %v2516_v24 }
 0x354   : > { %v2520_v25 = vadd.f32 %v2519_v6, %v2518_v33  ;;  %v2420_v39 = vadd.f32 %v2419_v42, %v2418_v38 }
 0x356   : > { %v2522_v20 = vadd.f32 %v2521_v13, %v2520_v25 }
 0x379   : > { %v2781_v8 = vpop.f32.mrb[12].mxu1 }
 0x37a   : > { %v2332_v43 = vmax.f32 %v2781_v8, 0.0  ;;  %v2287_v41 = vpop.f32.mrb[13].mxu1 }
 0x37b   : > { %v2330_v60 = vmax.f32 %v2287_v41, 0.0  ;;  %v2782_v61 = vpop.f32.mrb[14].mxu1 }
 0x37c   : > { %2364 = vst.msk [vmem:[%s3977_s15 + $0xf0] sm:$0xff] %vm245_vm0, %v2332_v43  ;;  %v2333_v26 = vmax.f32 %v2782_v61, 0.0  ;;  %v2290_v46 = vpop.f32.mrb[15].mxu1  ;;  %v2466_v0 = vmul.f32 %v2332_v43, %v2332_v43  ;;  %v2425_v2 = vsel %vm245_vm0, %v2332_v43, 0.0 }
 0x37d   : > { %2362 = vst.msk [vmem:[%s3977_s15 + $0xe0] sm:$0xff] %vm245_vm0, %v2330_v60  ;;  %v2421_v58 = vsel %vm245_vm0, %v2330_v60, 0.0  ;;  %v2464_v19 = vmul.f32 %v2330_v60, %v2330_v60  ;;  %v2331_v7 = vmax.f32 %v2290_v46, 0.0 }
 0x37e   : > { %v2422_v27 = vadd.f32 %v2421_v58, %v2420_v39  ;;  %2365 = vst.msk [vmem:[%s3977_s15 + $0xf8] sm:$0xff] %vm245_vm0, %v2333_v26  ;;  %v2467_v35 = vmul.f32 %v2333_v26, %v2333_v26  ;;  %v2527_v14 = vsel %vm245_vm0, %v2466_v0, 0.0  ;;  %v2427_v9 = vsel %vm245_vm0, %v2333_v26, 0.0 }
 0x37f   : > { %v2523_v21 = vsel %vm245_vm0, %v2464_v19, 0.0  ;;  %2363 = vst.msk [vmem:[%s3977_s15 + $0xe8] sm:$0xff] %vm245_vm0, %v2331_v7  ;;  %v2423_v34 = vsel %vm245_vm0, %v2331_v7, 0.0  ;;  %v2465_v10 = vmul.f32 %v2331_v7, %v2331_v7  ;;  %s2860_s15 = scalar_lea.vmem %s2859_s14, 32 }
 0x380   : > { %v2524_v45 = vadd.f32 %v2523_v21, %v2522_v20  ;;  %v2424_v16 = vadd.f32 %v2423_v34, %v2422_v27  ;;  %v2529_v3 = vsel %vm245_vm0, %v2467_v35, 0.0  ;;  %p2862_p1 = scmp.lt.s32.totalorder %s2860_s15, %s2854_s9 }
 0x381   : > { %v2525_v28 = vsel %vm245_vm0, %v2465_v10, 0.0 }
 0x382   : > { %v2426_v48 = vadd.f32 %v2425_v2, %v2424_v16  ;;  %v2526_v5 = vadd.f32 %v2525_v28, %v2524_v45  ;;  %p2863_p2 = por %p2862_p1, %p2861_p0 }
 0x384   : > { %v2428_v29 = vadd.f32 %v2427_v9, %v2426_v48  ;;  %v2528_v11 = vadd.f32 %v2527_v14, %v2526_v5  ;;  %p2864_p3 = pnand %p2863_p2, %p2857_p13 }
 0x386   : > { %v2429_v15 = vrot.slane %v2428_v29, 4  ;;  %v2530_v47 = vadd.f32 %v2529_v3, %v2528_v11 }
 0x388   : > { %v2430_v22 = vadd.f32 %v2429_v15, %v2428_v29  ;;  %v2531_v12 = vrot.slane %v2530_v47, 4 }
 0x38a   : > { %v2431_v57 = vrot.slane %v2430_v22, 2  ;;  %v2532_v30 = vadd.f32 %v2531_v12, %v2530_v47 }
 0x38c   : > { %v2432_v50 = vadd.f32 %v2431_v57, %v2430_v22  ;;  %v2533_v53 = vrot.slane %v2532_v30, 2 }
 0x38e   : > { %v2433_v55 = vrot.slane %v2432_v50, 1  ;;  %v2534_v63 = vadd.f32 %v2533_v53, %v2532_v30 }
 0x390   : > { %v2434_v40 = vadd.f32 %v2433_v55, %v2432_v50  ;;  %v2535_v36 = vrot.slane %v2534_v63, 1 }
 0x392   : > { %2435 = vst.msk [vmem:[%s227_s16] sm:$0x1] %vm254_vm1, %v2434_v40  ;;  %v2536_v31 = vadd.f32 %v2535_v36, %v2534_v63 }
 0x393   : > { %2867 = shalt.err (!%p2864_p3)
}
 0x394   : > { %s2868_s8 = scalar_lea.hbm %s4182_s23, 16  ;;  %s2872_s13 = scalar_lea.hbm %s4262_s4, 32 }
 0x395   : > { %p2869_p4 = scmp.ne.s32.totalorder %s4182_s23, %s2868_s8  ;;  %p2873_p9 = scmp.lt.u32.totalorder %s4182_s23, %s4262_s4 }
 0x396   : > { %p2874_p10 = scmp.lt.u32.totalorder %s2872_s13, %s2868_s8  ;;  %p2876_p12 = scmp.lt.u32.totalorder %s2868_s8, %s4182_s23 }
 0x397   : > { %p2870_p7 = pnand %p2869_p4, %p3029_p5 }
 0x398   : > { %p2875_p11 = por %p2874_p10, %p2873_p9 }
 0x399   : > { %p2871_p8 = pneg %p2870_p7 }
 0x39a   : > { %p2877_p13 = por %p2876_p12, %p2875_p11 }
 0x39c   : > { %p2878_p0 = pnand %p2877_p13, %p2871_p8 }
 0x39e   : > { %2881 = shalt.err (!%p2878_p0)
}
 0x39f   : > { %2795 = dma.vmem_to_hbm [thread:$0]  (%p3029_p5), %s4184_s17, 16, %s4182_s23, %s2544_s6   ;;  %2537 = vst.msk [vmem:[%s233_s7] sm:$0x1] %vm254_vm1, %v2536_v31 }
 0x3a0   : > { %s2548_s9 = scalar_lea.sflag [#allocation7], %s4172_s30  ;;  %s2882_s11 = scalar_lea.vmem %s4192_s10, 16 }
 0x3a1   : > { %p2883_p1 = scmp.ne.s32.totalorder %s4192_s10, %s2882_s11  ;;  %s2960_s14 = smov [#allocation6]  }
 0x3a2   : > { %s2886_s15 = sshll.u32 %s2960_s14, 4  ;;  %s2887_s15 = int_to_ptr.vmem [resolvable:$false] %s2886_s15 }
 0x3a3   : > { %p2884_p2 = pnand %p2883_p1, %p3029_p5  ;;  %s2888_s8 = scalar_lea.vmem %s2887_s15, 32 }
 0x3a4   : > { %p2889_p4 = scmp.lt.s32.totalorder %s4192_s10, %s2887_s15  ;;  %p2890_p7 = scmp.lt.s32.totalorder %s2888_s8, %s2882_s11 }
 0x3a5   : > { %p2885_p3 = pneg %p2884_p2 }
 0x3a6   : > { %p2891_p8 = por %p2890_p7, %p2889_p4 }
 0x3a8   : > { %p2892_p9 = pnand %p2891_p8, %p2885_p3 }
 0x3aa   : > { %2895 = shalt.err (!%p2892_p9)
}
 0x3ab   : > { %s2896_s30 = scalar_lea.hbm %s4190_s26, 16  ;;  %s2900_s23 = scalar_lea.hbm %s4263_s5, 32 }
 0x3ac   : > { %p2897_p10 = scmp.ne.s32.totalorder %s4190_s26, %s2896_s30  ;;  %p2901_p13 = scmp.lt.u32.totalorder %s4190_s26, %s4263_s5 }
 0x3ad   : > { %p2902_p0 = scmp.lt.u32.totalorder %s2900_s23, %s2896_s30  ;;  %p2904_p2 = scmp.lt.u32.totalorder %s2896_s30, %s4190_s26 }
 0x3ae   : > { %p2898_p11 = pnand %p2897_p10, %p3029_p5 }
 0x3af   : > { %p2903_p1 = por %p2902_p0, %p2901_p13 }
 0x3b0   : > { %p2899_p12 = pneg %p2898_p11 }
 0x3b1   : > { %p2905_p3 = por %p2904_p2, %p2903_p1 }
 0x3b3   : > { %p2906_p4 = pnand %p2905_p3, %p2899_p12 }
 0x3b5   : > { %2909 = shalt.err (!%p2906_p4)
}
 0x3b6   : > { %2796 = dma.vmem_to_hbm [thread:$0]  (%p3029_p5), %s4192_s10, 16, %s4190_s26, %s2548_s9  }
 0x3b7 PF: > { %p2806_p7 = scmp.ge.s32.totalorder %s2948_s21, 2  ;;  %s2596_s12 = sand.u32 1, %s2936_s18  }
 0x3b8   : > { %s2597_s13 = scalar_lea.sflag [#allocation5], %s2596_s12 }
 0x3b9   : > { %p2800_p8 = pnand %p2806_p7, %p3033_p6 }
 0x3bb   : > { %2927 = dma.done.wait (!%p2800_p8), %s2597_s13, 16  }
 0x3bc   : > { %2929 = vsyncadd (!%p2800_p8), %s2597_s13, 4294967280  ;;  %s2605_s22 = scalar_lea.sflag [#allocation7], %s2596_s12 }
 0x3bd   : > { %2931 = dma.done.wait (!%p2800_p8), %s2605_s22, 16  }
 0x3be   : > { %2933 = vsyncadd (!%p2800_p8), %s2605_s22, 4294967280  ;;  %p19_p5 = scmp.ge.s32.totalorder %s3016_s24, 4   ;;  %s4266_s18 = smov %s2940_s19 }
 0x3bf   : > { %s4267_s19 = smov %s2944_s20  ;;  %s4268_s20 = smov %s3027_s27 }
 0x3c0   : > { %s4269_s21 = smov %s3016_s24  ;;  %21 = sbr.rel (!%p19_p5) target bundleno = 5 (0x5), region = 99 }
 0x3c7   :  { %2609 = vsyncpa [#allocation5], 1 }
 0x3c8   :  { %2611 = vsyncpa [#allocation5 + $0x1], 1 }
 0x3c9   :  { %2612 = vsyncpa [#allocation7], 1 }
 0x3ca   :  { %2614 = vsyncpa [#allocation7 + $0x1], 1 }

// kernel: conv_block_forward.2
= control target key start
LH: loop header
LB: loop body
LE: loop exit
PB: predicated region body
PF: predicated region fallthrough
CT: control target
= control target key end

     0   :  { %s2793_s18 = smov 0   ;;  %s3939_s0 = inlined_call_operand.vmem [shape: f32[2,16,16,4], index: 0, kind: input, shape index: {}]   ;;  %s3940_s1 = inlined_call_operand.vmem [shape: f32[1,4], index: 1, kind: input, shape index: {}]   ;;  %s3941_s2 = inlined_call_operand.vmem [shape: bf16[36,8], index: 2, kind: input, shape index: {}]   ;;  %s3942_s3 = inlined_call_operand.vmem [shape: f32[2,256,8], index: 3, kind: output, shape index: {0}]   ;;  %s3943_s4 = inlined_call_operand.vmem [shape: f32[2,1,8], index: 4, kind: output, shape index: {1}]   ;;  %s3944_s5 = inlined_call_operand.vmem [shape: f32[2,1,8], index: 5, kind: output, shape index: {2}]  }
   0x1 LB: > { %s2627_s19 = sadd.s32 4294967295, %s2752_s18   ;;  %p2631_p0 = scmp.ge.s32.totalorder %s2752_s18, 1  ;;  %s2752_s18 = sphi %s2793_s18, %s16_s18  }
   0x2   : > { %p192_p1 = scmp.lt.s32.totalorder %s2752_s18, 3 }
   0x4   : > { %p193_p2 = pnand %p2631_p0, %p192_p1 }
   0x5   : > { %vm243_vm0 = vcmask (!%p193_p2), 31744   ;;  %vm252_vm1 = vcmask (!%p193_p2), 24576   ;;  %vm246_vm2 = vcmask (!%p193_p2), 25600   ;;  %p2803_p3 = scmp.lt.s32.totalorder (!%p193_p2), %s2627_s19, 1  ;;  %v2754_v0 = vmov (!%p193_p2), 0.0   ;;  %s2755_s27 = smov (!%p193_p2), 4  }
   0x6   : > { %196 = sbr.rel (%p193_p2) target bundleno = 907 (0x38b), region = 32  ;;  %244 = vst.msk [vmem:[#allocation2] sm:$0xff] (!%p193_p2), %vm243_vm0, %v2754_v0  ;;  %245 = vst.msk [vmem:[#allocation2 + $0x8] sm:$0xff] (!%p193_p2), %vm243_vm0, %v2754_v0  ;;  %v2859_v1 = vld [vmem:[%s3940_s1] ss:$0 sm:$0xff] (!%p193_p2)  ;;  %s2756_s28 = smov (!%p193_p2), 8  }
   0x7   : > { %249 = vst.msk [vmem:[#allocation2 + $0x198] sm:$0xff] (!%p193_p2), %vm243_vm0, %v2754_v0  ;;  %250 = vst.msk [vmem:[#allocation2 + $0x1a0] sm:$0xff] (!%p193_p2), %vm243_vm0, %v2754_v0  ;;  %vm617_vm3 = vcmask (!%p193_p2), 64544   ;;  %s2757_s29 = smov (!%p193_p2), 12   ;;  %s2758_s30 = smov (!%p193_p2), 16   ;;  %vm810_vm4 = vcmask (!%p193_p2), 97344  }
   0x8   : > { %254 = vst.msk [vmem:[#allocation2 + $0x18] sm:$0x1] (!%p193_p2), %vm252_vm1, %v2754_v0  ;;  %255 = vst.msk [vmem:[#allocation2 + $0x30] sm:$0x1] (!%p193_p2), %vm252_vm1, %v2754_v0  ;;  %s2759_s6 = smov (!%p193_p2), 20   ;;  %s2760_s7 = smov (!%p193_p2), 24  }
   0x9   : > { %256 = vst.msk [vmem:[#allocation2 + $0x48] sm:$0x1] (!%p193_p2), %vm252_vm1, %v2754_v0  ;;  %257 = vst.msk [vmem:[#allocation2 + $0x60] sm:$0x1] (!%p193_p2), %vm252_vm1, %v2754_v0  ;;  %s2761_s10 = smov (!%p193_p2), 28   ;;  %s2762_s15 = smov (!%p193_p2), 32  }
   0xa   : > { %258 = vst.msk [vmem:[#allocation2 + $0x78] sm:$0x1] (!%p193_p2), %vm252_vm1, %v2754_v0  ;;  %259 = vst.msk [vmem:[#allocation2 + $0x90] sm:$0x1] (!%p193_p2), %vm252_vm1, %v2754_v0  ;;  %vm2119_vm5 = vcmask (!%p193_p2), 1041408   ;;  %vm1003_vm6 = vcmask (!%p193_p2), 130144  }
   0xb   : > { %260 = vst.msk [vmem:[#allocation2 + $0xa8] sm:$0x1] (!%p193_p2), %vm252_vm1, %v2754_v0  ;;  %261 = vst.msk [vmem:[#allocation2 + $0xc0] sm:$0x1] (!%p193_p2), %vm252_vm1, %v2754_v0  ;;  %vm1196_vm7 = vcmask (!%p193_p2), 162944   ;;  %vm1389_vm8 = vcmask (!%p193_p2), 195744  }
   0xc   : > { %262 = vst.msk [vmem:[#allocation2 + $0xd8] sm:$0x1] (!%p193_p2), %vm252_vm1, %v2754_v0  ;;  %263 = vst.msk [vmem:[#allocation2 + $0xf0] sm:$0x1] (!%p193_p2), %vm252_vm1, %v2754_v0  ;;  %vm1583_vm9 = vcmask (!%p193_p2), 228544   ;;  %vm1776_vm10 = vcmask (!%p193_p2), 261344  }
   0xd   : > { %264 = vst.msk [vmem:[#allocation2 + $0x108] sm:$0x1] %vm252_vm1, %v2754_v0  ;;  %265 = vst.msk [vmem:[#allocation2 + $0x120] sm:$0x1] %vm252_vm1, %v2754_v0  ;;  %s3947_s19 = smov (!%p2803_p3, %s2627_s19), 1  ;;  %v457_v11 = vld [vmem:[#allocation2 + $0x1] sm:$0xff] }
   0xe   : > { %266 = vst.msk [vmem:[#allocation2 + $0x138] sm:$0x1] %vm252_vm1, %v2754_v0  ;;  %267 = vst.msk [vmem:[#allocation2 + $0x150] sm:$0x1] %vm252_vm1, %v2754_v0  ;;  %s2658_s21 = sshll.u32 %s3947_s19, 8  ;;  %521 = vrot.lane.b32.xlu0 %v457_v11, %s2755_s27  ;;  %vm1969_vm11 = vcmask 294144   ;;  %s238_s25 = scalar_lea.vmem %s3943_s4, %s3947_s19 }
   0xf   : > { %268 = vst.msk [vmem:[#allocation2 + $0x168] sm:$0x1] %vm252_vm1, %v2754_v0  ;;  %269 = vst.msk [vmem:[#allocation2 + $0x180] sm:$0x1] %vm252_vm1, %v2754_v0  ;;  %s2866_s26 = scalar_lea.vmem %s3939_s0, %s2658_s21  ;;  %vm2070_vm12 = vcmask 293888   ;;  %s3734_s23 = scalar_lea.vmem %s3942_s3, %s2658_s21  ;;  %vm2316_vm13 = vcmask 64512  }
  0x10   : > { %272 = vst.msk [vmem:[#allocation2 + $0x29] sm:$0x1] %vm252_vm1, %v2754_v0  ;;  %273 = vst.msk [vmem:[#allocation2 + $0x41] sm:$0x1] %vm252_vm1, %v2754_v0  ;;  %v289_v2 = vld [vmem:[%s2866_s26] sm:$0xff]  ;;  %v291_v3 = vld [vmem:[%s2866_s26 + $0x10] sm:$0xff] }
  0x11   : > { %274 = vst.msk [vmem:[#allocation2 + $0x59] sm:$0x1] %vm252_vm1, %v2754_v0  ;;  %275 = vst.msk [vmem:[#allocation2 + $0x71] sm:$0x1] %vm252_vm1, %v2754_v0  ;;  %v290_v4 = vld [vmem:[%s2866_s26 + $0x8] sm:$0xff]  ;;  %v328_v5 = vadd.f32 %v2859_v1, %v289_v2  ;;  %v330_v6 = vadd.f32 %v2859_v1, %v291_v3  ;;  %v293_v8 = vld [vmem:[%s2866_s26 + $0x20] sm:$0xff] }
  0x12   : > { %276 = vst.msk [vmem:[#allocation2 + $0x89] sm:$0x1] %vm252_vm1, %v2754_v0  ;;  %277 = vst.msk [vmem:[#allocation2 + $0xa1] sm:$0x1] %vm252_vm1, %v2754_v0  ;;  %v329_v7 = vadd.f32 %v2859_v1, %v290_v4  ;;  %v292_v9 = vld [vmem:[%s2866_s26 + $0x18] sm:$0xff]  ;;  %v295_v10 = vld [vmem:[%s2866_s26 + $0x30] sm:$0xff]  ;;  %v332_v13 = vadd.f32 %v2859_v1, %v293_v8 }
  0x13   : > { %278 = vst.msk [vmem:[#allocation2 + $0xb9] sm:$0x1] %vm252_vm1, %v2754_v0  ;;  %279 = vst.msk [vmem:[#allocation2 + $0xd1] sm:$0x1] %vm252_vm1, %v2754_v0  ;;  %v331_v14 = vadd.f32 %v2859_v1, %v292_v9  ;;  %v334_v15 = vadd.f32 %v2859_v1, %v295_v10  ;;  %v294_v16 = vld [vmem:[%s2866_s26 + $0x28] sm:$0xff]  ;;  %v297_v18 = vld [vmem:[%s2866_s26 + $0x40] sm:$0xff] }
  0x14   : > { %280 = vst.msk [vmem:[#allocation2 + $0xe9] sm:$0x1] %vm252_vm1, %v2754_v0  ;;  %281 = vst.msk [vmem:[#allocation2 + $0x101] sm:$0x1] %vm252_vm1, %v2754_v0  ;;  %v333_v17 = vadd.f32 %v2859_v1, %v294_v16  ;;  %v296_v19 = vld [vmem:[%s2866_s26 + $0x38] sm:$0xff]  ;;  %v299_v20 = vld [vmem:[%s2866_s26 + $0x50] sm:$0xff]  ;;  %v336_v21 = vadd.f32 %v2859_v1, %v297_v18 }
  0x15   : > { %282 = vst.msk [vmem:[#allocation2 + $0x119] sm:$0x1] %vm252_vm1, %v2754_v0  ;;  %283 = vst.msk [vmem:[#allocation2 + $0x131] sm:$0x1] %vm252_vm1, %v2754_v0  ;;  %v335_v22 = vadd.f32 %v2859_v1, %v296_v19  ;;  %v338_v23 = vadd.f32 %v2859_v1, %v299_v20  ;;  %v298_v24 = vld [vmem:[%s2866_s26 + $0x48] sm:$0xff]  ;;  %v301_v25 = vld [vmem:[%s2866_s26 + $0x60] sm:$0xff] }
  0x16   : > { %284 = vst.msk [vmem:[#allocation2 + $0x149] sm:$0x1] %vm252_vm1, %v2754_v0  ;;  %285 = vst.msk [vmem:[#allocation2 + $0x161] sm:$0x1] %vm252_vm1, %v2754_v0  ;;  %v300_v26 = vld [vmem:[%s2866_s26 + $0x58] sm:$0xff]  ;;  %v337_v27 = vadd.f32 %v2859_v1, %v298_v24  ;;  %v340_v28 = vadd.f32 %v2859_v1, %v301_v25  ;;  %v303_v30 = vld [vmem:[%s2866_s26 + $0x70] sm:$0xff] }
  0x17   : > { %286 = vst.msk [vmem:[#allocation2 + $0x179] sm:$0x1] %vm252_vm1, %v2754_v0  ;;  %287 = vst.msk [vmem:[#allocation2 + $0x191] sm:$0x1] %vm252_vm1, %v2754_v0  ;;  %v339_v29 = vadd.f32 %v2859_v1, %v300_v26  ;;  %v302_v31 = vld [vmem:[%s2866_s26 + $0x68] sm:$0xff]  ;;  %v305_v32 = vld [vmem:[%s2866_s26 + $0x80] sm:$0xff]  ;;  %v342_v33 = vadd.f32 %v2859_v1, %v303_v30 }
  0x18   : > { %247 = vst.msk [vmem:[#allocation2 + $0x10] sm:$0x3] %vm246_vm2, %v2754_v0  ;;  %251 = vst.msk [vmem:[#allocation2 + $0x1a8] sm:$0x3] %vm246_vm2, %v2754_v0  ;;  %v341_v34 = vadd.f32 %v2859_v1, %v302_v31  ;;  %v344_v35 = vadd.f32 %v2859_v1, %v305_v32  ;;  %v304_v36 = vld [vmem:[%s2866_s26 + $0x78] sm:$0xff]  ;;  %v307_v37 = vld [vmem:[%s2866_s26 + $0x90] sm:$0xff] }
  0x19   : > { %253 = vst.msk [vmem:[#allocation2] sm:$0x1] %vm252_vm1, %v2754_v0  ;;  %270 = vst.msk [vmem:[#allocation2 + $0x198] sm:$0x1] %vm252_vm1, %v2754_v0  ;;  %v306_v38 = vld [vmem:[%s2866_s26 + $0x88] sm:$0xff]  ;;  %v343_v39 = vadd.f32 %v2859_v1, %v304_v36  ;;  %v346_v40 = vadd.f32 %v2859_v1, %v307_v37  ;;  %v309_v42 = vld [vmem:[%s2866_s26 + $0xa0] sm:$0xff] }
  0x1a   : > { %271 = vst.msk [vmem:[#allocation2 + $0x11] sm:$0x1] %vm252_vm1, %v2754_v0  ;;  %288 = vst.msk [vmem:[#allocation2 + $0x1a9] sm:$0x1] %vm252_vm1, %v2754_v0  ;;  %v345_v41 = vadd.f32 %v2859_v1, %v306_v38  ;;  %v308_v43 = vld [vmem:[%s2866_s26 + $0x98] sm:$0xff]  ;;  %v311_v44 = vld [vmem:[%s2866_s26 + $0xb0] sm:$0xff]  ;;  %v348_v45 = vadd.f32 %v2859_v1, %v309_v42 }
  0x1b   : > { %361 = vst.msk [vmem:[#allocation2 + $0x19] sm:$0xff] %vm243_vm0, %v328_v5  ;;  %363 = vst.msk [vmem:[#allocation2 + $0x31] sm:$0xff] %vm243_vm0, %v330_v6  ;;  %v347_v46 = vadd.f32 %v2859_v1, %v308_v43  ;;  %v350_v47 = vadd.f32 %v2859_v1, %v311_v44  ;;  %v310_v48 = vld [vmem:[%s2866_s26 + $0xa8] sm:$0xff]  ;;  %v313_v49 = vld [vmem:[%s2866_s26 + $0xc0] sm:$0xff]  ;;  %vm2418_vm14 = vcmask 57344  }
  0x1c   : > { %362 = vst.msk [vmem:[#allocation2 + $0x21] sm:$0xff] %vm243_vm0, %v329_v7  ;;  %365 = vst.msk [vmem:[#allocation2 + $0x49] sm:$0xff] %vm243_vm0, %v332_v13  ;;  %v312_v50 = vld [vmem:[%s2866_s26 + $0xb8] sm:$0xff]  ;;  %v349_v51 = vadd.f32 %v2859_v1, %v310_v48  ;;  %v352_v52 = vadd.f32 %v2859_v1, %v313_v49  ;;  %v315_v54 = vld [vmem:[%s2866_s26 + $0xd0] sm:$0xff] }
  0x1d   : > { %364 = vst.msk [vmem:[#allocation2 + $0x39] sm:$0xff] %vm243_vm0, %v331_v14  ;;  %367 = vst.msk [vmem:[#allocation2 + $0x61] sm:$0xff] %vm243_vm0, %v334_v15  ;;  %v351_v53 = vadd.f32 %v2859_v1, %v312_v50  ;;  %v314_v55 = vld [vmem:[%s2866_s26 + $0xc8] sm:$0xff]  ;;  %v317_v56 = vld [vmem:[%s2866_s26 + $0xe0] sm:$0xff]  ;;  %v354_v59 = vadd.f32 %v2859_v1, %v315_v54 }
  0x1e   : > { %366 = vst.msk [vmem:[#allocation2 + $0x51] sm:$0xff] %vm243_vm0, %v333_v17  ;;  %369 = vst.msk [vmem:[#allocation2 + $0x79] sm:$0xff] %vm243_vm0, %v336_v21  ;;  %v353_v60 = vadd.f32 %v2859_v1, %v314_v55  ;;  %v356_v61 = vadd.f32 %v2859_v1, %v317_v56  ;;  %v316_v0 = vld [vmem:[%s2866_s26 + $0xd8] sm:$0xff]  ;;  %v318_v7 = vld [vmem:[%s2866_s26 + $0xe8] sm:$0xff] }
  0x1f   : > { %v458_v12 = vld [vmem:[#allocation2 + $0x9] sm:$0xff]  ;;  %368 = vst.msk [vmem:[#allocation2 + $0x69] sm:$0xff] %vm243_vm0, %v335_v22  ;;  %371 = vst.msk [vmem:[#allocation2 + $0x91] sm:$0xff] %vm243_vm0, %v338_v23  ;;  %v355_v2 = vadd.f32 %v2859_v1, %v316_v0  ;;  %v357_v8 = vadd.f32 %v2859_v1, %v318_v7 }
  0x20   : > { %523 = vrot.lane.b32.xlu0 %v458_v12, %s2755_s27  ;;  %370 = vst.msk [vmem:[#allocation2 + $0x81] sm:$0xff] %vm243_vm0, %v337_v27  ;;  %373 = vst.msk [vmem:[#allocation2 + $0xa9] sm:$0xff] %vm243_vm0, %v340_v28  ;;  %v393_v12 = vld [vmem:[#allocation2] sm:$0xff]  ;;  %v394_v13 = vld [vmem:[#allocation2 + $0x8] sm:$0xff] }
  0x21   : > { %372 = vst.msk [vmem:[#allocation2 + $0x99] sm:$0xff] %vm243_vm0, %v339_v29  ;;  %375 = vst.msk [vmem:[#allocation2 + $0xc1] sm:$0xff] %vm243_vm0, %v342_v33 }
  0x22   : > { %374 = vst.msk [vmem:[#allocation2 + $0xb1] sm:$0xff] %vm243_vm0, %v341_v34  ;;  %377 = vst.msk [vmem:[#allocation2 + $0xd9] sm:$0xff] %vm243_vm0, %v344_v35  ;;  %v2942_v57 = vld [vmem:[#allocation2 + $0x19] sm:$0xff]  ;;  %v2944_v58 = vld [vmem:[#allocation2 + $0x31] sm:$0xff] }
  0x23   : > { %376 = vst.msk [vmem:[#allocation2 + $0xc9] sm:$0xff] %vm243_vm0, %v343_v39  ;;  %379 = vst.msk [vmem:[#allocation2 + $0xf1] sm:$0xff] %vm243_vm0, %v346_v40  ;;  %525 = vrot.lane.b32.xlu1 %v2942_v57, %s2755_s27  ;;  %v2959_v62 = vld [vmem:[#allocation2 + $0x21] sm:$0xff]  ;;  %v2961_v63 = vld [vmem:[#allocation2 + $0x49] sm:$0xff] }
  0x24   : > { %378 = vst.msk [vmem:[#allocation2 + $0xe1] sm:$0xff] %vm243_vm0, %v345_v41  ;;  %381 = vst.msk [vmem:[#allocation2 + $0x109] sm:$0xff] %vm243_vm0, %v348_v45  ;;  %529 = vrot.lane.b32.xlu0 %v2944_v58, %s2755_s27  ;;  %v2973_v3 = vld [vmem:[#allocation2 + $0x39] sm:$0xff]  ;;  %v2975_v4 = vld [vmem:[#allocation2 + $0x61] sm:$0xff] }
  0x25   : > { %380 = vst.msk [vmem:[#allocation2 + $0xf9] sm:$0xff] %vm243_vm0, %v347_v46  ;;  %383 = vst.msk [vmem:[#allocation2 + $0x121] sm:$0xff] %vm243_vm0, %v350_v47  ;;  %v2981_v5 = vld [vmem:[#allocation2 + $0x51] sm:$0xff]  ;;  %v2983_v6 = vld [vmem:[#allocation2 + $0x79] sm:$0xff] }
  0x26   : > { %382 = vst.msk [vmem:[#allocation2 + $0x111] sm:$0xff] %vm243_vm0, %v349_v51  ;;  %385 = vst.msk [vmem:[#allocation2 + $0x139] sm:$0xff] %vm243_vm0, %v352_v52  ;;  %v2992_v9 = vld [vmem:[#allocation2 + $0x69] sm:$0xff]  ;;  %v2994_v10 = vld [vmem:[#allocation2 + $0x91] sm:$0xff] }
  0x27   : > { %384 = vst.msk [vmem:[#allocation2 + $0x129] sm:$0xff] %vm243_vm0, %v351_v53  ;;  %387 = vst.msk [vmem:[#allocation2 + $0x151] sm:$0xff] %vm243_vm0, %v354_v59  ;;  %527 = vrot.lane.b32.xlu1 %v2959_v62, %s2755_s27  ;;  %v3000_v11 = vld [vmem:[#allocation2 + $0x81] sm:$0xff]  ;;  %v471_v1 = vld [vmem:[#allocation2 + $0xa9] sm:$0xff] }
  0x28   : > { %386 = vst.msk [vmem:[#allocation2 + $0x141] sm:$0xff] %vm243_vm0, %v353_v60  ;;  %389 = vst.msk [vmem:[#allocation2 + $0x169] sm:$0xff] %vm243_vm0, %v356_v61  ;;  %533 = vrot.lane.b32.xlu0 %v2961_v63, %s2755_s27  ;;  %v3004_v14 = vld [vmem:[#allocation2 + $0x18] sm:$0xff]  ;;  %v3011_v15 = vld [vmem:[#allocation2 + $0x30] sm:$0xff] }
  0x29   : > { %388 = vst.msk [vmem:[#allocation2 + $0x159] sm:$0xff] %vm243_vm0, %v355_v2  ;;  %390 = vst.msk [vmem:[#allocation2 + $0x171] sm:$0xff] %vm243_vm0, %v357_v8  ;;  %v3013_v16 = vld [vmem:[#allocation2 + $0x20] sm:$0xff]  ;;  %v3021_v19 = vld [vmem:[#allocation2 + $0x48] sm:$0xff] }
  0x2a   : > { %425 = vst.msk [vmem:[#allocation3] sm:$0xff] %vm243_vm0, %v393_v12  ;;  %426 = vst.msk [vmem:[#allocation3 + $0x8] sm:$0xff] %vm243_vm0, %v394_v13  ;;  %v3015_v17 = vld [vmem:[#allocation2 + $0x99] sm:$0xff]  ;;  %v473_v18 = vld [vmem:[#allocation2 + $0xc1] sm:$0xff] }
  0x2b   : > { %531 = vrot.lane.b32.xlu1 %v2973_v3, %s2755_s27  ;;  %427 = vst.msk [vmem:[#allocation3 + $0x10] sm:$0xff] %vm243_vm0, %v3004_v14  ;;  %429 = vst.msk [vmem:[#allocation3 + $0x20] sm:$0xff] %vm243_vm0, %v3011_v15  ;;  %v3025_v20 = vld [vmem:[#allocation2 + $0x38] sm:$0xff]  ;;  %v3027_v21 = vld [vmem:[#allocation2 + $0x60] sm:$0xff] }
  0x2c   : > { %537 = vrot.lane.b32.xlu0 %v2975_v4, %s2755_s27  ;;  %428 = vst.msk [vmem:[#allocation3 + $0x18] sm:$0xff] %vm243_vm0, %v3013_v16  ;;  %431 = vst.msk [vmem:[#allocation3 + $0x30] sm:$0xff] %vm243_vm0, %v3021_v19  ;;  %v3029_v22 = vld [vmem:[#allocation2 + $0xb1] sm:$0xff]  ;;  %v475_v23 = vld [vmem:[#allocation2 + $0xd9] sm:$0xff] }
  0x2d   : > { %430 = vst.msk [vmem:[#allocation3 + $0x28] sm:$0xff] %vm243_vm0, %v3025_v20  ;;  %433 = vst.msk [vmem:[#allocation3 + $0x40] sm:$0xff] %vm243_vm0, %v3027_v21  ;;  %v3035_v24 = vld [vmem:[#allocation2 + $0x50] sm:$0xff]  ;;  %v3037_v25 = vld [vmem:[#allocation2 + $0x78] sm:$0xff] }
  0x2e   : > { %v3039_v26 = vld [vmem:[#allocation2 + $0x68] sm:$0xff]  ;;  %432 = vst.msk [vmem:[#allocation3 + $0x38] sm:$0xff] %vm243_vm0, %v3035_v24  ;;  %435 = vst.msk [vmem:[#allocation3 + $0x50] sm:$0xff] %vm243_vm0, %v3037_v25  ;;  %v3050_v27 = vld [vmem:[#allocation2 + $0x90] sm:$0xff] }
  0x2f   : > { %535 = vrot.lane.b32.xlu1 %v2981_v5, %s2755_s27  ;;  %434 = vst.msk [vmem:[#allocation3 + $0x48] sm:$0xff] %vm243_vm0, %v3039_v26  ;;  %v3052_v28 = vld [vmem:[#allocation2 + $0x80] sm:$0xff]  ;;  %v3054_v29 = vld [vmem:[#allocation2 + $0xa8] sm:$0xff]  ;;  %437 = vst.msk [vmem:[#allocation3 + $0x60] sm:$0xff] %vm243_vm0, %v3050_v27 }
  0x30   : > { %541 = vrot.lane.b32.xlu0 %v2983_v6, %s2755_s27  ;;  %436 = vst.msk [vmem:[#allocation3 + $0x58] sm:$0xff] %vm243_vm0, %v3052_v28  ;;  %439 = vst.msk [vmem:[#allocation3 + $0x70] sm:$0xff] %vm243_vm0, %v3054_v29  ;;  %v3062_v30 = vld [vmem:[#allocation2 + $0x98] sm:$0xff]  ;;  %v3064_v31 = vld [vmem:[#allocation2 + $0xc0] sm:$0xff] }
  0x31   : > { %v3066_v32 = vld [vmem:[#allocation2 + $0xb0] sm:$0xff]  ;;  %438 = vst.msk [vmem:[#allocation3 + $0x68] sm:$0xff] %vm243_vm0, %v3062_v30  ;;  %441 = vst.msk [vmem:[#allocation3 + $0x80] sm:$0xff] %vm243_vm0, %v3064_v31  ;;  %v3074_v33 = vld [vmem:[#allocation2 + $0xd8] sm:$0xff] }
  0x32   : > { %440 = vst.msk [vmem:[#allocation3 + $0x78] sm:$0xff] %vm243_vm0, %v3066_v32  ;;  %v3076_v34 = vld [vmem:[#allocation2 + $0xc8] sm:$0xff]  ;;  %v3078_v35 = vld [vmem:[#allocation2 + $0xf0] sm:$0xff]  ;;  %443 = vst.msk [vmem:[#allocation3 + $0x90] sm:$0xff] %vm243_vm0, %v3074_v33 }
  0x33   : > { %539 = vrot.lane.b32.xlu1 %v2992_v9, %s2755_s27  ;;  %442 = vst.msk [vmem:[#allocation3 + $0x88] sm:$0xff] %vm243_vm0, %v3076_v34  ;;  %445 = vst.msk [vmem:[#allocation3 + $0xa0] sm:$0xff] %vm243_vm0, %v3078_v35  ;;  %v3086_v36 = vld [vmem:[#allocation2 + $0xe0] sm:$0xff]  ;;  %v3088_v37 = vld [vmem:[#allocation2 + $0x108] sm:$0xff] }
  0x34   : > { %545 = vrot.lane.b32.xlu0 %v2994_v10, %s2755_s27  ;;  %v3090_v38 = vld [vmem:[#allocation2 + $0xf8] sm:$0xff]  ;;  %444 = vst.msk [vmem:[#allocation3 + $0x98] sm:$0xff] %vm243_vm0, %v3086_v36  ;;  %447 = vst.msk [vmem:[#allocation3 + $0xb0] sm:$0xff] %vm243_vm0, %v3088_v37  ;;  %v3101_v39 = vld [vmem:[#allocation2 + $0x120] sm:$0xff] }
  0x35   : > { %446 = vst.msk [vmem:[#allocation3 + $0xa8] sm:$0xff] %vm243_vm0, %v3090_v38  ;;  %v3103_v40 = vld [vmem:[#allocation2 + $0x110] sm:$0xff]  ;;  %449 = vst.msk [vmem:[#allocation3 + $0xc0] sm:$0xff] %vm243_vm0, %v3101_v39  ;;  %v419_v43 = vld [vmem:[#allocation2 + $0x138] sm:$0xff] }
  0x36   : > { %v474_v41 = vld [vmem:[#allocation2 + $0xc9] sm:$0xff]  ;;  %v477_v42 = vld [vmem:[#allocation2 + $0xf1] sm:$0xff]  ;;  %448 = vst.msk [vmem:[#allocation3 + $0xb8] sm:$0xff] %vm243_vm0, %v3103_v40  ;;  %v476_v45 = vld [vmem:[#allocation2 + $0xe1] sm:$0xff] }
  0x37   : > { %543 = vrot.lane.b32.xlu1 %v3000_v11, %s2755_s27  ;;  %v3111_v44 = vld [vmem:[#allocation2 + $0x128] sm:$0xff]  ;;  %451 = vst.msk [vmem:[#allocation3 + $0xd0] sm:$0xff] %vm243_vm0, %v419_v43  ;;  %v421_v47 = vld [vmem:[#allocation2 + $0x150] sm:$0xff]  ;;  %v420_v48 = vld [vmem:[#allocation2 + $0x140] sm:$0xff] }
  0x38   : > { %549 = vrot.lane.b32.xlu0 %v471_v1, %s2755_s27  ;;  %v479_v46 = vld [vmem:[#allocation2 + $0x109] sm:$0xff]  ;;  %450 = vst.msk [vmem:[#allocation3 + $0xc8] sm:$0xff] %vm243_vm0, %v3111_v44  ;;  %v478_v49 = vld [vmem:[#allocation2 + $0xf9] sm:$0xff]  ;;  %v481_v50 = vld [vmem:[#allocation2 + $0x121] sm:$0xff] }
  0x39   : > { %453 = vst.msk [vmem:[#allocation3 + $0xe0] sm:$0xff] %vm243_vm0, %v421_v47  ;;  %452 = vst.msk [vmem:[#allocation3 + $0xd8] sm:$0xff] %vm243_vm0, %v420_v48  ;;  %v423_v51 = vld [vmem:[#allocation2 + $0x168] sm:$0xff]  ;;  %v422_v52 = vld [vmem:[#allocation2 + $0x158] sm:$0xff] }
  0x3a   : > { %v480_v53 = vld [vmem:[#allocation2 + $0x111] sm:$0xff]  ;;  %v483_v54 = vld [vmem:[#allocation2 + $0x139] sm:$0xff]  ;;  %455 = vst.msk [vmem:[#allocation3 + $0xf0] sm:$0xff] %vm243_vm0, %v423_v51  ;;  %454 = vst.msk [vmem:[#allocation3 + $0xe8] sm:$0xff] %vm243_vm0, %v422_v52 }
  0x3b   : > { %547 = vrot.lane.b32.xlu1 %v3015_v17, %s2755_s27  ;;  %v424_v55 = vld [vmem:[#allocation2 + $0x170] sm:$0xff]  ;;  %v484_v60 = vld [vmem:[#allocation2 + $0x141] sm:$0xff]  ;;  %v486_v0 = vld [vmem:[#allocation2 + $0x159] sm:$0xff] }
  0x3c   : > { %553 = vrot.lane.b32.xlu0 %v473_v18, %s2755_s27  ;;  %v482_v56 = vld [vmem:[#allocation2 + $0x129] sm:$0xff]  ;;  %v485_v59 = vld [vmem:[#allocation2 + $0x151] sm:$0xff]  ;;  %456 = vst.msk [vmem:[#allocation3 + $0xf8] sm:$0xff] %vm243_vm0, %v424_v55  ;;  %v3133_v8 = vld [vmem:[#allocation2 + $0x1a] sm:$0xff] }
  0x3d   : > { %v487_v61 = vld [vmem:[#allocation2 + $0x169] sm:$0xff]  ;;  %v488_v7 = vld [vmem:[#allocation2 + $0x171] sm:$0xff]  ;;  %v3161_v43 = vld [vmem:[#allocation2 + $0x7a] sm:$0xff] }
  0x3e   : > { %v650_v2 = vld [vmem:[#allocation2 + $0x2] sm:$0xff]  ;;  %v651_v1 = vld [vmem:[#allocation2 + $0xa] sm:$0xff]  ;;  %v3138_v12 = vld [vmem:[#allocation2 + $0x32] sm:$0xff] }
  0x3f   : > { %551 = vrot.lane.b32.xlu1 %v3029_v22, %s2755_s27  ;;  %v3143_v13 = vld [vmem:[#allocation2 + $0x22] sm:$0xff]  ;;  %v3145_v18 = vld [vmem:[#allocation2 + $0x4a] sm:$0xff]  ;;  %v3191_v51 = vld [vmem:[#allocation2 + $0xb2] sm:$0xff] }
  0x40   : > { %557 = vrot.lane.b32.xlu0 %v475_v23, %s2755_s27  ;;  %v3151_v23 = vld [vmem:[#allocation2 + $0x3a] sm:$0xff]  ;;  %v3175_v47 = vld [vmem:[#allocation2 + $0x82] sm:$0xff]  ;;  %v3177_v48 = vld [vmem:[#allocation2 + $0xaa] sm:$0xff] }
  0x41   : > { %v668_v52 = vld [vmem:[#allocation2 + $0xda] sm:$0xff]  ;;  %v669_v55 = vld [vmem:[#allocation2 + $0xe2] sm:$0xff] }
  0x43   : > { %555 = vrot.lane.b32.xlu1 %v474_v41, %s2755_s27  ;;  %v3153_v41 = vld [vmem:[#allocation2 + $0x62] sm:$0xff] }
  0x44   : > { %561 = vrot.lane.b32.xlu0 %v477_v42, %s2755_s27  ;;  %v3159_v42 = vld [vmem:[#allocation2 + $0x52] sm:$0xff] }
  0x47   : > { %559 = vrot.lane.b32.xlu1 %v476_v45, %s2755_s27  ;;  %v3167_v45 = vld [vmem:[#allocation2 + $0x6a] sm:$0xff] }
  0x48   : > { %565 = vrot.lane.b32.xlu0 %v479_v46, %s2755_s27  ;;  %v3169_v46 = vld [vmem:[#allocation2 + $0x92] sm:$0xff] }
  0x4b   : > { %563 = vrot.lane.b32.xlu1 %v478_v49, %s2755_s27  ;;  %v3183_v49 = vld [vmem:[#allocation2 + $0x9a] sm:$0xff] }
  0x4c   : > { %569 = vrot.lane.b32.xlu0 %v481_v50, %s2755_s27  ;;  %v3185_v50 = vld [vmem:[#allocation2 + $0xc2] sm:$0xff] }
  0x4f   : > { %567 = vrot.lane.b32.xlu1 %v480_v53, %s2755_s27  ;;  %v3196_v53 = vld [vmem:[#allocation2 + $0xca] sm:$0xff] }
  0x50   : > { %573 = vrot.lane.b32.xlu0 %v483_v54, %s2755_s27  ;;  %v670_v54 = vld [vmem:[#allocation2 + $0xf2] sm:$0xff] }
  0x53   : > { %571 = vrot.lane.b32.xlu1 %v482_v56, %s2755_s27  ;;  %v672_v56 = vld [vmem:[#allocation2 + $0x10a] sm:$0xff] }
  0x54   : > { %577 = vrot.lane.b32.xlu0 %v485_v59, %s2755_s27  ;;  %v671_v59 = vld [vmem:[#allocation2 + $0xfa] sm:$0xff] }
  0x57   : > { %575 = vrot.lane.b32.xlu1 %v484_v60, %s2755_s27  ;;  %v674_v60 = vld [vmem:[#allocation2 + $0x122] sm:$0xff] }
  0x58   : > { %581 = vrot.lane.b32.xlu0 %v487_v61, %s2755_s27  ;;  %v673_v61 = vld [vmem:[#allocation2 + $0x112] sm:$0xff] }
  0x5b   : > { %579 = vrot.lane.b32.xlu1 %v486_v0, %s2755_s27  ;;  %v676_v0 = vld [vmem:[#allocation2 + $0x13a] sm:$0xff] }
  0x5c   : > { %714 = vrot.lane.b32.xlu0 %v650_v2, %s2756_s28 }
  0x5f   : > { %583 = vrot.lane.b32.xlu1 %v488_v7, %s2755_s27  ;;  %v675_v7 = vld [vmem:[#allocation2 + $0x12a] sm:$0xff] }
  0x60   : > { %718 = vrot.lane.b32.xlu0 %v3133_v8, %s2756_s28 }
  0x63   : > { %716 = vrot.lane.b32.xlu1 %v651_v1, %s2756_s28  ;;  %v678_v1 = vld [vmem:[#allocation2 + $0x152] sm:$0xff] }
  0x64   : > { %722 = vrot.lane.b32.xlu0 %v3138_v12, %s2756_s28 }
  0x67   : > { %720 = vrot.lane.b32.xlu1 %v3143_v13, %s2756_s28 }
  0x68   : > { %726 = vrot.lane.b32.xlu0 %v3145_v18, %s2756_s28 }
  0x6b   : > { %724 = vrot.lane.b32.xlu1 %v3151_v23, %s2756_s28 }
  0x6c   : > { %730 = vrot.lane.b32.xlu0 %v3153_v41, %s2756_s28 }
  0x6f   : > { %728 = vrot.lane.b32.xlu1 %v3159_v42, %s2756_s28 }
  0x70   : > { %734 = vrot.lane.b32.xlu0 %v3161_v43, %s2756_s28 }
  0x73   : > { %732 = vrot.lane.b32.xlu1 %v3167_v45, %s2756_s28 }
  0x74   : > { %738 = vrot.lane.b32.xlu0 %v3169_v46, %s2756_s28 }
  0x77   : > { %736 = vrot.lane.b32.xlu1 %v3175_v47, %s2756_s28 }
  0x78   : > { %742 = vrot.lane.b32.xlu0 %v3177_v48, %s2756_s28 }
  0x7b   : > { %740 = vrot.lane.b32.xlu1 %v3183_v49, %s2756_s28 }
  0x7c   : > { %746 = vrot.lane.b32.xlu0 %v3185_v50, %s2756_s28 }
  0x7f   : > { %744 = vrot.lane.b32.xlu1 %v3191_v51, %s2756_s28 }
  0x80   : > { %750 = vrot.lane.b32.xlu0 %v668_v52, %s2756_s28  ;;  %v522_v2 = vpop.permute.xlu0 %521 }
  0x81   : > { %618 = vst.msk [vmem:[#allocation3] sm:$0xff] %vm617_vm3, %v522_v2  ;;  %v681_v2 = vld [vmem:[#allocation2 + $0x172] sm:$0xff] }
  0x83   : > { %748 = vrot.lane.b32.xlu1 %v3196_v53, %s2756_s28 }
  0x84   : > { %754 = vrot.lane.b32.xlu0 %v670_v54, %s2756_s28  ;;  %v677_v54 = vld [vmem:[#allocation2 + $0x142] sm:$0xff] }
  0x87   : > { %752 = vrot.lane.b32.xlu1 %v669_v55, %s2756_s28  ;;  %v680_v55 = vld [vmem:[#allocation2 + $0x16a] sm:$0xff] }
  0x88   : > { %758 = vrot.lane.b32.xlu0 %v672_v56, %s2756_s28 }
  0x8b   : > { %756 = vrot.lane.b32.xlu1 %v671_v59, %s2756_s28 }
  0x8c   : > { %762 = vrot.lane.b32.xlu0 %v674_v60, %s2756_s28  ;;  %v679_v60 = vld [vmem:[#allocation2 + $0x15a] sm:$0xff] }
  0x8f   : > { %760 = vrot.lane.b32.xlu1 %v673_v61, %s2756_s28 }
  0x90   : > { %766 = vrot.lane.b32.xlu0 %v676_v0, %s2756_s28 }
  0x92   : > { %v524_v52 = vpop.permute.xlu0 %523 }
  0x93   : > { %619 = vst.msk [vmem:[#allocation3 + $0x8] sm:$0xff] %vm617_vm3, %v524_v52  ;;  %764 = vrot.lane.b32.xlu1 %v675_v7, %s2756_s28 }
  0x94   : > { %770 = vrot.lane.b32.xlu0 %v678_v1, %s2756_s28 }
  0x95   : > { %v526_v56 = vpop.permute.xlu1 %525 }
  0x96   : > { %v530_v59 = vpop.permute.xlu0 %529  ;;  %620 = vst.msk [vmem:[#allocation3 + $0x10] sm:$0xff] %vm617_vm3, %v526_v56 }
  0x97   : > { %622 = vst.msk [vmem:[#allocation3 + $0x20] sm:$0xff] %vm617_vm3, %v530_v59  ;;  %768 = vrot.lane.b32.xlu1 %v677_v54, %s2756_s28 }
  0x98   : > { %774 = vrot.lane.b32.xlu0 %v680_v55, %s2756_s28 }
  0x99   : > { %v528_v61 = vpop.permute.xlu1 %527 }
  0x9a   : > { %v534_v0 = vpop.permute.xlu0 %533  ;;  %621 = vst.msk [vmem:[#allocation3 + $0x18] sm:$0xff] %vm617_vm3, %v528_v61 }
  0x9b   : > { %624 = vst.msk [vmem:[#allocation3 + $0x30] sm:$0xff] %vm617_vm3, %v534_v0  ;;  %772 = vrot.lane.b32.xlu1 %v679_v60, %s2756_s28 }
  0x9c   : > { %907 = vrot.lane.b32.xlu0 %v3004_v14, %s2757_s29 }
  0x9d   : > { %v532_v7 = vpop.permute.xlu1 %531 }
  0x9e   : > { %v538_v1 = vpop.permute.xlu0 %537  ;;  %623 = vst.msk [vmem:[#allocation3 + $0x28] sm:$0xff] %vm617_vm3, %v532_v7 }
  0x9f   : > { %626 = vst.msk [vmem:[#allocation3 + $0x40] sm:$0xff] %vm617_vm3, %v538_v1  ;;  %776 = vrot.lane.b32.xlu1 %v681_v2, %s2756_s28  ;;  %s241_s28 = scalar_lea.vmem %s3944_s5, %s3947_s19 }
  0xa0   : > { %911 = vrot.lane.b32.xlu0 %v3011_v15, %s2757_s29 }
  0xa1   : > { %v536_v52 = vpop.permute.xlu1 %535 }
  0xa2   : > { %v542_v54 = vpop.permute.xlu0 %541  ;;  %625 = vst.msk [vmem:[#allocation3 + $0x38] sm:$0xff] %vm617_vm3, %v536_v52 }
  0xa3   : > { %628 = vst.msk [vmem:[#allocation3 + $0x50] sm:$0xff] %vm617_vm3, %v542_v54  ;;  %909 = vrot.lane.b32.xlu1 %v3013_v16, %s2757_s29 }
  0xa4   : > { %915 = vrot.lane.b32.xlu0 %v3021_v19, %s2757_s29 }
  0xa5   : > { %v540_v14 = vpop.permute.xlu1 %539 }
  0xa6   : > { %v546_v55 = vpop.permute.xlu0 %545  ;;  %627 = vst.msk [vmem:[#allocation3 + $0x48] sm:$0xff] %vm617_vm3, %v540_v14 }
  0xa7   : > { %630 = vst.msk [vmem:[#allocation3 + $0x60] sm:$0xff] %vm617_vm3, %v546_v55  ;;  %913 = vrot.lane.b32.xlu1 %v3025_v20, %s2757_s29  ;;  %v2743_v55 = vld [vmem:[%s3941_s2 + $0x8] sm:$0xff]  }
  0xa8   : > { %919 = vrot.lane.b32.xlu0 %v3027_v21, %s2757_s29 }
  0xa9   : > { %v544_v56 = vpop.permute.xlu1 %543 }
  0xaa   : > { %v550_v59 = vpop.permute.xlu0 %549  ;;  %629 = vst.msk [vmem:[#allocation3 + $0x58] sm:$0xff] %vm617_vm3, %v544_v56  ;;  %v2744_v56 = vld [vmem:[%s3941_s2 + $0x10] ss:$0 sps:$4 sm:$0x33]  }
  0xab   : > { %632 = vst.msk [vmem:[#allocation3 + $0x70] sm:$0xff] %vm617_vm3, %v550_v59  ;;  %917 = vrot.lane.b32.xlu1 %v3035_v24, %s2757_s29 }
  0xac   : > { %923 = vrot.lane.b32.xlu0 %v3037_v25, %s2757_s29 }
  0xad   : > { %v548_v16 = vpop.permute.xlu1 %547 }
  0xae   : > { %v554_v60 = vpop.permute.xlu0 %553  ;;  %631 = vst.msk [vmem:[#allocation3 + $0x68] sm:$0xff] %vm617_vm3, %v548_v16 }
  0xaf   : > { %634 = vst.msk [vmem:[#allocation3 + $0x80] sm:$0xff] %vm617_vm3, %v554_v60  ;;  %921 = vrot.lane.b32.xlu1 %v3039_v26, %s2757_s29 }
  0xb0   : > { %1102 = vrot.lane.b32.xlu0 %v2959_v62, %s2758_s30 }
  0xb1   : > { %v552_v61 = vpop.permute.xlu1 %551 }
  0xb2   : > { %v558_v0 = vpop.permute.xlu0 %557  ;;  %633 = vst.msk [vmem:[#allocation3 + $0x78] sm:$0xff] %vm617_vm3, %v552_v61 }
  0xb3   : > { %636 = vst.msk [vmem:[#allocation3 + $0x90] sm:$0xff] %vm617_vm3, %v558_v0  ;;  %1100 = vrot.lane.b32.xlu1 %v2942_v57, %s2758_s30 }
  0xb4   : > { %1106 = vrot.lane.b32.xlu0 %v2973_v3, %s2758_s30 }
  0xb5   : > { %v556_v2 = vpop.permute.xlu1 %555 }
  0xb6   : > { %v562_v7 = vpop.permute.xlu0 %561  ;;  %635 = vst.msk [vmem:[#allocation3 + $0x88] sm:$0xff] %vm617_vm3, %v556_v2 }
  0xb7   : > { %638 = vst.msk [vmem:[#allocation3 + $0xa0] sm:$0xff] %vm617_vm3, %v562_v7  ;;  %1104 = vrot.lane.b32.xlu1 %v2944_v58, %s2758_s30 }
  0xb8   : > { %1295 = vrot.lane.b32.xlu0 %v3143_v13, %s2759_s6 }
  0xb9   : > { %v560_v62 = vpop.permute.xlu1 %559 }
  0xba   : > { %v566_v1 = vpop.permute.xlu0 %565  ;;  %637 = vst.msk [vmem:[#allocation3 + $0x98] sm:$0xff] %vm617_vm3, %v560_v62 }
  0xbb   : > { %640 = vst.msk [vmem:[#allocation3 + $0xb0] sm:$0xff] %vm617_vm3, %v566_v1  ;;  %1293 = vrot.lane.b32.xlu1 %v3133_v8, %s2759_s6 }
  0xbc   : > { %1299 = vrot.lane.b32.xlu0 %v3151_v23, %s2759_s6 }
  0xbd   : > { %v564_v57 = vpop.permute.xlu1 %563 }
  0xbe   : > { %v570_v52 = vpop.permute.xlu0 %569  ;;  %639 = vst.msk [vmem:[#allocation3 + $0xa8] sm:$0xff] %vm617_vm3, %v564_v57 }
  0xbf   : > { %642 = vst.msk [vmem:[#allocation3 + $0xc0] sm:$0xff] %vm617_vm3, %v570_v52  ;;  %1297 = vrot.lane.b32.xlu1 %v3138_v12, %s2759_s6 }
  0xc0   : > { %1489 = vrot.lane.b32.xlu0 %v3025_v20, %s2760_s7  ;;  %v2742_v20 = vld [vmem:[%s3941_s2] sm:$0xff]  }
  0xc1   : > { %v568_v13 = vpop.permute.xlu1 %567  ;;  %2679 = vmatprep.subr.bf16.mxu0 %v2742_v20  ;;  %2717 = vmatprep.subr.bf16.mxu1 %v2742_v20 }
  0xc2   : > { %v574_v54 = vpop.permute.xlu0 %573  ;;  %641 = vst.msk [vmem:[#allocation3 + $0xb8] sm:$0xff] %vm617_vm3, %v568_v13  ;;  %2680 = vmatpush3.bf16.msra.mxu0 %v2742_v20  ;;  %2720 = vmatpush3.bf16.msra.mxu1 %v2742_v20 }
  0xc3   : > { %644 = vst.msk [vmem:[#allocation3 + $0xd0] sm:$0xff] %vm617_vm3, %v574_v54  ;;  %1487 = vrot.lane.b32.xlu1 %v3011_v15, %s2760_s7  ;;  %2681 = vmatprep.subr.bf16.mxu0 %v2743_v55 }
  0xc4   : > { %1493 = vrot.lane.b32.xlu0 %v3035_v24, %s2760_s7  ;;  %2718 = vmatprep.subr.bf16.mxu1 %v2743_v55 }
  0xc5   : > { %v572_v8 = vpop.permute.xlu1 %571 }
  0xc6   : > { %v578_v14 = vpop.permute.xlu0 %577  ;;  %643 = vst.msk [vmem:[#allocation3 + $0xc8] sm:$0xff] %vm617_vm3, %v572_v8  ;;  %2682 = vmatpush3.bf16.msra.mxu0 %v2743_v55  ;;  %2721 = vmatpush3.bf16.msra.mxu1 %v2743_v55  ;;  %v1624_v55 = vld [vmem:[#allocation2 + $0x91] sm:$0xff] }
  0xc7   : > { %646 = vst.msk [vmem:[#allocation3 + $0xe0] sm:$0xff] %vm617_vm3, %v578_v14  ;;  %1491 = vrot.lane.b32.xlu1 %v3021_v19, %s2760_s7  ;;  %2723 = vmatprep.subr.msk.bf16.mxu0 %vm2119_vm5, %v2744_v56 }
  0xc8   : > { %1682 = vrot.lane.b32.xlu0 %v2973_v3, %s2761_s10  ;;  %2724 = vmatprep.subr.msk.bf16.mxu1 %vm2119_vm5, %v2744_v56 }
  0xc9   : > { %v576_v15 = vpop.permute.xlu1 %575 }
  0xca   : > { %v582_v24 = vpop.permute.xlu0 %581  ;;  %645 = vst.msk [vmem:[#allocation3 + $0xd8] sm:$0xff] %vm617_vm3, %v576_v15 }
  0xcb   : > { %648 = vst.msk [vmem:[#allocation3 + $0xf0] sm:$0xff] %vm617_vm3, %v582_v24  ;;  %1680 = vrot.lane.b32.xlu1 %v2944_v58, %s2761_s10  ;;  %v2121_v58 = vsel %vm2119_vm5, %v2744_v56, 0 }
  0xcc   : > { %1686 = vrot.lane.b32.xlu0 %v2981_v5, %s2761_s10  ;;  %2684 = vmatpush3.bf16.msra.mxu0 %v2121_v58 }
  0xcd   : > { %v580_v3 = vpop.permute.xlu1 %579  ;;  %2722 = vmatpush3.bf16.msra.mxu1 %v2121_v58 }
  0xce   : > { %v715_v19 = vpop.permute.xlu0 %714  ;;  %647 = vst.msk [vmem:[#allocation3 + $0xe8] sm:$0xff] %vm617_vm3, %v580_v3 }
  0xcf   : > { %811 = vst.msk [vmem:[#allocation3] sm:$0xff] %vm810_vm4, %v715_v19  ;;  %1684 = vrot.lane.b32.xlu1 %v2961_v63, %s2761_s10 }
  0xd0   : > { %1875 = vrot.lane.b32.xlu0 %v3151_v23, %s2762_s15 }
  0xd1   : > { %v584_v59 = vpop.permute.xlu1 %583 }
  0xd2   : > { %v719_v16 = vpop.permute.xlu0 %718  ;;  %649 = vst.msk [vmem:[#allocation3 + $0xf8] sm:$0xff] %vm617_vm3, %v584_v59 }
  0xd3   : > { %813 = vst.msk [vmem:[#allocation3 + $0x10] sm:$0xff] %vm810_vm4, %v719_v16  ;;  %1873 = vrot.lane.b32.xlu1 %v3138_v12, %s2762_s15 }
  0xd4   : > { %1879 = vrot.lane.b32.xlu0 %v3159_v42, %s2762_s15 }
  0xd5   : > { %v717_v60 = vpop.permute.xlu1 %716 }
  0xd6   : > { %v723_v23 = vpop.permute.xlu0 %722  ;;  %812 = vst.msk [vmem:[#allocation3 + $0x8] sm:$0xff] %vm810_vm4, %v717_v60 }
  0xd7   : > { %815 = vst.msk [vmem:[#allocation3 + $0x20] sm:$0xff] %vm810_vm4, %v723_v23  ;;  %1877 = vrot.lane.b32.xlu1 %v3145_v18, %s2762_s15 }
  0xd8   : > { %1110 = vrot.lane.b32.xlu0 %v2981_v5, %s2758_s30 }
  0xd9   : > { %v721_v61 = vpop.permute.xlu1 %720 }
  0xda   : > { %v727_v0 = vpop.permute.xlu0 %726  ;;  %814 = vst.msk [vmem:[#allocation3 + $0x18] sm:$0xff] %vm810_vm4, %v721_v61 }
  0xdb   : > { %817 = vst.msk [vmem:[#allocation3 + $0x30] sm:$0xff] %vm810_vm4, %v727_v0  ;;  %1108 = vrot.lane.b32.xlu1 %v2961_v63, %s2758_s30 }
  0xdc   : > { %1114 = vrot.lane.b32.xlu0 %v2992_v9, %s2758_s30 }
  0xdd   : > { %v725_v12 = vpop.permute.xlu1 %724 }
  0xde   : > { %v731_v2 = vpop.permute.xlu0 %730  ;;  %816 = vst.msk [vmem:[#allocation3 + $0x28] sm:$0xff] %vm810_vm4, %v725_v12  ;;  %v1049_v12 = vld [vmem:[#allocation2 + $0xb1] sm:$0xff] }
  0xdf   : > { %819 = vst.msk [vmem:[#allocation3 + $0x40] sm:$0xff] %vm810_vm4, %v731_v2  ;;  %1112 = vrot.lane.b32.xlu1 %v2975_v4, %s2758_s30 }
  0xe0   : > { %1303 = vrot.lane.b32.xlu0 %v3159_v42, %s2759_s6 }
  0xe1   : > { %v729_v5 = vpop.permute.xlu1 %728 }
  0xe2   : > { %v735_v7 = vpop.permute.xlu0 %734  ;;  %818 = vst.msk [vmem:[#allocation3 + $0x38] sm:$0xff] %vm810_vm4, %v729_v5 }
  0xe3   : > { %821 = vst.msk [vmem:[#allocation3 + $0x50] sm:$0xff] %vm810_vm4, %v735_v7  ;;  %1301 = vrot.lane.b32.xlu1 %v3145_v18, %s2759_s6 }
  0xe4   : > { %1307 = vrot.lane.b32.xlu0 %v3167_v45, %s2759_s6 }
  0xe5   : > { %v733_v63 = vpop.permute.xlu1 %732 }
  0xe6   : > { %v739_v62 = vpop.permute.xlu0 %738  ;;  %820 = vst.msk [vmem:[#allocation3 + $0x48] sm:$0xff] %vm810_vm4, %v733_v63 }
  0xe7   : > { %823 = vst.msk [vmem:[#allocation3 + $0x60] sm:$0xff] %vm810_vm4, %v739_v62  ;;  %1305 = vrot.lane.b32.xlu1 %v3153_v41, %s2759_s6 }
  0xe8   : > { %1497 = vrot.lane.b32.xlu0 %v3039_v26, %s2760_s7 }
  0xe9   : > { %v737_v42 = vpop.permute.xlu1 %736 }
  0xea   : > { %v743_v1 = vpop.permute.xlu0 %742  ;;  %822 = vst.msk [vmem:[#allocation3 + $0x58] sm:$0xff] %vm810_vm4, %v737_v42 }
  0xeb   : > { %825 = vst.msk [vmem:[#allocation3 + $0x70] sm:$0xff] %vm810_vm4, %v743_v1  ;;  %1495 = vrot.lane.b32.xlu1 %v3027_v21, %s2760_s7 }
  0xec   : > { %1501 = vrot.lane.b32.xlu0 %v3052_v28, %s2760_s7 }
  0xed   : > { %v741_v18 = vpop.permute.xlu1 %740 }
  0xee   : > { %v747_v57 = vpop.permute.xlu0 %746  ;;  %824 = vst.msk [vmem:[#allocation3 + $0x68] sm:$0xff] %vm810_vm4, %v741_v18 }
  0xef   : > { %827 = vst.msk [vmem:[#allocation3 + $0x80] sm:$0xff] %vm810_vm4, %v747_v57  ;;  %1499 = vrot.lane.b32.xlu1 %v3037_v25, %s2760_s7 }
  0xf0   : > { %1690 = vrot.lane.b32.xlu0 %v2992_v9, %s2761_s10 }
  0xf1   : > { %v745_v26 = vpop.permute.xlu1 %744 }
  0xf2   : > { %v751_v52 = vpop.permute.xlu0 %750  ;;  %826 = vst.msk [vmem:[#allocation3 + $0x78] sm:$0xff] %vm810_vm4, %v745_v26 }
  0xf3   : > { %829 = vst.msk [vmem:[#allocation3 + $0x90] sm:$0xff] %vm810_vm4, %v751_v52  ;;  %1688 = vrot.lane.b32.xlu1 %v2975_v4, %s2761_s10 }
  0xf4   : > { %1694 = vrot.lane.b32.xlu0 %v3000_v11, %s2761_s10 }
  0xf5   : > { %v749_v21 = vpop.permute.xlu1 %748 }
  0xf6   : > { %v755_v13 = vpop.permute.xlu0 %754  ;;  %828 = vst.msk [vmem:[#allocation3 + $0x88] sm:$0xff] %vm810_vm4, %v749_v21 }
  0xf7   : > { %831 = vst.msk [vmem:[#allocation3 + $0xa0] sm:$0xff] %vm810_vm4, %v755_v13  ;;  %1692 = vrot.lane.b32.xlu1 %v2983_v6, %s2761_s10 }
  0xf8   : > { %1883 = vrot.lane.b32.xlu0 %v3167_v45, %s2762_s15 }
  0xf9   : > { %v753_v9 = vpop.permute.xlu1 %752 }
  0xfa   : > { %v759_v25 = vpop.permute.xlu0 %758  ;;  %830 = vst.msk [vmem:[#allocation3 + $0x98] sm:$0xff] %vm810_vm4, %v753_v9 }
  0xfb   : > { %833 = vst.msk [vmem:[#allocation3 + $0xb0] sm:$0xff] %vm810_vm4, %v759_v25  ;;  %1881 = vrot.lane.b32.xlu1 %v3153_v41, %s2762_s15 }
  0xfc   : > { %1887 = vrot.lane.b32.xlu0 %v3175_v47, %s2762_s15 }
  0xfd   : > { %v757_v4 = vpop.permute.xlu1 %756 }
  0xfe   : > { %v763_v54 = vpop.permute.xlu0 %762  ;;  %832 = vst.msk [vmem:[#allocation3 + $0xa8] sm:$0xff] %vm810_vm4, %v757_v4 }
  0xff   : > { %835 = vst.msk [vmem:[#allocation3 + $0xc0] sm:$0xff] %vm810_vm4, %v763_v54  ;;  %1885 = vrot.lane.b32.xlu1 %v3161_v43, %s2762_s15  ;;  %v1631_v54 = vld [vmem:[#allocation2 + $0xe1] sm:$0xff] }
 0x100   : > { %927 = vrot.lane.b32.xlu0 %v3050_v27, %s2757_s29 }
 0x101   : > { %v761_v45 = vpop.permute.xlu1 %760 }
 0x102   : > { %v767_v8 = vpop.permute.xlu0 %766  ;;  %834 = vst.msk [vmem:[#allocation3 + $0xb8] sm:$0xff] %vm810_vm4, %v761_v45  ;;  %v1823_v45 = vld [vmem:[#allocation2 + $0xda] sm:$0xff] }
 0x103   : > { %837 = vst.msk [vmem:[#allocation3 + $0xd0] sm:$0xff] %vm810_vm4, %v767_v8  ;;  %925 = vrot.lane.b32.xlu1 %v3052_v28, %s2757_s29 }
 0x104   : > { %1116 = vrot.lane.b32.xlu0 %v2983_v6, %s2758_s30 }
 0x105   : > { %v765_v41 = vpop.permute.xlu1 %764 }
 0x106   : > { %v771_v14 = vpop.permute.xlu0 %770  ;;  %836 = vst.msk [vmem:[#allocation3 + $0xc8] sm:$0xff] %vm810_vm4, %v765_v41 }
 0x107   : > { %839 = vst.msk [vmem:[#allocation3 + $0xe0] sm:$0xff] %vm810_vm4, %v771_v14  ;;  %929 = vrot.lane.b32.xlu1 %v3062_v30, %s2757_s29  ;;  %v1822_v14 = vld [vmem:[#allocation2 + $0xca] sm:$0xff] }
 0x108   : > { %1120 = vrot.lane.b32.xlu0 %v2994_v10, %s2758_s30 }
 0x109   : > { %v769_v20 = vpop.permute.xlu1 %768 }
 0x10a   : > { %v775_v15 = vpop.permute.xlu0 %774  ;;  %838 = vst.msk [vmem:[#allocation3 + $0xd8] sm:$0xff] %vm810_vm4, %v769_v20 }
 0x10b   : > { %841 = vst.msk [vmem:[#allocation3 + $0xf0] sm:$0xff] %vm810_vm4, %v775_v15  ;;  %1118 = vrot.lane.b32.xlu1 %v3000_v11, %s2758_s30 }
 0x10c   : > { %1309 = vrot.lane.b32.xlu0 %v3161_v43, %s2759_s6 }
 0x10d   : > { %v773_v6 = vpop.permute.xlu1 %772 }
 0x10e   : > { %v908_v28 = vpop.permute.xlu0 %907  ;;  %840 = vst.msk [vmem:[#allocation3 + $0xe8] sm:$0xff] %vm810_vm4, %v773_v6  ;;  %v1824_v6 = vld [vmem:[#allocation2 + $0xe2] sm:$0xff] }
 0x10f   : > { %1004 = vst.msk [vmem:[#allocation3] sm:$0xff] %vm1003_vm6, %v908_v28  ;;  %1122 = vrot.lane.b32.xlu1 %v3015_v17, %s2758_s30 }
 0x110   : > { %1313 = vrot.lane.b32.xlu0 %v3169_v46, %s2759_s6 }
 0x111   : > { %v777_v10 = vpop.permute.xlu1 %776 }
 0x112   : > { %v912_v24 = vpop.permute.xlu0 %911  ;;  %842 = vst.msk [vmem:[#allocation3 + $0xf8] sm:$0xff] %vm810_vm4, %v777_v10 }
 0x113   : > { %1006 = vst.msk [vmem:[#allocation3 + $0x10] sm:$0xff] %vm1003_vm6, %v912_v24  ;;  %1311 = vrot.lane.b32.xlu1 %v3175_v47, %s2759_s6 }
 0x114   : > { %1503 = vrot.lane.b32.xlu0 %v3050_v27, %s2760_s7  ;;  %v1626_v27 = vld [vmem:[#allocation2 + $0xa9] sm:$0xff] }
 0x115   : > { %v910_v11 = vpop.permute.xlu1 %909 }
 0x116   : > { %v916_v43 = vpop.permute.xlu0 %915  ;;  %1005 = vst.msk [vmem:[#allocation3 + $0x8] sm:$0xff] %vm1003_vm6, %v910_v11 }
 0x117   : > { %1008 = vst.msk [vmem:[#allocation3 + $0x20] sm:$0xff] %vm1003_vm6, %v916_v43  ;;  %1315 = vrot.lane.b32.xlu1 %v3183_v49, %s2759_s6 }
 0x118   : > { %1507 = vrot.lane.b32.xlu0 %v3054_v29, %s2760_s7 }
 0x119   : > { %v914_v3 = vpop.permute.xlu1 %913 }
 0x11a   : > { %v920_v19 = vpop.permute.xlu0 %919  ;;  %1007 = vst.msk [vmem:[#allocation3 + $0x18] sm:$0xff] %vm1003_vm6, %v914_v3 }
 0x11b   : > { %1010 = vst.msk [vmem:[#allocation3 + $0x30] sm:$0xff] %vm1003_vm6, %v920_v19  ;;  %1505 = vrot.lane.b32.xlu1 %v3062_v30, %s2760_s7 }
 0x11c   : > { %1696 = vrot.lane.b32.xlu0 %v1624_v55, %s2761_s10 }
 0x11d   : > { %v918_v47 = vpop.permute.xlu1 %917 }
 0x11e   : > { %v924_v56 = vpop.permute.xlu0 %923  ;;  %1009 = vst.msk [vmem:[#allocation3 + $0x28] sm:$0xff] %vm1003_vm6, %v918_v47  ;;  %v319_v47 = vld [vmem:[%s2866_s26 + $0xf0] sm:$0xff] }
 0x11f   : > { %1012 = vst.msk [vmem:[#allocation3 + $0x40] sm:$0xff] %vm1003_vm6, %v924_v56  ;;  %1509 = vrot.lane.b32.xlu1 %v3066_v32, %s2760_s7  ;;  %v320_v56 = vld [vmem:[%s2866_s26 + $0xf8] sm:$0xff] }
 0x120   : > { %1700 = vrot.lane.b32.xlu0 %v1626_v27, %s2761_s10 }
 0x121   : > { %v922_v58 = vpop.permute.xlu1 %921 }
 0x122   : > { %v1103_v59 = vpop.permute.xlu0 %1102  ;;  %1011 = vst.msk [vmem:[#allocation3 + $0x38] sm:$0xff] %vm1003_vm6, %v922_v58 }
 0x123   : > { %1198 = vst.msk [vmem:[#allocation3 + $0x8] sm:$0xff] %vm1196_vm7, %v1103_v59  ;;  %1698 = vrot.lane.b32.xlu1 %v3015_v17, %s2761_s10 }
 0x124   : > { %1889 = vrot.lane.b32.xlu0 %v3169_v46, %s2762_s15 }
 0x125   : > { %v1101_v30 = vpop.permute.xlu1 %1100 }
 0x126   : > { %v1107_v16 = vpop.permute.xlu0 %1106  ;;  %1197 = vst.msk [vmem:[#allocation3] sm:$0xff] %vm1196_vm7, %v1101_v30  ;;  %v2745_v30 = vld [vmem:[%s3940_s1] ss:$0 sm:$0xff] }
 0x127   : > { %1200 = vst.msk [vmem:[#allocation3 + $0x18] sm:$0xff] %vm1196_vm7, %v1107_v16  ;;  %1702 = vrot.lane.b32.xlu1 %v3029_v22, %s2761_s10  ;;  %v358_v16 = vadd.f32 %v2745_v30, %v319_v47 }
 0x128   : > { %1893 = vrot.lane.b32.xlu0 %v3177_v48, %s2762_s15 }
 0x129   : > { %v1105_v60 = vpop.permute.xlu1 %1104  ;;  %391 = vst.msk [vmem:[#allocation2 + $0x181] sm:$0xff] %vm243_vm0, %v358_v16 }
 0x12a   : > { %v1296_v23 = vpop.permute.xlu0 %1295  ;;  %1199 = vst.msk [vmem:[#allocation3 + $0x10] sm:$0xff] %vm1196_vm7, %v1105_v60  ;;  %v359_v60 = vadd.f32 %v2745_v30, %v320_v56  ;;  %v1831_v30 = vld [vmem:[#allocation2 + $0x13a] sm:$0xff] }
 0x12b   : > { %1391 = vst.msk [vmem:[#allocation3 + $0x8] sm:$0xff] %vm1389_vm8, %v1296_v23  ;;  %1891 = vrot.lane.b32.xlu1 %v3183_v49, %s2762_s15 }
 0x12c   : > { %931 = vrot.lane.b32.xlu0 %v3054_v29, %s2757_s29  ;;  %v1050_v29 = vld [vmem:[#allocation2 + $0xc1] sm:$0xff]  ;;  %392 = vst.msk [vmem:[#allocation2 + $0x189] sm:$0xff] %vm243_vm0, %v359_v60 }
 0x12d   : > { %v1294_v17 = vpop.permute.xlu1 %1293 }
 0x12e   : > { %v1300_v46 = vpop.permute.xlu0 %1299  ;;  %1390 = vst.msk [vmem:[#allocation3] sm:$0xff] %vm1389_vm8, %v1294_v17 }
 0x12f   : > { %1393 = vst.msk [vmem:[#allocation3 + $0x18] sm:$0xff] %vm1389_vm8, %v1300_v46  ;;  %1895 = vrot.lane.b32.xlu1 %v3191_v51, %s2762_s15 }
 0x130   : > { %935 = vrot.lane.b32.xlu0 %v3064_v31, %s2757_s29 }
 0x131   : > { %v1298_v22 = vpop.permute.xlu1 %1297 }
 0x132   : > { %v1490_v61 = vpop.permute.xlu0 %1489  ;;  %1392 = vst.msk [vmem:[#allocation3 + $0x10] sm:$0xff] %vm1389_vm8, %v1298_v22  ;;  %v1248_v22 = vld [vmem:[#allocation2 + $0xfa] sm:$0xff] }
 0x133   : > { %1585 = vst.msk [vmem:[#allocation3 + $0x8] sm:$0xff] %vm1583_vm9, %v1490_v61  ;;  %933 = vrot.lane.b32.xlu1 %v3066_v32, %s2757_s29  ;;  %v1051_v32 = vld [vmem:[#allocation2 + $0xc9] sm:$0xff] }
 0x134   : > { %1124 = vrot.lane.b32.xlu0 %v1626_v27, %s2758_s30  ;;  %v1247_v27 = vld [vmem:[#allocation2 + $0xf2] sm:$0xff] }
 0x135   : > { %v1488_v49 = vpop.permute.xlu1 %1487 }
 0x136   : > { %v1494_v0 = vpop.permute.xlu0 %1493  ;;  %1584 = vst.msk [vmem:[#allocation3] sm:$0xff] %vm1583_vm9, %v1488_v49 }
 0x137   : > { %1587 = vst.msk [vmem:[#allocation3 + $0x18] sm:$0xff] %vm1583_vm9, %v1494_v0  ;;  %937 = vrot.lane.b32.xlu1 %v3076_v34, %s2757_s29 }
 0x138   : > { %1128 = vrot.lane.b32.xlu0 %v1050_v29, %s2758_s30 }
 0x139   : > { %v1492_v2 = vpop.permute.xlu1 %1491 }
 0x13a   : > { %v1683_v5 = vpop.permute.xlu0 %1682  ;;  %1586 = vst.msk [vmem:[#allocation3 + $0x10] sm:$0xff] %vm1583_vm9, %v1492_v2 }
 0x13b   : > { %1778 = vst.msk [vmem:[#allocation3 + $0x8] sm:$0xff] %vm1776_vm10, %v1683_v5  ;;  %1126 = vrot.lane.b32.xlu1 %v1049_v12, %s2758_s30 }
 0x13c   : > { %1317 = vrot.lane.b32.xlu0 %v3177_v48, %s2759_s6 }
 0x13d   : > { %v1681_v7 = vpop.permute.xlu1 %1680 }
 0x13e   : > { %v1687_v63 = vpop.permute.xlu0 %1686  ;;  %1777 = vst.msk [vmem:[#allocation3] sm:$0xff] %vm1776_vm10, %v1681_v7  ;;  %v1634_v7 = vld [vmem:[#allocation2 + $0x109] sm:$0xff] }
 0x13f   : > { %1780 = vst.msk [vmem:[#allocation3 + $0x18] sm:$0xff] %vm1776_vm10, %v1687_v63  ;;  %1130 = vrot.lane.b32.xlu1 %v1051_v32, %s2758_s30 }
 0x140   : > { %1321 = vrot.lane.b32.xlu0 %v3185_v50, %s2759_s6 }
 0x141   : > { %v1685_v62 = vpop.permute.xlu1 %1684 }
 0x142   : > { %v1876_v42 = vpop.permute.xlu0 %1875  ;;  %1779 = vst.msk [vmem:[#allocation3 + $0x10] sm:$0xff] %vm1776_vm10, %v1685_v62 }
 0x143   : > { %1971 = vst.msk [vmem:[#allocation3 + $0x8] sm:$0xff] %vm1969_vm11, %v1876_v42  ;;  %1319 = vrot.lane.b32.xlu1 %v3191_v51, %s2759_s6  ;;  %v1630_v51 = vld [vmem:[#allocation2 + $0xd9] sm:$0xff] }
 0x144   : > { %1511 = vrot.lane.b32.xlu0 %v3064_v31, %s2760_s7 }
 0x145   : > { %v1874_v48 = vpop.permute.xlu1 %1873 }
 0x146   : > { %v1880_v1 = vpop.permute.xlu0 %1879  ;;  %1970 = vst.msk [vmem:[#allocation3] sm:$0xff] %vm1969_vm11, %v1874_v48 }
 0x147   : > { %1973 = vst.msk [vmem:[#allocation3 + $0x18] sm:$0xff] %vm1969_vm11, %v1880_v1  ;;  %1323 = vrot.lane.b32.xlu1 %v3196_v53, %s2759_s6  ;;  %v1827_v1 = vld [vmem:[#allocation2 + $0x10a] sm:$0xff] }
 0x148   : > { %1515 = vrot.lane.b32.xlu0 %v3074_v33, %s2760_s7 }
 0x149   : > { %v1878_v50 = vpop.permute.xlu1 %1877 }
 0x14a   : > { %v1111_v18 = vpop.permute.xlu0 %1110  ;;  %1972 = vst.msk [vmem:[#allocation3 + $0x10] sm:$0xff] %vm1969_vm11, %v1878_v50  ;;  %v2003_v31 = vld [vmem:[#allocation3 + $0x8] sm:$0xff] }
 0x14b   : > { %1202 = vst.msk [vmem:[#allocation3 + $0x28] sm:$0xff] %vm1196_vm7, %v1111_v18  ;;  %1513 = vrot.lane.b32.xlu1 %v3076_v34, %s2760_s7  ;;  %v1821_v34 = vld [vmem:[#allocation2 + $0xc2] sm:$0xff] }
 0x14c   : > { %1704 = vrot.lane.b32.xlu0 %v1050_v29, %s2761_s10 }
 0x14d   : > { %v1109_v57 = vpop.permute.xlu1 %1108  ;;  %v2002_v26 = vld [vmem:[#allocation3] sm:$0xff] }
 0x14e   : > { %v1115_v53 = vpop.permute.xlu0 %1114  ;;  %1201 = vst.msk [vmem:[#allocation3 + $0x20] sm:$0xff] %vm1196_vm7, %v1109_v57  ;;  %v2034_v52 = vpack.c.bf16 %v2003_v31, %v2002_v26  ;;  %v2005_v21 = vld [vmem:[#allocation3 + $0x18] sm:$0xff]  ;;  %v1828_v57 = vld [vmem:[#allocation2 + $0x112] sm:$0xff] }
 0x14f   : > { %1204 = vst.msk [vmem:[#allocation3 + $0x38] sm:$0xff] %vm1196_vm7, %v1115_v53  ;;  %1517 = vrot.lane.b32.xlu1 %v3086_v36, %s2760_s7 }
 0x150   : > { %1708 = vrot.lane.b32.xlu0 %v1630_v51, %s2761_s10  ;;  %2685 = vmatprep.mubr.msk.bf16.mxu0 %vm2070_vm12, %v2034_v52 }
 0x151   : > { %v1113_v13 = vpop.permute.xlu1 %1112  ;;  %v2004_v9 = vld [vmem:[#allocation3 + $0x10] sm:$0xff] }
 0x152   : > { %v1304_v25 = vpop.permute.xlu0 %1303  ;;  %1203 = vst.msk [vmem:[#allocation3 + $0x30] sm:$0xff] %vm1196_vm7, %v1113_v13  ;;  %v2035_v4 = vpack.c.bf16 %v2005_v21, %v2004_v9 }
 0x153   : > { %1395 = vst.msk [vmem:[#allocation3 + $0x28] sm:$0xff] %vm1389_vm8, %v1304_v25  ;;  %1706 = vrot.lane.b32.xlu1 %v1051_v32, %s2761_s10  ;;  %v1251_v25 = vld [vmem:[#allocation2 + $0x122] sm:$0xff] }
 0x154   : > { %1897 = vrot.lane.b32.xlu0 %v1821_v34, %s2762_s15  ;;  %2686 = vmatmul.mubr.msk.bf16.vlgmr.msra.gmra.mrb[0].mxu0 %vm2070_vm12, %v2035_v4 }
 0x155   : > { %v1302_v8 = vpop.permute.xlu1 %1301 }
 0x156   : > { %v1308_v41 = vpop.permute.xlu0 %1307  ;;  %1394 = vst.msk [vmem:[#allocation3 + $0x20] sm:$0xff] %vm1389_vm8, %v1302_v8 }
 0x157   : > { %1397 = vst.msk [vmem:[#allocation3 + $0x38] sm:$0xff] %vm1389_vm8, %v1308_v41  ;;  %1710 = vrot.lane.b32.xlu1 %v1631_v54, %s2761_s10 }
 0x158   : > { %1901 = vrot.lane.b32.xlu0 %v1823_v45, %s2762_s15 }
 0x159   : > { %v1306_v20 = vpop.permute.xlu1 %1305 }
 0x15a   : > { %v1498_v15 = vpop.permute.xlu0 %1497  ;;  %1396 = vst.msk [vmem:[#allocation3 + $0x30] sm:$0xff] %vm1389_vm8, %v1306_v20  ;;  %v1445_v20 = vld [vmem:[#allocation2 + $0x138] sm:$0xff] }
 0x15b   : > { %1589 = vst.msk [vmem:[#allocation3 + $0x28] sm:$0xff] %vm1583_vm9, %v1498_v15  ;;  %1899 = vrot.lane.b32.xlu1 %v1822_v14, %s2762_s15  ;;  %v1252_v14 = vld [vmem:[#allocation2 + $0x12a] sm:$0xff] }
 0x15c   : > { %939 = vrot.lane.b32.xlu0 %v3074_v33, %s2757_s29  ;;  %v1054_v33 = vld [vmem:[#allocation2 + $0xf1] sm:$0xff] }
 0x15d   : > { %v1496_v28 = vpop.permute.xlu1 %1495 }
 0x15e   : > { %v1502_v10 = vpop.permute.xlu0 %1501  ;;  %1588 = vst.msk [vmem:[#allocation3 + $0x20] sm:$0xff] %vm1583_vm9, %v1496_v28 }
 0x15f   : > { %1591 = vst.msk [vmem:[#allocation3 + $0x38] sm:$0xff] %vm1583_vm9, %v1502_v10  ;;  %1903 = vrot.lane.b32.xlu1 %v1824_v6, %s2762_s15 }
 0x160   : > { %943 = vrot.lane.b32.xlu0 %v3078_v35, %s2757_s29 }
 0x161   : > { %v1500_v24 = vpop.permute.xlu1 %1499 }
 0x162   : > { %v1691_v11 = vpop.permute.xlu0 %1690  ;;  %1590 = vst.msk [vmem:[#allocation3 + $0x30] sm:$0xff] %vm1583_vm9, %v1500_v24 }
 0x163   : > { %1782 = vst.msk [vmem:[#allocation3 + $0x28] sm:$0xff] %vm1776_vm10, %v1691_v11  ;;  %941 = vrot.lane.b32.xlu1 %v3086_v36, %s2757_s29  ;;  %v1055_v36 = vld [vmem:[#allocation2 + $0xf9] sm:$0xff]  ;;  %v1444_v11 = vld [vmem:[#allocation2 + $0x128] sm:$0xff] }
 0x164   : > { %1132 = vrot.lane.b32.xlu0 %v1630_v51, %s2758_s30 }
 0x165   : > { %v1689_v43 = vpop.permute.xlu1 %1688 }
 0x166   : > { %v1695_v55 = vpop.permute.xlu0 %1694  ;;  %1781 = vst.msk [vmem:[#allocation3 + $0x20] sm:$0xff] %vm1776_vm10, %v1689_v43 }
 0x167   : > { %1784 = vst.msk [vmem:[#allocation3 + $0x38] sm:$0xff] %vm1776_vm10, %v1695_v55  ;;  %945 = vrot.lane.b32.xlu1 %v3090_v38, %s2757_s29 }
 0x168   : > { %1136 = vrot.lane.b32.xlu0 %v1054_v33, %s2758_s30 }
 0x169   : > { %v1693_v3 = vpop.permute.xlu1 %1692 }
 0x16a   : > { %v1884_v19 = vpop.permute.xlu0 %1883  ;;  %1783 = vst.msk [vmem:[#allocation3 + $0x30] sm:$0xff] %vm1776_vm10, %v1693_v3 }
 0x16b   : > { %1975 = vst.msk [vmem:[#allocation3 + $0x28] sm:$0xff] %vm1969_vm11, %v1884_v19  ;;  %1134 = vrot.lane.b32.xlu1 %v1631_v54, %s2758_s30  ;;  %v1446_v19 = vld [vmem:[#allocation2 + $0x140] sm:$0xff] }
 0x16c   : > { %1325 = vrot.lane.b32.xlu0 %v1823_v45, %s2759_s6 }
 0x16d   : > { %v1882_v58 = vpop.permute.xlu1 %1881 }
 0x16e   : > { %v1888_v59 = vpop.permute.xlu0 %1887  ;;  %1974 = vst.msk [vmem:[#allocation3 + $0x20] sm:$0xff] %vm1969_vm11, %v1882_v58 }
 0x16f   : > { %1977 = vst.msk [vmem:[#allocation3 + $0x38] sm:$0xff] %vm1969_vm11, %v1888_v59  ;;  %1138 = vrot.lane.b32.xlu1 %v1055_v36, %s2758_s30  ;;  %v1639_v59 = vld [vmem:[#allocation2 + $0x141] sm:$0xff] }
 0x170   : > { %1329 = vrot.lane.b32.xlu0 %v1247_v27, %s2759_s6 }
 0x171   : > { %v1886_v23 = vpop.permute.xlu1 %1885 }
 0x172   : > { %v928_v17 = vpop.permute.xlu0 %927  ;;  %1976 = vst.msk [vmem:[#allocation3 + $0x30] sm:$0xff] %vm1969_vm11, %v1886_v23  ;;  %v2007_v46 = vld [vmem:[#allocation3 + $0x28] sm:$0xff] }
 0x173   : > { %1014 = vst.msk [vmem:[#allocation3 + $0x50] sm:$0xff] %vm1003_vm6, %v928_v17  ;;  %1327 = vrot.lane.b32.xlu1 %v1824_v6, %s2759_s6 }
 0x174   : > { %1519 = vrot.lane.b32.xlu0 %v3078_v35, %s2760_s7 }
 0x175   : > { %v926_v61 = vpop.permute.xlu1 %925  ;;  %v2006_v29 = vld [vmem:[#allocation3 + $0x20] sm:$0xff] }
 0x176   : > { %v1117_v49 = vpop.permute.xlu0 %1116  ;;  %1013 = vst.msk [vmem:[#allocation3 + $0x48] sm:$0xff] %vm1003_vm6, %v926_v61  ;;  %v2036_v0 = vpack.c.bf16 %v2007_v46, %v2006_v29  ;;  %v2009_v12 = vld [vmem:[#allocation3 + $0x38] sm:$0xff] }
 0x177   : > { %1205 = vst.msk [vmem:[#allocation3 + $0x40] sm:$0xff] %vm1196_vm7, %v1117_v49  ;;  %1331 = vrot.lane.b32.xlu1 %v1248_v22, %s2759_s6  ;;  %v1832_v46 = vld [vmem:[#allocation2 + $0x142] sm:$0xff] }
 0x178   : > { %1523 = vrot.lane.b32.xlu0 %v3088_v37, %s2760_s7  ;;  %2689 = vmatprep.mubr.msk.bf16.mxu0 %vm2070_vm12, %v2036_v0 }
 0x179   : > { %v930_v2 = vpop.permute.xlu1 %929  ;;  %v2008_v5 = vld [vmem:[#allocation3 + $0x30] sm:$0xff] }
 0x17a   : > { %v1121_v35 = vpop.permute.xlu0 %1120  ;;  %1015 = vst.msk [vmem:[#allocation3 + $0x58] sm:$0xff] %vm1003_vm6, %v930_v2  ;;  %v2037_v32 = vpack.c.bf16 %v2009_v12, %v2008_v5  ;;  %v870_v12 = vld [vmem:[#allocation2 + $0x158] sm:$0xff] }
 0x17b   : > { %1207 = vst.msk [vmem:[#allocation3 + $0x50] sm:$0xff] %vm1196_vm7, %v1121_v35  ;;  %1521 = vrot.lane.b32.xlu1 %v3090_v38, %s2760_s7  ;;  %v1635_v38 = vld [vmem:[#allocation2 + $0x111] sm:$0xff] }
 0x17c   : > { %1712 = vrot.lane.b32.xlu0 %v1054_v33, %s2761_s10  ;;  %2690 = vmatmul.mubr.msk.bf16.gmra.mrb[4].mxu0 %vm2070_vm12, %v2037_v32  ;;  %v1062_v2 = vld [vmem:[#allocation2 + $0x151] sm:$0xff] }
 0x17d   : > { %v1119_v63 = vpop.permute.xlu1 %1118 }
 0x17e   : > { %v1310_v62 = vpop.permute.xlu0 %1309  ;;  %1206 = vst.msk [vmem:[#allocation3 + $0x48] sm:$0xff] %vm1196_vm7, %v1119_v63  ;;  %v1063_v63 = vld [vmem:[#allocation2 + $0x159] sm:$0xff] }
 0x17f   : > { %1398 = vst.msk [vmem:[#allocation3 + $0x40] sm:$0xff] %vm1389_vm8, %v1310_v62  ;;  %1525 = vrot.lane.b32.xlu1 %v3103_v40, %s2760_s7  ;;  %v1255_v62 = vld [vmem:[#allocation2 + $0x152] sm:$0xff] }
 0x180   : > { %1716 = vrot.lane.b32.xlu0 %v1634_v7, %s2761_s10 }
 0x181   : > { %v1123_v42 = vpop.permute.xlu1 %1122 }
 0x182   : > { %v1314_v48 = vpop.permute.xlu0 %1313  ;;  %1208 = vst.msk [vmem:[#allocation3 + $0x58] sm:$0xff] %vm1196_vm7, %v1123_v42 }
 0x183   : > { %1400 = vst.msk [vmem:[#allocation3 + $0x50] sm:$0xff] %vm1389_vm8, %v1314_v48  ;;  %1714 = vrot.lane.b32.xlu1 %v1055_v36, %s2761_s10  ;;  %v1638_v36 = vld [vmem:[#allocation2 + $0x139] sm:$0xff] }
 0x184   : > { %1905 = vrot.lane.b32.xlu0 %v1247_v27, %s2762_s15 }
 0x185   : > { %v1312_v50 = vpop.permute.xlu1 %1311 }
 0x186   : > { %v1504_v18 = vpop.permute.xlu0 %1503  ;;  %1399 = vst.msk [vmem:[#allocation3 + $0x48] sm:$0xff] %vm1389_vm8, %v1312_v50 }
 0x187   : > { %1592 = vst.msk [vmem:[#allocation3 + $0x40] sm:$0xff] %vm1583_vm9, %v1504_v18  ;;  %1718 = vrot.lane.b32.xlu1 %v1635_v38, %s2761_s10  ;;  %v1256_v18 = vld [vmem:[#allocation2 + $0x15a] sm:$0xff] }
 0x188   : > { %1909 = vrot.lane.b32.xlu0 %v1827_v1, %s2762_s15 }
 0x189   : > { %v1316_v31 = vpop.permute.xlu1 %1315 }
 0x18a   : > { %v1508_v51 = vpop.permute.xlu0 %1507  ;;  %1401 = vst.msk [vmem:[#allocation3 + $0x58] sm:$0xff] %vm1389_vm8, %v1316_v31  ;;  %v1449_v31 = vld [vmem:[#allocation2 + $0x168] sm:$0xff] }
 0x18b   : > { %1594 = vst.msk [vmem:[#allocation3 + $0x50] sm:$0xff] %vm1583_vm9, %v1508_v51  ;;  %1907 = vrot.lane.b32.xlu1 %v1248_v22, %s2762_s15  ;;  %v869_v22 = vld [vmem:[#allocation2 + $0x150] sm:$0xff] }
 0x18c   : > { %947 = vrot.lane.b32.xlu0 %v3088_v37, %s2757_s29  ;;  %v1058_v37 = vld [vmem:[#allocation2 + $0x121] sm:$0xff] }
 0x18d   : > { %v1506_v26 = vpop.permute.xlu1 %1505 }
 0x18e   : > { %v1697_v53 = vpop.permute.xlu0 %1696  ;;  %1593 = vst.msk [vmem:[#allocation3 + $0x48] sm:$0xff] %vm1583_vm9, %v1506_v26 }
 0x18f   : > { %1785 = vst.msk [vmem:[#allocation3 + $0x40] sm:$0xff] %vm1776_vm10, %v1697_v53  ;;  %1911 = vrot.lane.b32.xlu1 %v1828_v57, %s2762_s15 }
 0x190   : > { %951 = vrot.lane.b32.xlu0 %v3101_v39, %s2757_s29 }
 0x191   : > { %v1510_v52 = vpop.permute.xlu1 %1509 }
 0x192   : > { %v1701_v21 = vpop.permute.xlu0 %1700  ;;  %1595 = vst.msk [vmem:[#allocation3 + $0x58] sm:$0xff] %vm1583_vm9, %v1510_v52 }
 0x193   : > { %1787 = vst.msk [vmem:[#allocation3 + $0x50] sm:$0xff] %vm1776_vm10, %v1701_v21  ;;  %949 = vrot.lane.b32.xlu1 %v3103_v40, %s2757_s29  ;;  %v1059_v40 = vld [vmem:[#allocation2 + $0x129] sm:$0xff] }
 0x194   : > { %1140 = vrot.lane.b32.xlu0 %v1634_v7, %s2758_s30 }
 0x195   : > { %v1699_v34 = vpop.permute.xlu1 %1698 }
 0x196   : > { %v1890_v13 = vpop.permute.xlu0 %1889  ;;  %1786 = vst.msk [vmem:[#allocation3 + $0x48] sm:$0xff] %vm1776_vm10, %v1699_v34 }
 0x197   : > { %1978 = vst.msk [vmem:[#allocation3 + $0x40] sm:$0xff] %vm1969_vm11, %v1890_v13  ;;  %953 = vrot.lane.b32.xlu1 %v3111_v44, %s2757_s29  ;;  %v1443_v44 = vld [vmem:[#allocation2 + $0x120] sm:$0xff] }
 0x198   : > { %1144 = vrot.lane.b32.xlu0 %v1058_v37, %s2758_s30 }
 0x199   : > { %v1703_v39 = vpop.permute.xlu1 %1702 }
 0x19a   : > { %v1894_v9 = vpop.permute.xlu0 %1893  ;;  %1788 = vst.msk [vmem:[#allocation3 + $0x58] sm:$0xff] %vm1776_vm10, %v1703_v39  ;;  %v1450_v39 = vld [vmem:[#allocation2 + $0x170] sm:$0xff] }
 0x19b   : > { %1980 = vst.msk [vmem:[#allocation3 + $0x50] sm:$0xff] %vm1969_vm11, %v1894_v9  ;;  %1142 = vrot.lane.b32.xlu1 %v1635_v38, %s2758_s30  ;;  %v1642_v9 = vld [vmem:[#allocation2 + $0x169] sm:$0xff] }
 0x19c   : > { %1333 = vrot.lane.b32.xlu0 %v1827_v1, %s2759_s6 }
 0x19d   : > { %v1892_v4 = vpop.permute.xlu1 %1891 }
 0x19e   : > { %v932_v54 = vpop.permute.xlu0 %931  ;;  %1979 = vst.msk [vmem:[#allocation3 + $0x48] sm:$0xff] %vm1969_vm11, %v1892_v4  ;;  %v2010_v41 = vld [vmem:[#allocation3 + $0x40] sm:$0xff] }
 0x19f   : > { %1016 = vst.msk [vmem:[#allocation3 + $0x60] sm:$0xff] %vm1003_vm6, %v932_v54  ;;  %1146 = vrot.lane.b32.xlu1 %v1059_v40, %s2758_s30 }
 0x1a0   : > { %1337 = vrot.lane.b32.xlu0 %v1251_v25, %s2759_s6 }
 0x1a1   : > { %v1896_v45 = vpop.permute.xlu1 %1895 }
 0x1a2   : > { %v936_v8 = vpop.permute.xlu0 %935  ;;  %1981 = vst.msk [vmem:[#allocation3 + $0x58] sm:$0xff] %vm1969_vm11, %v1896_v45  ;;  %v2012_v24 = vld [vmem:[#allocation3 + $0x50] sm:$0xff]  ;;  %v1835_v45 = vld [vmem:[#allocation2 + $0x16a] sm:$0xff] }
 0x1a3   : > { %1018 = vst.msk [vmem:[#allocation3 + $0x70] sm:$0xff] %vm1003_vm6, %v936_v8  ;;  %1335 = vrot.lane.b32.xlu1 %v1828_v57, %s2759_s6 }
 0x1a4   : > { %1527 = vrot.lane.b32.xlu0 %v1443_v44, %s2760_s7  ;;  %v1643_v44 = vld [vmem:[#allocation2 + $0x171] sm:$0xff] }
 0x1a5   : > { %v934_v15 = vpop.permute.xlu1 %933  ;;  %v2011_v6 = vld [vmem:[#allocation3 + $0x48] sm:$0xff] }
 0x1a6   : > { %v1125_v28 = vpop.permute.xlu0 %1124  ;;  %1017 = vst.msk [vmem:[#allocation3 + $0x68] sm:$0xff] %vm1003_vm6, %v934_v15  ;;  %v2038_v10 = vpack.c.bf16 %v2011_v6, %v2010_v41  ;;  %v1836_v15 = vld [vmem:[#allocation2 + $0x172] sm:$0xff]  ;;  %v873_v6 = vld [vmem:[#allocation2 + $0x180] sm:$0xff] }
 0x1a7   : > { %1209 = vst.msk [vmem:[#allocation3 + $0x60] sm:$0xff] %vm1196_vm7, %v1125_v28  ;;  %1339 = vrot.lane.b32.xlu1 %v1252_v14, %s2759_s6 }
 0x1a8   : > { %1531 = vrot.lane.b32.xlu0 %v1445_v20, %s2760_s7  ;;  %2693 = vmatprep.mubr.msk.bf16.mxu0 %vm2070_vm12, %v2038_v10 }
 0x1a9   : > { %v938_v33 = vpop.permute.xlu1 %937  ;;  %v2013_v43 = vld [vmem:[#allocation3 + $0x58] sm:$0xff] }
 0x1aa   : > { %v1129_v55 = vpop.permute.xlu0 %1128  ;;  %1019 = vst.msk [vmem:[#allocation3 + $0x78] sm:$0xff] %vm1003_vm6, %v938_v33  ;;  %v2039_v3 = vpack.c.bf16 %v2013_v43, %v2012_v24  ;;  %v874_v33 = vld [vmem:[#allocation2 + $0x188] sm:$0xff] }
 0x1ab   : > { %1211 = vst.msk [vmem:[#allocation3 + $0x70] sm:$0xff] %vm1196_vm7, %v1129_v55  ;;  %1529 = vrot.lane.b32.xlu1 %v1444_v11, %s2760_s7  ;;  %v1066_v43 = vld [vmem:[#allocation2 + $0x181] sm:$0xff] }
 0x1ac   : > { %1720 = vrot.lane.b32.xlu0 %v1058_v37, %s2761_s10  ;;  %2694 = vmatmul.mubr.msk.bf16.gmra.mrb[8].mxu0 %vm2070_vm12, %v2039_v3 }
 0x1ad   : > { %v1127_v27 = vpop.permute.xlu1 %1126 }
 0x1ae   : > { %v1318_v47 = vpop.permute.xlu0 %1317  ;;  %1210 = vst.msk [vmem:[#allocation3 + $0x68] sm:$0xff] %vm1196_vm7, %v1127_v27  ;;  %v1067_v27 = vld [vmem:[#allocation2 + $0x189] sm:$0xff] }
 0x1af   : > { %1402 = vst.msk [vmem:[#allocation3 + $0x60] sm:$0xff] %vm1389_vm8, %v1318_v47  ;;  %1533 = vrot.lane.b32.xlu1 %v1446_v19, %s2760_s7  ;;  %v1259_v47 = vld [vmem:[#allocation2 + $0x182] sm:$0xff] }
 0x1b0   : > { %1724 = vrot.lane.b32.xlu0 %v1638_v36, %s2761_s10 }
 0x1b1   : > { %v1131_v56 = vpop.permute.xlu1 %1130 }
 0x1b2   : > { %v1322_v58 = vpop.permute.xlu0 %1321  ;;  %1212 = vst.msk [vmem:[#allocation3 + $0x78] sm:$0xff] %vm1196_vm7, %v1131_v56 }
 0x1b3   : > { %1404 = vst.msk [vmem:[#allocation3 + $0x70] sm:$0xff] %vm1389_vm8, %v1322_v58  ;;  %1722 = vrot.lane.b32.xlu1 %v1059_v40, %s2761_s10 }
 0x1b4   : > { %1913 = vrot.lane.b32.xlu0 %v1251_v25, %s2762_s15 }
 0x1b5   : > { %v1320_v16 = vpop.permute.xlu1 %1319 }
 0x1b6   : > { %v1512_v60 = vpop.permute.xlu0 %1511  ;;  %1403 = vst.msk [vmem:[#allocation3 + $0x68] sm:$0xff] %vm1389_vm8, %v1320_v16 }
 0x1b7   : > { %1596 = vst.msk [vmem:[#allocation3 + $0x60] sm:$0xff] %vm1583_vm9, %v1512_v60  ;;  %1726 = vrot.lane.b32.xlu1 %v1639_v59, %s2761_s10  ;;  %v1260_v60 = vld [vmem:[#allocation2 + $0x18a] sm:$0xff] }
 0x1b8   : > { %1917 = vrot.lane.b32.xlu0 %v1831_v30, %s2762_s15 }
 0x1b9   : > { %v1324_v23 = vpop.permute.xlu1 %1323 }
 0x1ba   : > { %v1516_v17 = vpop.permute.xlu0 %1515  ;;  %1405 = vst.msk [vmem:[#allocation3 + $0x78] sm:$0xff] %vm1389_vm8, %v1324_v23  ;;  %v1453_v23 = vld [vmem:[#allocation2 + $0x198] sm:$0xff] }
 0x1bb   : > { %1598 = vst.msk [vmem:[#allocation3 + $0x70] sm:$0xff] %vm1583_vm9, %v1516_v17  ;;  %1915 = vrot.lane.b32.xlu1 %v1252_v14, %s2762_s15 }
 0x1bc   : > { %955 = vrot.lane.b32.xlu0 %v1445_v20, %s2757_s29 }
 0x1bd   : > { %v1514_v61 = vpop.permute.xlu1 %1513 }
 0x1be   : > { %v1705_v29 = vpop.permute.xlu0 %1704  ;;  %1597 = vst.msk [vmem:[#allocation3 + $0x68] sm:$0xff] %vm1583_vm9, %v1514_v61 }
 0x1bf   : > { %1789 = vst.msk [vmem:[#allocation3 + $0x60] sm:$0xff] %vm1776_vm10, %v1705_v29  ;;  %1919 = vrot.lane.b32.xlu1 %v1832_v46, %s2762_s15 }
 0x1c0   : > { %959 = vrot.lane.b32.xlu0 %v869_v22, %s2757_s29 }
 0x1c1   : > { %v1518_v49 = vpop.permute.xlu1 %1517 }
 0x1c2   : > { %v1709_v0 = vpop.permute.xlu0 %1708  ;;  %1599 = vst.msk [vmem:[#allocation3 + $0x78] sm:$0xff] %vm1583_vm9, %v1518_v49 }
 0x1c3   : > { %1791 = vst.msk [vmem:[#allocation3 + $0x70] sm:$0xff] %vm1776_vm10, %v1709_v0  ;;  %957 = vrot.lane.b32.xlu1 %v1446_v19, %s2757_s29 }
 0x1c4   : > { %1148 = vrot.lane.b32.xlu0 %v1638_v36, %s2758_s30 }
 0x1c5   : > { %v1707_v5 = vpop.permute.xlu1 %1706 }
 0x1c6   : > { %v1898_v35 = vpop.permute.xlu0 %1897  ;;  %1790 = vst.msk [vmem:[#allocation3 + $0x68] sm:$0xff] %vm1776_vm10, %v1707_v5  ;;  %v1454_v5 = vld [vmem:[#allocation2 + $0x1a0] sm:$0xff] }
 0x1c7   : > { %1982 = vst.msk [vmem:[#allocation3 + $0x60] sm:$0xff] %vm1969_vm11, %v1898_v35  ;;  %961 = vrot.lane.b32.xlu1 %v870_v12, %s2757_s29  ;;  %v1646_v35 = vld [vmem:[#allocation2 + $0x199] sm:$0xff] }
 0x1c8   : > { %1152 = vrot.lane.b32.xlu0 %v1062_v2, %s2758_s30 }
 0x1c9   : > { %v1711_v32 = vpop.permute.xlu1 %1710 }
 0x1ca   : > { %v1902_v7 = vpop.permute.xlu0 %1901  ;;  %1792 = vst.msk [vmem:[#allocation3 + $0x78] sm:$0xff] %vm1776_vm10, %v1711_v32 }
 0x1cb   : > { %1984 = vst.msk [vmem:[#allocation3 + $0x70] sm:$0xff] %vm1969_vm11, %v1902_v7  ;;  %1150 = vrot.lane.b32.xlu1 %v1639_v59, %s2758_s30 }
 0x1cc   : > { %1341 = vrot.lane.b32.xlu0 %v1831_v30, %s2759_s6 }
 0x1cd   : > { %v1900_v42 = vpop.permute.xlu1 %1899 }
 0x1ce   : > { %v940_v48 = vpop.permute.xlu0 %939  ;;  %1983 = vst.msk [vmem:[#allocation3 + $0x68] sm:$0xff] %vm1969_vm11, %v1900_v42  ;;  %v2014_v50 = vld [vmem:[#allocation3 + $0x60] sm:$0xff]  ;;  %v1647_v42 = vld [vmem:[#allocation2 + $0x1a1] sm:$0xff] }
 0x1cf   : > { %1020 = vst.msk [vmem:[#allocation3 + $0x80] sm:$0xff] %vm1003_vm6, %v940_v48  ;;  %1154 = vrot.lane.b32.xlu1 %v1063_v63, %s2758_s30  ;;  %v1839_v48 = vld [vmem:[#allocation2 + $0x19a] sm:$0xff] }
 0x1d0   : > { %1345 = vrot.lane.b32.xlu0 %v1255_v62, %s2759_s6 }
 0x1d1   : > { %v1904_v38 = vpop.permute.xlu1 %1903 }
 0x1d2   : > { %v944_v1 = vpop.permute.xlu0 %943  ;;  %1985 = vst.msk [vmem:[#allocation3 + $0x78] sm:$0xff] %vm1969_vm11, %v1904_v38  ;;  %v2016_v52 = vld [vmem:[#allocation3 + $0x70] sm:$0xff] }
 0x1d3   : > { %1022 = vst.msk [vmem:[#allocation3 + $0x90] sm:$0xff] %vm1003_vm6, %v944_v1  ;;  %1343 = vrot.lane.b32.xlu1 %v1832_v46, %s2759_s6 }
 0x1d4   : > { %1535 = vrot.lane.b32.xlu0 %v869_v22, %s2760_s7 }
 0x1d5   : > { %v942_v51 = vpop.permute.xlu1 %941  ;;  %v2015_v57 = vld [vmem:[#allocation3 + $0x68] sm:$0xff] }
 0x1d6   : > { %v1133_v26 = vpop.permute.xlu0 %1132  ;;  %1021 = vst.msk [vmem:[#allocation3 + $0x88] sm:$0xff] %vm1003_vm6, %v942_v51  ;;  %v2040_v53 = vpack.c.bf16 %v2015_v57, %v2014_v50 }
 0x1d7   : > { %1213 = vst.msk [vmem:[#allocation3 + $0x80] sm:$0xff] %vm1196_vm7, %v1133_v26  ;;  %1347 = vrot.lane.b32.xlu1 %v1256_v18, %s2759_s6 }
 0x1d8   : > { %1539 = vrot.lane.b32.xlu0 %v1449_v31, %s2760_s7  ;;  %2697 = vmatprep.mubr.msk.bf16.mxu0 %vm2070_vm12, %v2040_v53 }
 0x1d9   : > { %v946_v21 = vpop.permute.xlu1 %945  ;;  %v2017_v37 = vld [vmem:[#allocation3 + $0x78] sm:$0xff] }
 0x1da   : > { %v1137_v34 = vpop.permute.xlu0 %1136  ;;  %1023 = vst.msk [vmem:[#allocation3 + $0x98] sm:$0xff] %vm1003_vm6, %v946_v21  ;;  %v2041_v13 = vpack.c.bf16 %v2017_v37, %v2016_v52 }
 0x1db   : > { %1215 = vst.msk [vmem:[#allocation3 + $0x90] sm:$0xff] %vm1196_vm7, %v1137_v34  ;;  %1537 = vrot.lane.b32.xlu1 %v870_v12, %s2760_s7 }
 0x1dc   : > { %1728 = vrot.lane.b32.xlu0 %v1062_v2, %s2761_s10  ;;  %2698 = vmatmul.mubr.msk.bf16.gmra.mrb[12].mxu0 %vm2070_vm12, %v2041_v13 }
 0x1dd   : > { %v1135_v40 = vpop.permute.xlu1 %1134 }
 0x1de   : > { %v1326_v25 = vpop.permute.xlu0 %1325  ;;  %1214 = vst.msk [vmem:[#allocation3 + $0x88] sm:$0xff] %vm1196_vm7, %v1135_v40 }
 0x1df   : > { %1406 = vst.msk [vmem:[#allocation3 + $0x80] sm:$0xff] %vm1389_vm8, %v1326_v25  ;;  %1541 = vrot.lane.b32.xlu1 %v1450_v39, %s2760_s7 }
 0x1e0   : > { %1732 = vrot.lane.b32.xlu0 %v1642_v9, %s2761_s10 }
 0x1e1   : > { %v1139_v4 = vpop.permute.xlu1 %1138 }
 0x1e2   : > { %v1330_v54 = vpop.permute.xlu0 %1329  ;;  %1216 = vst.msk [vmem:[#allocation3 + $0x98] sm:$0xff] %vm1196_vm7, %v1139_v4 }
 0x1e3   : > { %1408 = vst.msk [vmem:[#allocation3 + $0x90] sm:$0xff] %vm1389_vm8, %v1330_v54  ;;  %1730 = vrot.lane.b32.xlu1 %v1063_v63, %s2761_s10 }
 0x1e4   : > { %1921 = vrot.lane.b32.xlu0 %v1255_v62, %s2762_s15 }
 0x1e5   : > { %v1328_v8 = vpop.permute.xlu1 %1327 }
 0x1e6   : > { %v1520_v41 = vpop.permute.xlu0 %1519  ;;  %1407 = vst.msk [vmem:[#allocation3 + $0x88] sm:$0xff] %vm1389_vm8, %v1328_v8 }
 0x1e7   : > { %1600 = vst.msk [vmem:[#allocation3 + $0x80] sm:$0xff] %vm1583_vm9, %v1520_v41  ;;  %1734 = vrot.lane.b32.xlu1 %v1643_v44, %s2761_s10 }
 0x1e8   : > { %1925 = vrot.lane.b32.xlu0 %v1835_v45, %s2762_s15 }
 0x1e9   : > { %v1332_v14 = vpop.permute.xlu1 %1331 }
 0x1ea   : > { %v1524_v20 = vpop.permute.xlu0 %1523  ;;  %1409 = vst.msk [vmem:[#allocation3 + $0x98] sm:$0xff] %vm1389_vm8, %v1332_v14 }
 0x1eb   : > { %1602 = vst.msk [vmem:[#allocation3 + $0x90] sm:$0xff] %vm1583_vm9, %v1524_v20  ;;  %1923 = vrot.lane.b32.xlu1 %v1256_v18, %s2762_s15 }
 0x1ec   : > { %963 = vrot.lane.b32.xlu0 %v1449_v31, %s2757_s29  ;;  %v1840_v31 = vld [vmem:[#allocation2 + $0x1a2] sm:$0xff] }
 0x1ed   : > { %v1522_v28 = vpop.permute.xlu1 %1521 }
 0x1ee   : > { %v1713_v10 = vpop.permute.xlu0 %1712  ;;  %1601 = vst.msk [vmem:[#allocation3 + $0x88] sm:$0xff] %vm1583_vm9, %v1522_v28 }
 0x1ef   : > { %1793 = vst.msk [vmem:[#allocation3 + $0x80] sm:$0xff] %vm1776_vm10, %v1713_v10  ;;  %1927 = vrot.lane.b32.xlu1 %v1836_v15, %s2762_s15 }
 0x1f0   : > { %967 = vrot.lane.b32.xlu0 %v873_v6, %s2757_s29 }
 0x1f1   : > { %v1526_v24 = vpop.permute.xlu1 %1525 }
 0x1f2   : > { %v1717_v11 = vpop.permute.xlu0 %1716  ;;  %1603 = vst.msk [vmem:[#allocation3 + $0x98] sm:$0xff] %vm1583_vm9, %v1526_v24 }
 0x1f3   : > { %1795 = vst.msk [vmem:[#allocation3 + $0x90] sm:$0xff] %vm1776_vm10, %v1717_v11  ;;  %965 = vrot.lane.b32.xlu1 %v1450_v39, %s2757_s29 }
 0x1f4   : > { %1156 = vrot.lane.b32.xlu0 %v1642_v9, %s2758_s30 }
 0x1f5   : > { %v1715_v55 = vpop.permute.xlu1 %1714 }
 0x1f6   : > { %v1906_v3 = vpop.permute.xlu0 %1905  ;;  %1794 = vst.msk [vmem:[#allocation3 + $0x88] sm:$0xff] %vm1776_vm10, %v1715_v55 }
 0x1f7   : > { %1986 = vst.msk [vmem:[#allocation3 + $0x80] sm:$0xff] %vm1969_vm11, %v1906_v3  ;;  %969 = vrot.lane.b32.xlu1 %v874_v33, %s2757_s29 }
 0x1f8   : > { %1160 = vrot.lane.b32.xlu0 %v1066_v43, %s2758_s30 }
 0x1f9   : > { %v1719_v19 = vpop.permute.xlu1 %1718 }
 0x1fa   : > { %v1910_v36 = vpop.permute.xlu0 %1909  ;;  %1796 = vst.msk [vmem:[#allocation3 + $0x98] sm:$0xff] %vm1776_vm10, %v1719_v19 }
 0x1fb   : > { %1988 = vst.msk [vmem:[#allocation3 + $0x90] sm:$0xff] %vm1969_vm11, %v1910_v36  ;;  %1158 = vrot.lane.b32.xlu1 %v1643_v44, %s2758_s30 }
 0x1fc   : > { %1349 = vrot.lane.b32.xlu0 %v1835_v45, %s2759_s6 }
 0x1fd   : > { %v1908_v56 = vpop.permute.xlu1 %1907 }
 0x1fe   : > { %v948_v58 = vpop.permute.xlu0 %947  ;;  %1987 = vst.msk [vmem:[#allocation3 + $0x88] sm:$0xff] %vm1969_vm11, %v1908_v56  ;;  %v2018_v16 = vld [vmem:[#allocation3 + $0x80] sm:$0xff] }
 0x1ff   : > { %1024 = vst.msk [vmem:[#allocation3 + $0xa0] sm:$0xff] %vm1003_vm6, %v948_v58  ;;  %1162 = vrot.lane.b32.xlu1 %v1067_v27, %s2758_s30 }
 0x200   : > { %1353 = vrot.lane.b32.xlu0 %v1259_v47, %s2759_s6 }
 0x201   : > { %v1912_v59 = vpop.permute.xlu1 %1911 }
 0x202   : > { %v952_v30 = vpop.permute.xlu0 %951  ;;  %1989 = vst.msk [vmem:[#allocation3 + $0x98] sm:$0xff] %vm1969_vm11, %v1912_v59  ;;  %v2020_v29 = vld [vmem:[#allocation3 + $0x90] sm:$0xff] }
 0x203   : > { %1026 = vst.msk [vmem:[#allocation3 + $0xb0] sm:$0xff] %vm1003_vm6, %v952_v30  ;;  %1351 = vrot.lane.b32.xlu1 %v1836_v15, %s2759_s6 }
 0x204   : > { %1543 = vrot.lane.b32.xlu0 %v873_v6, %s2760_s7 }
 0x205   : > { %v950_v17 = vpop.permute.xlu1 %949  ;;  %v2019_v46 = vld [vmem:[#allocation3 + $0x88] sm:$0xff] }
 0x206   : > { %v1141_v22 = vpop.permute.xlu0 %1140  ;;  %1025 = vst.msk [vmem:[#allocation3 + $0xa8] sm:$0xff] %vm1003_vm6, %v950_v17  ;;  %v2042_v61 = vpack.c.bf16 %v2019_v46, %v2018_v16 }
 0x207   : > { %1217 = vst.msk [vmem:[#allocation3 + $0xa0] sm:$0xff] %vm1196_vm7, %v1141_v22  ;;  %1355 = vrot.lane.b32.xlu1 %v1260_v60, %s2759_s6 }
 0x208   : > { %1547 = vrot.lane.b32.xlu0 %v1453_v23, %s2760_s7  ;;  %2701 = vmatprep.mubr.msk.bf16.mxu1 %vm2070_vm12, %v2042_v61 }
 0x209   : > { %v954_v49 = vpop.permute.xlu1 %953  ;;  %v2021_v0 = vld [vmem:[#allocation3 + $0x98] sm:$0xff] }
 0x20a   : > { %v1145_v12 = vpop.permute.xlu0 %1144  ;;  %1027 = vst.msk [vmem:[#allocation3 + $0xb8] sm:$0xff] %vm1003_vm6, %v954_v49  ;;  %v2043_v2 = vpack.c.bf16 %v2021_v0, %v2020_v29 }
 0x20b   : > { %1219 = vst.msk [vmem:[#allocation3 + $0xb0] sm:$0xff] %vm1196_vm7, %v1145_v12  ;;  %1545 = vrot.lane.b32.xlu1 %v874_v33, %s2760_s7 }
 0x20c   : > { %1736 = vrot.lane.b32.xlu0 %v1066_v43, %s2761_s10  ;;  %2702 = vmatmul.mubr.msk.bf16.vlgmr.msra.gmra.mrb[0].mxu1 %vm2070_vm12, %v2043_v2 }
 0x20d   : > { %v1143_v32 = vpop.permute.xlu1 %1142 }
 0x20e   : > { %v1334_v7 = vpop.permute.xlu0 %1333  ;;  %1218 = vst.msk [vmem:[#allocation3 + $0xa8] sm:$0xff] %vm1196_vm7, %v1143_v32 }
 0x20f   : > { %1410 = vst.msk [vmem:[#allocation3 + $0xa0] sm:$0xff] %vm1389_vm8, %v1334_v7  ;;  %1549 = vrot.lane.b32.xlu1 %v1454_v5, %s2760_s7 }
 0x210   : > { %1740 = vrot.lane.b32.xlu0 %v1646_v35, %s2761_s10 }
 0x211   : > { %v1147_v63 = vpop.permute.xlu1 %1146 }
 0x212   : > { %v1338_v62 = vpop.permute.xlu0 %1337  ;;  %1220 = vst.msk [vmem:[#allocation3 + $0xb8] sm:$0xff] %vm1196_vm7, %v1147_v63 }
 0x213   : > { %1412 = vst.msk [vmem:[#allocation3 + $0xb0] sm:$0xff] %vm1389_vm8, %v1338_v62  ;;  %1738 = vrot.lane.b32.xlu1 %v1067_v27, %s2761_s10 }
 0x214   : > { %1929 = vrot.lane.b32.xlu0 %v1259_v47, %s2762_s15 }
 0x215   : > { %v1336_v38 = vpop.permute.xlu1 %1335 }
 0x216   : > { %v1528_v1 = vpop.permute.xlu0 %1527  ;;  %1411 = vst.msk [vmem:[#allocation3 + $0xa8] sm:$0xff] %vm1389_vm8, %v1336_v38 }
 0x217   : > { %1604 = vst.msk [vmem:[#allocation3 + $0xa0] sm:$0xff] %vm1583_vm9, %v1528_v1  ;;  %1742 = vrot.lane.b32.xlu1 %v1647_v42, %s2761_s10 }
 0x218   : > { %1933 = vrot.lane.b32.xlu0 %v1839_v48, %s2762_s15 }
 0x219   : > { %v1340_v50 = vpop.permute.xlu1 %1339 }
 0x21a   : > { %v1532_v18 = vpop.permute.xlu0 %1531  ;;  %1413 = vst.msk [vmem:[#allocation3 + $0xb8] sm:$0xff] %vm1389_vm8, %v1340_v50 }
 0x21b   : > { %1606 = vst.msk [vmem:[#allocation3 + $0xb0] sm:$0xff] %vm1583_vm9, %v1532_v18  ;;  %1931 = vrot.lane.b32.xlu1 %v1260_v60, %s2762_s15 }
 0x21d   : > { %v1530_v51 = vpop.permute.xlu1 %1529 }
 0x21e   : > { %v1721_v57 = vpop.permute.xlu0 %1720  ;;  %1605 = vst.msk [vmem:[#allocation3 + $0xa8] sm:$0xff] %vm1583_vm9, %v1530_v51 }
 0x21f   : > { %1797 = vst.msk [vmem:[#allocation3 + $0xa0] sm:$0xff] %vm1776_vm10, %v1721_v57  ;;  %1935 = vrot.lane.b32.xlu1 %v1840_v31, %s2762_s15 }
 0x221   : > { %v1534_v26 = vpop.permute.xlu1 %1533 }
 0x222   : > { %v1725_v53 = vpop.permute.xlu0 %1724  ;;  %1607 = vst.msk [vmem:[#allocation3 + $0xb8] sm:$0xff] %vm1583_vm9, %v1534_v26 }
 0x223   : > { %1799 = vst.msk [vmem:[#allocation3 + $0xb0] sm:$0xff] %vm1776_vm10, %v1725_v53 }
 0x225   : > { %v1723_v52 = vpop.permute.xlu1 %1722 }
 0x226   : > { %v1914_v21 = vpop.permute.xlu0 %1913  ;;  %1798 = vst.msk [vmem:[#allocation3 + $0xa8] sm:$0xff] %vm1776_vm10, %v1723_v52 }
 0x227   : > { %1990 = vst.msk [vmem:[#allocation3 + $0xa0] sm:$0xff] %vm1969_vm11, %v1914_v21  ;;  %v2687_v37 = vpop.f32.mrb[0].mxu0 }
 0x228   : > { %v2286_v34 = vmax.f32 %v2687_v37, 0.0  ;;  %v2157_v13 = vpop.f32.mrb[1].mxu0 }
 0x229   : > { %v2284_v39 = vmax.f32 %v2157_v13, 0.0  ;;  %v1727_v9 = vpop.permute.xlu1 %1726  ;;  %v2688_v40 = vpop.f32.mrb[2].mxu0 }
 0x22a   : > { %2319 = vst.msk [vmem:[%s3734_s23 + $0x10] sm:$0xff] %vm2316_vm13, %v2286_v34  ;;  %v2287_v25 = vmax.f32 %v2688_v40, 0.0  ;;  %v2160_v4 = vpop.f32.mrb[3].mxu0  ;;  %v1918_v54 = vpop.permute.xlu0 %1917  ;;  %v2422_v8 = vmul.f32 %v2286_v34, %v2286_v34  ;;  %v2352_v10 = vsel %vm2316_vm13, %v2286_v34, 0.0 }
 0x22b   : > { %1800 = vst.msk [vmem:[#allocation3 + $0xb8] sm:$0xff] %vm1776_vm10, %v1727_v9  ;;  %v2420_v44 = vmul.f32 %v2284_v39, %v2284_v39  ;;  %v2285_v45 = vmax.f32 %v2160_v4, 0.0  ;;  %v2349_v41 = vsel %vm2316_vm13, %v2284_v39, 0.0 }
 0x22c   : > { %2317 = vst.msk [vmem:[%s3734_s23] sm:$0xff] %vm2316_vm13, %v2284_v39  ;;  %2320 = vst.msk [vmem:[%s3734_s23 + $0x18] sm:$0xff] %vm2316_vm13, %v2287_v25  ;;  %v2423_v11 = vmul.f32 %v2287_v25, %v2287_v25  ;;  %v2455_v3 = vsel %vm2316_vm13, %v2422_v8, 0.0  ;;  %v2354_v19 = vsel %vm2316_vm13, %v2287_v25, 0.0 }
 0x22d   : > { %1992 = vst.msk [vmem:[#allocation3 + $0xb0] sm:$0xff] %vm1969_vm11, %v1918_v54  ;;  %v2350_v14 = vsel %vm2316_vm13, %v2285_v45, 0.0  ;;  %v2421_v20 = vmul.f32 %v2285_v45, %v2285_v45  ;;  %v1916_v15 = vpop.permute.xlu1 %1915  ;;  %v2452_v24 = vsel %vm2316_vm13, %v2420_v44, 0.0 }
 0x22e   : > { %2318 = vst.msk [vmem:[%s3734_s23 + $0x8] sm:$0xff] %vm2316_vm13, %v2285_v45  ;;  %v2351_v6 = vadd.f32 %v2350_v14, %v2349_v41  ;;  %v956_v28 = vpop.permute.xlu0 %955  ;;  %v2457_v58 = vsel %vm2316_vm13, %v2423_v11, 0.0  ;;  %v2022_v59 = vld [vmem:[#allocation3 + $0xa0] sm:$0xff] }
 0x22f   : > { %1991 = vst.msk [vmem:[#allocation3 + $0xa8] sm:$0xff] %vm1969_vm11, %v1916_v15  ;;  %v2453_v33 = vsel %vm2316_vm13, %v2421_v20, 0.0 }
 0x230   : > { %1028 = vst.msk [vmem:[#allocation3 + $0xc0] sm:$0xff] %vm1003_vm6, %v956_v28  ;;  %v2353_v43 = vadd.f32 %v2352_v10, %v2351_v6  ;;  %v2454_v55 = vadd.f32 %v2453_v33, %v2452_v24 }
 0x231   : > { %v1920_v36 = vpop.permute.xlu1 %1919 }
 0x232   : > { %v2456_v27 = vadd.f32 %v2455_v3, %v2454_v55  ;;  %1993 = vst.msk [vmem:[#allocation3 + $0xb8] sm:$0xff] %vm1969_vm11, %v1920_v36  ;;  %v960_v47 = vpop.permute.xlu0 %959  ;;  %v2355_v56 = vadd.f32 %v2354_v19, %v2353_v43 }
 0x233   : > { %1030 = vst.msk [vmem:[#allocation3 + $0xd0] sm:$0xff] %vm1003_vm6, %v960_v47 }
 0x234   : > { %v2458_v30 = vadd.f32 %v2457_v58, %v2456_v27  ;;  %v2024_v46 = vld [vmem:[#allocation3 + $0xb0] sm:$0xff] }
 0x235   : > { %v958_v16 = vpop.permute.xlu1 %957 }
 0x236   : > { %v2023_v60 = vld [vmem:[#allocation3 + $0xa8] sm:$0xff]  ;;  %1029 = vst.msk [vmem:[#allocation3 + $0xc8] sm:$0xff] %vm1003_vm6, %v958_v16  ;;  %v1149_v17 = vpop.permute.xlu0 %1148 }
 0x237   : > { %v2044_v23 = vpack.c.bf16 %v2023_v60, %v2022_v59  ;;  %1221 = vst.msk [vmem:[#allocation3 + $0xc0] sm:$0xff] %vm1196_vm7, %v1149_v17 }
 0x239   : > { %2705 = vmatprep.mubr.msk.bf16.mxu1 %vm2070_vm12, %v2044_v23  ;;  %v962_v22 = vpop.permute.xlu1 %961  ;;  %v2025_v61 = vld [vmem:[#allocation3 + $0xb8] sm:$0xff] }
 0x23a   : > { %1031 = vst.msk [vmem:[#allocation3 + $0xd8] sm:$0xff] %vm1003_vm6, %v962_v22  ;;  %v2045_v29 = vpack.c.bf16 %v2025_v61, %v2024_v46  ;;  %v1153_v49 = vpop.permute.xlu0 %1152 }
 0x23b   : > { %1223 = vst.msk [vmem:[#allocation3 + $0xd0] sm:$0xff] %vm1196_vm7, %v1153_v49 }
 0x23c   : > { %2706 = vmatmul.mubr.msk.bf16.gmra.mrb[4].mxu1 %vm2070_vm12, %v2045_v29 }
 0x23d   : > { %v1151_v0 = vpop.permute.xlu1 %1150 }
 0x23e   : > { %1222 = vst.msk [vmem:[#allocation3 + $0xc8] sm:$0xff] %vm1196_vm7, %v1151_v0  ;;  %v1342_v12 = vpop.permute.xlu0 %1341 }
 0x23f   : > { %1414 = vst.msk [vmem:[#allocation3 + $0xc0] sm:$0xff] %vm1389_vm8, %v1342_v12 }
 0x241   : > { %v1155_v2 = vpop.permute.xlu1 %1154 }
 0x242   : > { %1224 = vst.msk [vmem:[#allocation3 + $0xd8] sm:$0xff] %vm1196_vm7, %v1155_v2  ;;  %v1346_v5 = vpop.permute.xlu0 %1345 }
 0x243   : > { %1416 = vst.msk [vmem:[#allocation3 + $0xd0] sm:$0xff] %vm1389_vm8, %v1346_v5 }
 0x245   : > { %v1344_v35 = vpop.permute.xlu1 %1343 }
 0x246   : > { %1415 = vst.msk [vmem:[#allocation3 + $0xc8] sm:$0xff] %vm1389_vm8, %v1344_v35  ;;  %v1536_v32 = vpop.permute.xlu0 %1535 }
 0x247   : > { %1608 = vst.msk [vmem:[#allocation3 + $0xc0] sm:$0xff] %vm1583_vm9, %v1536_v32 }
 0x249   : > { %v1348_v7 = vpop.permute.xlu1 %1347 }
 0x24a   : > { %1417 = vst.msk [vmem:[#allocation3 + $0xd8] sm:$0xff] %vm1389_vm8, %v1348_v7  ;;  %v1540_v63 = vpop.permute.xlu0 %1539 }
 0x24b   : > { %1610 = vst.msk [vmem:[#allocation3 + $0xd0] sm:$0xff] %vm1583_vm9, %v1540_v63 }
 0x24d   : > { %v1538_v62 = vpop.permute.xlu1 %1537 }
 0x24e   : > { %1609 = vst.msk [vmem:[#allocation3 + $0xc8] sm:$0xff] %vm1583_vm9, %v1538_v62  ;;  %v1729_v42 = vpop.permute.xlu0 %1728 }
 0x24f   : > { %v2691_v48 = vpop.f32.mrb[4].mxu0  ;;  %1801 = vst.msk [vmem:[#allocation3 + $0xc0] sm:$0xff] %vm1776_vm10, %v1729_v42 }
 0x250   : > { %v2290_v38 = vmax.f32 %v2691_v48, 0.0  ;;  %v2173_v1 = vpop.f32.mrb[5].mxu0 }
 0x251   : > { %v2288_v50 = vmax.f32 %v2173_v1, 0.0  ;;  %v1542_v18 = vpop.permute.xlu1 %1541  ;;  %v2692_v31 = vpop.f32.mrb[6].mxu0 }
 0x252   : > { %2323 = vst.msk [vmem:[%s3734_s23 + $0x30] sm:$0xff] %vm2316_vm13, %v2290_v38  ;;  %v2291_v51 = vmax.f32 %v2692_v31, 0.0  ;;  %v2176_v57 = vpop.f32.mrb[7].mxu0  ;;  %v1733_v26 = vpop.permute.xlu0 %1732  ;;  %v2426_v34 = vmul.f32 %v2290_v38, %v2290_v38  ;;  %v2360_v44 = vsel %vm2316_vm13, %v2290_v38, 0.0 }
 0x253   : > { %1611 = vst.msk [vmem:[#allocation3 + $0xd8] sm:$0xff] %vm1583_vm9, %v1542_v18  ;;  %v2356_v53 = vsel %vm2316_vm13, %v2288_v50, 0.0  ;;  %v2424_v52 = vmul.f32 %v2288_v50, %v2288_v50  ;;  %v2289_v21 = vmax.f32 %v2176_v57, 0.0 }
 0x254   : > { %2321 = vst.msk [vmem:[%s3734_s23 + $0x20] sm:$0xff] %vm2316_vm13, %v2288_v50  ;;  %v2357_v37 = vadd.f32 %v2356_v53, %v2355_v56  ;;  %2324 = vst.msk [vmem:[%s3734_s23 + $0x38] sm:$0xff] %vm2316_vm13, %v2291_v51  ;;  %v2427_v45 = vmul.f32 %v2291_v51, %v2291_v51  ;;  %v2463_v20 = vsel %vm2316_vm13, %v2426_v34, 0.0  ;;  %v2362_v15 = vsel %vm2316_vm13, %v2291_v51, 0.0 }
 0x255   : > { %1803 = vst.msk [vmem:[#allocation3 + $0xd0] sm:$0xff] %vm1776_vm10, %v1733_v26  ;;  %v2459_v13 = vsel %vm2316_vm13, %v2424_v52, 0.0  ;;  %v2358_v39 = vsel %vm2316_vm13, %v2289_v21, 0.0  ;;  %v2425_v9 = vmul.f32 %v2289_v21, %v2289_v21  ;;  %v1731_v40 = vpop.permute.xlu1 %1730 }
 0x256   : > { %2322 = vst.msk [vmem:[%s3734_s23 + $0x28] sm:$0xff] %vm2316_vm13, %v2289_v21  ;;  %v2460_v25 = vadd.f32 %v2459_v13, %v2458_v30  ;;  %v2359_v4 = vadd.f32 %v2358_v39, %v2357_v37  ;;  %v1922_v54 = vpop.permute.xlu0 %1921  ;;  %v2465_v11 = vsel %vm2316_vm13, %v2427_v45, 0.0 }
 0x257   : > { %1802 = vst.msk [vmem:[#allocation3 + $0xc8] sm:$0xff] %vm1776_vm10, %v1731_v40  ;;  %v2461_v8 = vsel %vm2316_vm13, %v2425_v9, 0.0 }
 0x258   : > { %1994 = vst.msk [vmem:[#allocation3 + $0xc0] sm:$0xff] %vm1969_vm11, %v1922_v54  ;;  %v2361_v41 = vadd.f32 %v2360_v44, %v2359_v4  ;;  %v2462_v14 = vadd.f32 %v2461_v8, %v2460_v25 }
 0x259   : > { %v1735_v6 = vpop.permute.xlu1 %1734 }
 0x25a   : > { %v2464_v28 = vadd.f32 %v2463_v20, %v2462_v14  ;;  %1804 = vst.msk [vmem:[#allocation3 + $0xd8] sm:$0xff] %vm1776_vm10, %v1735_v6  ;;  %v1926_v10 = vpop.permute.xlu0 %1925  ;;  %v3794_v24 = vadd.f32 %v2362_v15, %v2361_v41 }
 0x25b   : > { %1996 = vst.msk [vmem:[#allocation3 + $0xd0] sm:$0xff] %vm1969_vm11, %v1926_v10 }
 0x25c   : > { %v3798_v33 = vadd.f32 %v2465_v11, %v2464_v28 }
 0x25d   : > { %v1924_v43 = vpop.permute.xlu1 %1923 }
 0x25e   : > { %1995 = vst.msk [vmem:[#allocation3 + $0xc8] sm:$0xff] %vm1969_vm11, %v1924_v43  ;;  %v964_v55 = vpop.permute.xlu0 %963 }
 0x25f   : > { %1032 = vst.msk [vmem:[#allocation3 + $0xe0] sm:$0xff] %vm1003_vm6, %v964_v55  ;;  %v2026_v36 = vld [vmem:[#allocation3 + $0xc0] sm:$0xff] }
 0x261   : > { %v1928_v3 = vpop.permute.xlu1 %1927 }
 0x262   : > { %1997 = vst.msk [vmem:[#allocation3 + $0xd8] sm:$0xff] %vm1969_vm11, %v1928_v3  ;;  %v968_v19 = vpop.permute.xlu0 %967  ;;  %v2028_v59 = vld [vmem:[#allocation3 + $0xd0] sm:$0xff] }
 0x263   : > { %1034 = vst.msk [vmem:[#allocation3 + $0xf0] sm:$0xff] %vm1003_vm6, %v968_v19 }
 0x265   : > { %v966_v27 = vpop.permute.xlu1 %965  ;;  %v2027_v47 = vld [vmem:[#allocation3 + $0xc8] sm:$0xff] }
 0x266   : > { %1033 = vst.msk [vmem:[#allocation3 + $0xe8] sm:$0xff] %vm1003_vm6, %v966_v27  ;;  %v2046_v56 = vpack.c.bf16 %v2027_v47, %v2026_v36  ;;  %v1157_v58 = vpop.permute.xlu0 %1156 }
 0x267   : > { %1225 = vst.msk [vmem:[#allocation3 + $0xe0] sm:$0xff] %vm1196_vm7, %v1157_v58 }
 0x268   : > { %2709 = vmatprep.mubr.msk.bf16.mxu1 %vm2070_vm12, %v2046_v56 }
 0x269   : > { %v970_v30 = vpop.permute.xlu1 %969  ;;  %v2029_v16 = vld [vmem:[#allocation3 + $0xd8] sm:$0xff] }
 0x26a   : > { %1035 = vst.msk [vmem:[#allocation3 + $0xf8] sm:$0xff] %vm1003_vm6, %v970_v30  ;;  %v2047_v60 = vpack.c.bf16 %v2029_v16, %v2028_v59  ;;  %v1161_v23 = vpop.permute.xlu0 %1160 }
 0x26b   : > { %1227 = vst.msk [vmem:[#allocation3 + $0xf0] sm:$0xff] %vm1196_vm7, %v1161_v23 }
 0x26c   : > { %2710 = vmatmul.mubr.msk.bf16.gmra.mrb[8].mxu1 %vm2070_vm12, %v2047_v60 }
 0x26d   : > { %v1159_v17 = vpop.permute.xlu1 %1158 }
 0x26e   : > { %1226 = vst.msk [vmem:[#allocation3 + $0xe8] sm:$0xff] %vm1196_vm7, %v1159_v17  ;;  %v1350_v46 = vpop.permute.xlu0 %1349 }
 0x26f   : > { %1418 = vst.msk [vmem:[#allocation3 + $0xe0] sm:$0xff] %vm1389_vm8, %v1350_v46 }
 0x271   : > { %v1163_v22 = vpop.permute.xlu1 %1162 }
 0x272   : > { %1228 = vst.msk [vmem:[#allocation3 + $0xf8] sm:$0xff] %vm1196_vm7, %v1163_v22  ;;  %v1354_v61 = vpop.permute.xlu0 %1353 }
 0x273   : > { %1420 = vst.msk [vmem:[#allocation3 + $0xf0] sm:$0xff] %vm1389_vm8, %v1354_v61 }
 0x275   : > { %v1352_v29 = vpop.permute.xlu1 %1351 }
 0x276   : > { %1419 = vst.msk [vmem:[#allocation3 + $0xe8] sm:$0xff] %vm1389_vm8, %v1352_v29  ;;  %v1544_v49 = vpop.permute.xlu0 %1543 }
 0x277   : > { %1612 = vst.msk [vmem:[#allocation3 + $0xe0] sm:$0xff] %vm1583_vm9, %v1544_v49 }
 0x279   : > { %v1356_v0 = vpop.permute.xlu1 %1355 }
 0x27a   : > { %1421 = vst.msk [vmem:[#allocation3 + $0xf8] sm:$0xff] %vm1389_vm8, %v1356_v0  ;;  %v1548_v12 = vpop.permute.xlu0 %1547 }
 0x27b   : > { %1614 = vst.msk [vmem:[#allocation3 + $0xf0] sm:$0xff] %vm1583_vm9, %v1548_v12 }
 0x27d   : > { %v1546_v2 = vpop.permute.xlu1 %1545 }
 0x27e   : > { %1613 = vst.msk [vmem:[#allocation3 + $0xe8] sm:$0xff] %vm1583_vm9, %v1546_v2  ;;  %v1737_v5 = vpop.permute.xlu0 %1736 }
 0x27f   : > { %v2695_v35 = vpop.f32.mrb[8].mxu0  ;;  %1805 = vst.msk [vmem:[#allocation3 + $0xe0] sm:$0xff] %vm1776_vm10, %v1737_v5 }
 0x280   : > { %v2294_v32 = vmax.f32 %v2695_v35, 0.0  ;;  %v2189_v7 = vpop.f32.mrb[9].mxu0 }
 0x281   : > { %v2292_v63 = vmax.f32 %v2189_v7, 0.0  ;;  %v1550_v62 = vpop.permute.xlu1 %1549  ;;  %v2696_v42 = vpop.f32.mrb[10].mxu0 }
 0x282   : > { %2327 = vst.msk [vmem:[%s3734_s23 + $0x50] sm:$0xff] %vm2316_vm13, %v2294_v32  ;;  %v2295_v48 = vmax.f32 %v2696_v42, 0.0  ;;  %v2192_v38 = vpop.f32.mrb[11].mxu0  ;;  %v1741_v1 = vpop.permute.xlu0 %1740  ;;  %v2430_v57 = vmul.f32 %v2294_v32, %v2294_v32  ;;  %v2368_v39 = vsel %vm2316_vm13, %v2294_v32, 0.0 }
 0x283   : > { %1615 = vst.msk [vmem:[#allocation3 + $0xf8] sm:$0xff] %vm1583_vm9, %v1550_v62  ;;  %v2364_v50 = vsel %vm2316_vm13, %v2292_v63, 0.0  ;;  %v2428_v18 = vmul.f32 %v2292_v63, %v2292_v63  ;;  %v2293_v31 = vmax.f32 %v2192_v38, 0.0 }
 0x284   : > { %2325 = vst.msk [vmem:[%s3734_s23 + $0x40] sm:$0xff] %vm2316_vm13, %v2292_v63  ;;  %v2365_v51 = vadd.f32 %v2364_v50, %v3794_v24  ;;  %2328 = vst.msk [vmem:[%s3734_s23 + $0x58] sm:$0xff] %vm2316_vm13, %v2295_v48  ;;  %v2431_v9 = vmul.f32 %v2295_v48, %v2295_v48  ;;  %v2471_v54 = vsel %vm2316_vm13, %v2430_v57, 0.0  ;;  %v2370_v44 = vsel %vm2316_vm13, %v2295_v48, 0.0 }
 0x285   : > { %1807 = vst.msk [vmem:[#allocation3 + $0xf0] sm:$0xff] %vm1776_vm10, %v1741_v1  ;;  %v2467_v26 = vsel %vm2316_vm13, %v2428_v18, 0.0  ;;  %v2366_v53 = vsel %vm2316_vm13, %v2293_v31, 0.0  ;;  %v2429_v52 = vmul.f32 %v2293_v31, %v2293_v31  ;;  %v1739_v21 = vpop.permute.xlu1 %1738 }
 0x286   : > { %2326 = vst.msk [vmem:[%s3734_s23 + $0x48] sm:$0xff] %vm2316_vm13, %v2293_v31  ;;  %v2468_v37 = vadd.f32 %v2467_v26, %v3798_v33  ;;  %v2367_v34 = vadd.f32 %v2366_v53, %v2365_v51  ;;  %v1930_v13 = vpop.permute.xlu0 %1929  ;;  %v2473_v20 = vsel %vm2316_vm13, %v2431_v9, 0.0 }
 0x287   : > { %1806 = vst.msk [vmem:[#allocation3 + $0xe8] sm:$0xff] %vm1776_vm10, %v1739_v21  ;;  %v2469_v40 = vsel %vm2316_vm13, %v2429_v52, 0.0 }
 0x288   : > { %1998 = vst.msk [vmem:[#allocation3 + $0xe0] sm:$0xff] %vm1969_vm11, %v1930_v13  ;;  %v2369_v25 = vadd.f32 %v2368_v39, %v2367_v34  ;;  %v2470_v4 = vadd.f32 %v2469_v40, %v2468_v37 }
 0x289   : > { %v1743_v45 = vpop.permute.xlu1 %1742 }
 0x28a   : > { %v2472_v8 = vadd.f32 %v2471_v54, %v2470_v4  ;;  %1808 = vst.msk [vmem:[#allocation3 + $0xf8] sm:$0xff] %vm1776_vm10, %v1743_v45  ;;  %v1934_v41 = vpop.permute.xlu0 %1933  ;;  %v2371_v14 = vadd.f32 %v2370_v44, %v2369_v25 }
 0x28b   : > { %2000 = vst.msk [vmem:[#allocation3 + $0xf0] sm:$0xff] %vm1969_vm11, %v1934_v41 }
 0x28c   : > { %v2474_v15 = vadd.f32 %v2473_v20, %v2472_v8 }
 0x28d   : > { %v1932_v6 = vpop.permute.xlu1 %1931 }
 0x28e   : > { %1999 = vst.msk [vmem:[#allocation3 + $0xe8] sm:$0xff] %vm1969_vm11, %v1932_v6 }
 0x28f   : > { %v2030_v10 = vld [vmem:[#allocation3 + $0xe0] sm:$0xff] }
 0x291   : > { %v1936_v28 = vpop.permute.xlu1 %1935 }
 0x292   : > { %2001 = vst.msk [vmem:[#allocation3 + $0xf8] sm:$0xff] %vm1969_vm11, %v1936_v28  ;;  %v2032_v33 = vld [vmem:[#allocation3 + $0xf0] sm:$0xff] }
 0x295   : > { %v2031_v24 = vld [vmem:[#allocation3 + $0xe8] sm:$0xff] }
 0x296   : > { %v2048_v11 = vpack.c.bf16 %v2031_v24, %v2030_v10 }
 0x298   : > { %2713 = vmatprep.mubr.msk.bf16.mxu1 %vm2070_vm12, %v2048_v11 }
 0x299   : > { %v2033_v43 = vld [vmem:[#allocation3 + $0xf8] sm:$0xff] }
 0x29a   : > { %v2049_v55 = vpack.c.bf16 %v2033_v43, %v2032_v33 }
 0x29c   : > { %2714 = vmatmul.mubr.msk.bf16.gmra.mrb[12].mxu1 %vm2070_vm12, %v2049_v55 }
 0x2af   : > { %v2699_v3 = vpop.f32.mrb[12].mxu0 }
 0x2b0   : > { %v2298_v19 = vmax.f32 %v2699_v3, 0.0  ;;  %v2205_v36 = vpop.f32.mrb[13].mxu0 }
 0x2b1   : > { %v2296_v27 = vmax.f32 %v2205_v36, 0.0  ;;  %v2700_v47 = vpop.f32.mrb[14].mxu0 }
 0x2b2   : > { %2331 = vst.msk [vmem:[%s3734_s23 + $0x70] sm:$0xff] %vm2316_vm13, %v2298_v19  ;;  %v2299_v56 = vmax.f32 %v2700_v47, 0.0  ;;  %v2208_v58 = vpop.f32.mrb[15].mxu0  ;;  %v2434_v23 = vmul.f32 %v2298_v19, %v2298_v19  ;;  %v2376_v49 = vsel %vm2316_vm13, %v2298_v19, 0.0 }
 0x2b3   : > { %2329 = vst.msk [vmem:[%s3734_s23 + $0x60] sm:$0xff] %vm2316_vm13, %v2296_v27  ;;  %v2372_v59 = vsel %vm2316_vm13, %v2296_v27, 0.0  ;;  %v2432_v30 = vmul.f32 %v2296_v27, %v2296_v27  ;;  %v2297_v16 = vmax.f32 %v2208_v58, 0.0 }
 0x2b4   : > { %v2373_v60 = vadd.f32 %v2372_v59, %v2371_v14  ;;  %2332 = vst.msk [vmem:[%s3734_s23 + $0x78] sm:$0xff] %vm2316_vm13, %v2299_v56  ;;  %v2435_v0 = vmul.f32 %v2299_v56, %v2299_v56  ;;  %v2479_v35 = vsel %vm2316_vm13, %v2434_v23, 0.0  ;;  %v2378_v32 = vsel %vm2316_vm13, %v2299_v56, 0.0 }
 0x2b5   : > { %v2475_v17 = vsel %vm2316_vm13, %v2432_v30, 0.0  ;;  %2330 = vst.msk [vmem:[%s3734_s23 + $0x68] sm:$0xff] %vm2316_vm13, %v2297_v16  ;;  %v2374_v46 = vsel %vm2316_vm13, %v2297_v16, 0.0  ;;  %v2433_v22 = vmul.f32 %v2297_v16, %v2297_v16 }
 0x2b6   : > { %v2476_v61 = vadd.f32 %v2475_v17, %v2474_v15  ;;  %v2375_v29 = vadd.f32 %v2374_v46, %v2373_v60  ;;  %v2481_v62 = vsel %vm2316_vm13, %v2435_v0, 0.0 }
 0x2b7   : > { %v2477_v12 = vsel %vm2316_vm13, %v2433_v22, 0.0 }
 0x2b8   : > { %v2377_v2 = vadd.f32 %v2376_v49, %v2375_v29  ;;  %v2478_v5 = vadd.f32 %v2477_v12, %v2476_v61 }
 0x2ba   : > { %v2480_v7 = vadd.f32 %v2479_v35, %v2478_v5  ;;  %v2379_v63 = vadd.f32 %v2378_v32, %v2377_v2 }
 0x2bc   : > { %v2482_v42 = vadd.f32 %v2481_v62, %v2480_v7 }
 0x2df   : > { %v2703_v48 = vpop.f32.mrb[0].mxu1 }
 0x2e0   : > { %v2302_v38 = vmax.f32 %v2703_v48, 0.0  ;;  %v2221_v1 = vpop.f32.mrb[1].mxu1 }
 0x2e1   : > { %v2300_v50 = vmax.f32 %v2221_v1, 0.0  ;;  %v2704_v18 = vpop.f32.mrb[2].mxu1 }
 0x2e2   : > { %2335 = vst.msk [vmem:[%s3734_s23 + $0x90] sm:$0xff] %vm2316_vm13, %v2302_v38  ;;  %v2303_v31 = vmax.f32 %v2704_v18, 0.0  ;;  %v2224_v51 = vpop.f32.mrb[3].mxu1  ;;  %v2438_v21 = vmul.f32 %v2302_v38, %v2302_v38  ;;  %v2384_v40 = vsel %vm2316_vm13, %v2302_v38, 0.0 }
 0x2e3   : > { %2333 = vst.msk [vmem:[%s3734_s23 + $0x80] sm:$0xff] %vm2316_vm13, %v2300_v50  ;;  %v2380_v57 = vsel %vm2316_vm13, %v2300_v50, 0.0  ;;  %v2436_v26 = vmul.f32 %v2300_v50, %v2300_v50  ;;  %v2301_v53 = vmax.f32 %v2224_v51, 0.0 }
 0x2e4   : > { %v2381_v52 = vadd.f32 %v2380_v57, %v2379_v63  ;;  %2336 = vst.msk [vmem:[%s3734_s23 + $0x98] sm:$0xff] %vm2316_vm13, %v2303_v31  ;;  %v2439_v25 = vmul.f32 %v2303_v31, %v2303_v31  ;;  %v2487_v45 = vsel %vm2316_vm13, %v2438_v21, 0.0  ;;  %v2386_v8 = vsel %vm2316_vm13, %v2303_v31, 0.0 }
 0x2e5   : > { %v2483_v37 = vsel %vm2316_vm13, %v2436_v26, 0.0  ;;  %2334 = vst.msk [vmem:[%s3734_s23 + $0x88] sm:$0xff] %vm2316_vm13, %v2301_v53  ;;  %v2382_v34 = vsel %vm2316_vm13, %v2301_v53, 0.0  ;;  %v2437_v13 = vmul.f32 %v2301_v53, %v2301_v53 }
 0x2e6   : > { %v2484_v39 = vadd.f32 %v2483_v37, %v2482_v42  ;;  %v2383_v9 = vadd.f32 %v2382_v34, %v2381_v52  ;;  %v2489_v20 = vsel %vm2316_vm13, %v2439_v25, 0.0 }
 0x2e7   : > { %v2485_v4 = vsel %vm2316_vm13, %v2437_v13, 0.0 }
 0x2e8   : > { %v2385_v54 = vadd.f32 %v2384_v40, %v2383_v9  ;;  %v2486_v44 = vadd.f32 %v2485_v4, %v2484_v39 }
 0x2ea   : > { %v2488_v41 = vadd.f32 %v2487_v45, %v2486_v44  ;;  %v2387_v14 = vadd.f32 %v2386_v8, %v2385_v54 }
 0x2ec   : > { %v2490_v15 = vadd.f32 %v2489_v20, %v2488_v41 }
 0x30f   : > { %v2707_v6 = vpop.f32.mrb[4].mxu1 }
 0x310   : > { %v2306_v28 = vmax.f32 %v2707_v6, 0.0  ;;  %v2237_v10 = vpop.f32.mrb[5].mxu1 }
 0x311   : > { %v2304_v24 = vmax.f32 %v2237_v10, 0.0  ;;  %v2708_v11 = vpop.f32.mrb[6].mxu1 }
 0x312   : > { %2339 = vst.msk [vmem:[%s3734_s23 + $0xb0] sm:$0xff] %vm2316_vm13, %v2306_v28  ;;  %v2307_v33 = vmax.f32 %v2708_v11, 0.0  ;;  %v2240_v43 = vpop.f32.mrb[7].mxu1  ;;  %v2442_v27 = vmul.f32 %v2306_v28, %v2306_v28  ;;  %v2392_v16 = vsel %vm2316_vm13, %v2306_v28, 0.0 }
 0x313   : > { %2337 = vst.msk [vmem:[%s3734_s23 + $0xa0] sm:$0xff] %vm2316_vm13, %v2304_v24  ;;  %v2388_v55 = vsel %vm2316_vm13, %v2304_v24, 0.0  ;;  %v2440_v3 = vmul.f32 %v2304_v24, %v2304_v24  ;;  %v2305_v19 = vmax.f32 %v2240_v43, 0.0 }
 0x314   : > { %v2389_v36 = vadd.f32 %v2388_v55, %v2387_v14  ;;  %2340 = vst.msk [vmem:[%s3734_s23 + $0xb8] sm:$0xff] %vm2316_vm13, %v2307_v33  ;;  %v2443_v60 = vmul.f32 %v2307_v33, %v2307_v33  ;;  %v2495_v22 = vsel %vm2316_vm13, %v2442_v27, 0.0  ;;  %v2394_v61 = vsel %vm2316_vm13, %v2307_v33, 0.0 }
 0x315   : > { %v2491_v47 = vsel %vm2316_vm13, %v2440_v3, 0.0  ;;  %2338 = vst.msk [vmem:[%s3734_s23 + $0xa8] sm:$0xff] %vm2316_vm13, %v2305_v19  ;;  %v2390_v56 = vsel %vm2316_vm13, %v2305_v19, 0.0  ;;  %v2441_v58 = vmul.f32 %v2305_v19, %v2305_v19 }
 0x316   : > { %v2492_v59 = vadd.f32 %v2491_v47, %v2490_v15  ;;  %v2391_v30 = vadd.f32 %v2390_v56, %v2389_v36  ;;  %v2497_v0 = vsel %vm2316_vm13, %v2443_v60, 0.0 }
 0x317   : > { %v2493_v23 = vsel %vm2316_vm13, %v2441_v58, 0.0 }
 0x318   : > { %v2393_v17 = vadd.f32 %v2392_v16, %v2391_v30  ;;  %v2494_v46 = vadd.f32 %v2493_v23, %v2492_v59 }
 0x31a   : > { %v2496_v29 = vadd.f32 %v2495_v22, %v2494_v46  ;;  %v2395_v49 = vadd.f32 %v2394_v61, %v2393_v17 }
 0x31c   : > { %v2498_v12 = vadd.f32 %v2497_v0, %v2496_v29 }
 0x33f   : > { %v2711_v2 = vpop.f32.mrb[8].mxu1 }
 0x340   : > { %v2310_v5 = vmax.f32 %v2711_v2, 0.0  ;;  %v2253_v35 = vpop.f32.mrb[9].mxu1 }
 0x341   : > { %v2308_v32 = vmax.f32 %v2253_v35, 0.0  ;;  %v2712_v7 = vpop.f32.mrb[10].mxu1 }
 0x342   : > { %2343 = vst.msk [vmem:[%s3734_s23 + $0xd0] sm:$0xff] %vm2316_vm13, %v2310_v5  ;;  %v2311_v63 = vmax.f32 %v2712_v7, 0.0  ;;  %v2256_v62 = vpop.f32.mrb[11].mxu1  ;;  %v2446_v50 = vmul.f32 %v2310_v5, %v2310_v5  ;;  %v2400_v53 = vsel %vm2316_vm13, %v2310_v5, 0.0 }
 0x343   : > { %2341 = vst.msk [vmem:[%s3734_s23 + $0xc0] sm:$0xff] %vm2316_vm13, %v2308_v32  ;;  %v2396_v42 = vsel %vm2316_vm13, %v2308_v32, 0.0  ;;  %v2444_v48 = vmul.f32 %v2308_v32, %v2308_v32  ;;  %v2309_v38 = vmax.f32 %v2256_v62, 0.0 }
 0x344   : > { %v2397_v1 = vadd.f32 %v2396_v42, %v2395_v49  ;;  %2344 = vst.msk [vmem:[%s3734_s23 + $0xd8] sm:$0xff] %vm2316_vm13, %v2311_v63  ;;  %v2447_v52 = vmul.f32 %v2311_v63, %v2311_v63  ;;  %v2503_v13 = vsel %vm2316_vm13, %v2446_v50, 0.0  ;;  %v2402_v39 = vsel %vm2316_vm13, %v2311_v63, 0.0 }
 0x345   : > { %v2499_v18 = vsel %vm2316_vm13, %v2444_v48, 0.0  ;;  %2342 = vst.msk [vmem:[%s3734_s23 + $0xc8] sm:$0xff] %vm2316_vm13, %v2309_v38  ;;  %v2398_v31 = vsel %vm2316_vm13, %v2309_v38, 0.0  ;;  %v2445_v51 = vmul.f32 %v2309_v38, %v2309_v38 }
 0x346   : > { %v2500_v57 = vadd.f32 %v2499_v18, %v2498_v12  ;;  %v2399_v26 = vadd.f32 %v2398_v31, %v2397_v1  ;;  %v2505_v25 = vsel %vm2316_vm13, %v2447_v52, 0.0 }
 0x347   : > { %v2501_v21 = vsel %vm2316_vm13, %v2445_v51, 0.0 }
 0x348   : > { %v2401_v37 = vadd.f32 %v2400_v53, %v2399_v26  ;;  %v2502_v34 = vadd.f32 %v2501_v21, %v2500_v57 }
 0x34a   : > { %v2504_v9 = vadd.f32 %v2503_v13, %v2502_v34  ;;  %v2403_v40 = vadd.f32 %v2402_v39, %v2401_v37 }
 0x34c   : > { %v2506_v4 = vadd.f32 %v2505_v25, %v2504_v9 }
 0x36f   : > { %v2715_v54 = vpop.f32.mrb[12].mxu1 }
 0x370   : > { %v2314_v44 = vmax.f32 %v2715_v54, 0.0  ;;  %v2269_v45 = vpop.f32.mrb[13].mxu1 }
 0x371   : > { %v2312_v8 = vmax.f32 %v2269_v45, 0.0  ;;  %v2716_v41 = vpop.f32.mrb[14].mxu1 }
 0x372   : > { %2347 = vst.msk [vmem:[%s3734_s23 + $0xf0] sm:$0xff] %vm2316_vm13, %v2314_v44  ;;  %v2315_v14 = vmax.f32 %v2716_v41, 0.0  ;;  %v2272_v20 = vpop.f32.mrb[15].mxu1  ;;  %v2450_v24 = vmul.f32 %v2314_v44, %v2314_v44  ;;  %v2408_v19 = vsel %vm2316_vm13, %v2314_v44, 0.0 }
 0x373   : > { %2345 = vst.msk [vmem:[%s3734_s23 + $0xe0] sm:$0xff] %vm2316_vm13, %v2312_v8  ;;  %v2404_v15 = vsel %vm2316_vm13, %v2312_v8, 0.0  ;;  %v2448_v6 = vmul.f32 %v2312_v8, %v2312_v8  ;;  %v2313_v28 = vmax.f32 %v2272_v20, 0.0 }
 0x374   : > { %v2405_v10 = vadd.f32 %v2404_v15, %v2403_v40  ;;  %2348 = vst.msk [vmem:[%s3734_s23 + $0xf8] sm:$0xff] %vm2316_vm13, %v2315_v14  ;;  %v2451_v36 = vmul.f32 %v2315_v14, %v2315_v14  ;;  %v2511_v58 = vsel %vm2316_vm13, %v2450_v24, 0.0  ;;  %v2410_v59 = vsel %vm2316_vm13, %v2315_v14, 0.0 }
 0x375   : > { %v2507_v11 = vsel %vm2316_vm13, %v2448_v6, 0.0  ;;  %2346 = vst.msk [vmem:[%s3734_s23 + $0xe8] sm:$0xff] %vm2316_vm13, %v2313_v28  ;;  %v2406_v33 = vsel %vm2316_vm13, %v2313_v28, 0.0  ;;  %v2449_v43 = vmul.f32 %v2313_v28, %v2313_v28 }
 0x376   : > { %v2508_v55 = vadd.f32 %v2507_v11, %v2506_v4  ;;  %v2407_v3 = vadd.f32 %v2406_v33, %v2405_v10  ;;  %v2513_v60 = vsel %vm2316_vm13, %v2451_v36, 0.0 }
 0x377   : > { %v2509_v27 = vsel %vm2316_vm13, %v2449_v43, 0.0 }
 0x378   : > { %v2409_v47 = vadd.f32 %v2408_v19, %v2407_v3  ;;  %v2510_v56 = vadd.f32 %v2509_v27, %v2508_v55 }
 0x37a   : > { %v2411_v30 = vadd.f32 %v2410_v59, %v2409_v47  ;;  %v2512_v16 = vadd.f32 %v2511_v58, %v2510_v56 }
 0x37c   : > { %v2412_v23 = vrot.slane %v2411_v30, 4  ;;  %v2514_v17 = vadd.f32 %v2513_v60, %v2512_v16 }
 0x37e   : > { %v2413_v46 = vadd.f32 %v2412_v23, %v2411_v30  ;;  %v2515_v22 = vrot.slane %v2514_v17, 4 }
 0x380   : > { %v2414_v61 = vrot.slane %v2413_v46, 2  ;;  %v2516_v29 = vadd.f32 %v2515_v22, %v2514_v17 }
 0x382   : > { %v2415_v49 = vadd.f32 %v2414_v61, %v2413_v46  ;;  %v2517_v0 = vrot.slane %v2516_v29, 2 }
 0x384   : > { %v2416_v12 = vrot.slane %v2415_v49, 1  ;;  %v2518_v2 = vadd.f32 %v2517_v0, %v2516_v29 }
 0x386   : > { %v2417_v5 = vadd.f32 %v2416_v12, %v2415_v49  ;;  %v2519_v35 = vrot.slane %v2518_v2, 1 }
 0x388   : > { %2419 = vst.msk [vmem:[%s238_s25] sm:$0x1] %vm2418_vm14, %v2417_v5  ;;  %v2520_v32 = vadd.f32 %v2519_v35, %v2518_v2 }
 0x38a   : > { %2521 = vst.msk [vmem:[%s241_s28] sm:$0x1] %vm2418_vm14, %v2520_v32 }
 0x38b PF: > { %s16_s18 = sadd.s32 1, %s2752_s18  }
 0x38c   : > { %p13_p4 = scmp.ge.s32.totalorder %s16_s18, 4  }
 0x38e   :  { %15 = sbr.rel (!%p13_p4) target bundleno = 1 (0x1), region = 89 }

</bundles_post_ra>
